<compile_context>
chip_gen: v5e
topology: v5e:2x2
jax: 0.10.0
libtpu: 0.0.40
codegen_flags: <defaults>
</compile_context>

<pallas_src>
import jax
import jax.numpy as jnp
from jax.experimental import pallas as pl
from jax.experimental.pallas import tpu as pltpu

W0 = 1.0  # Sine(w0=1.0) in the module; folded into weights/biases host-side.


def nir_kernel(x_ref,
               w1_ref, b1_ref,
               w2_ref, b2_ref,
               w3_ref, b3_ref,
               w4_ref, b4_ref,
               o_ref):
    """Fused 4-layer SIREN MLP, feature-major.

    x block: (tile_m, d_in).  All activations are (features, tile_m) so the
    pixel axis occupies the full 128-lane axis (VALU-bound sin runs at full
    lane occupancy, MXU results are (<=32, tile_m) -> fewer vmatmul pushes,
    output stores are lane-dense).  W0 is folded into the weights host-side.
    """
    # Single XLU transpose of the input tile; replaces the old `h.T` before
    # the last layer (same cost, hidden under the VALU bottleneck).
    xt = x_ref[...].T                                                # (d_in, tm)

    h = jnp.sin(jnp.dot(w1_ref[...], xt,
                        preferred_element_type=jnp.float32) + b1_ref[...])  # (32, tm)
    h = jnp.sin(jnp.dot(w2_ref[...], h,
                        preferred_element_type=jnp.float32) + b2_ref[...])  # (32, tm)
    h = jnp.sin(jnp.dot(w3_ref[...], h,
                        preferred_element_type=jnp.float32) + b3_ref[...])  # (16, tm)
    o = jnp.dot(w4_ref[...], h,
                preferred_element_type=jnp.float32) + b4_ref[...]           # (d_out, tm)
    o_ref[...] = o.astype(o_ref.dtype)


def _whole(shape):
    # Full-array block with a constant index_map -> resident across grid steps.
    # Weights + biases total ~3 KiB; default double-buffering is negligible.
    return pl.BlockSpec(shape, lambda i, _s=shape: tuple(0 for _ in _s))


def _num_tensorcores_per_chip():
    """2 TensorCores share the 'parallel' grid axis on v7x; 1 on v5e/v6e."""
    try:
        kind = (getattr(jax.devices()[0], "device_kind", "") or "").lower()
    except Exception:
        return 1
    return 2 if "v7" in kind else 1


def nir_forward(x, params, *, tile_m=8192, w0=W0, transposed_output=False,
                num_cores=None):
    """x: [N, pos_enc_dim*2] float32. Returns [N, output_dim]
    (or [output_dim, N] if transposed_output=True)."""
    N, d_in = x.shape
    w1, b1 = params["w1"], params["b1"]
    w2, b2 = params["w2"], params["b2"]
    w3, b3 = params["w3"], params["b3"]
    w4, b4 = params["w4"], params["b4"]
    d_out = w4.shape[0]

    # Fold the Sine w0 into the pre-activation weights/biases (no-op for w0=1).
    if w0 != 1.0:
        w1, b1 = w1 * w0, b1 * w0
        w2, b2 = w2 * w0, b2 * w0
        w3, b3 = w3 * w0, b3 * w0

    if num_cores is None:
        num_cores = _num_tensorcores_per_chip()

    # --- tile selection -----------------------------------------------------
    # Per-tile VMEM is tiny in feature-major form, so big tiles amortize the
    # ~0.35us per-grid-step overhead.  Single-TC chips (v5e/v6e): no cap, use
    # tile_m directly.  2-TC chips (v7x): cap at ~N/4 so there are >=4 grid
    # steps (>=2 per core) to keep the input-prefetch/output-writeback pipeline
    # busy, and make the grid even for balanced megacore sharding.
    tile_m = max(128, (int(tile_m) // 128) * 128)
    n128 = pl.cdiv(N, 128) * 128
    if num_cores >= 2:
        cap = max(128, (n128 // (4 * 128)) * 128)   # ~N/4, floored to 128
        tm = min(tile_m, cap)
    else:
        tm = min(tile_m, n128)

    grid_len = pl.cdiv(N, tm)
    if num_cores >= 2 and grid_len > 1 and grid_len % 2 == 1:
        grid_len += 1                               # even grid across 2 cores
    n_pad = grid_len * tm
    if n_pad != N:
        x = jnp.pad(x, ((0, n_pad - N), (0, 0)))

    out_t = pl.pallas_call(
        nir_kernel,
        out_shape=jax.ShapeDtypeStruct((d_out, n_pad), x.dtype),
        grid_spec=pltpu.PrefetchScalarGridSpec(
            num_scalar_prefetch=0,
            grid=(grid_len,),
            in_specs=[
                pl.BlockSpec((tm, d_in), lambda i: (i, 0)),
                _whole(w1.shape), _whole(b1.shape),
                _whole(w2.shape), _whole(b2.shape),
                _whole(w3.shape), _whole(b3.shape),
                _whole(w4.shape), _whole(b4.shape),
            ],
            # Lane-dense output: [d_out, N_pad] in blocks of width tm (x128).
            out_specs=pl.BlockSpec((d_out, tm), lambda i: (0, i)),
        ),
        compiler_params=pltpu.CompilerParams(
            dimension_semantics=("parallel",)),
    )(x, w1, b1, w2, b2, w3, b3, w4, b4)

    if transposed_output:
        return out_t[:, :N]
    # Back to the PyTorch layout [N, d_out]; drop any padded rows.
    return out_t[:, :N].T


def init_params(key, pos_enc_dim, output_dim):
    """Deterministic init matching nn.Linear shapes.

    All weights stored [out, in] (== nn.Linear.weight), biases [out, 1].
    """
    dims = [(pos_enc_dim * 2, 32), (32, 32), (32, 16), (16, output_dim)]
    params = {}
    for idx, (fan_in, fan_out) in enumerate(dims, start=1):
        key, kw, kb = jax.random.split(key, 3)
        bound = 1.0 / float(fan_in) ** 0.5
        w = jax.random.uniform(kw, (fan_out, fan_in), jnp.float32, -bound, bound)
        b = jax.random.uniform(kb, (fan_out,), jnp.float32, -bound, bound)
        params[f"w{idx}"] = w             # [out, in]
        params[f"b{idx}"] = b[:, None]    # [out, 1]
    return params


def nir_reference(x, params, w0=W0):
    h = jnp.sin(w0 * (x @ params["w1"].T + params["b1"].T))
    h = jnp.sin(w0 * (h @ params["w2"].T + params["b2"].T))
    h = jnp.sin(w0 * (h @ params["w3"].T + params["b3"].T))
    return h @ params["w4"].T + params["b4"].T


if __name__ == "__main__":
    # Small shapes consistent with the module: image h=16, w=16, pos_enc_dim=8,
    # output_dim=3 -> input x is [h*w, pos_enc_dim*2] = [256, 16].
    h_img, w_img, pos_enc_dim, output_dim = 16, 16, 8, 3
    N = h_img * w_img

    key = jax.random.PRNGKey(0)
    key, kx = jax.random.split(key)
    x = jax.random.uniform(kx, (N, pos_enc_dim * 2), jnp.float32, -1.0, 1.0)

    params = init_params(jax.random.PRNGKey(42), pos_enc_dim, output_dim)

    out = nir_forward(x, params)
    out = jax.block_until_ready(out)

    ref = nir_reference(x, params)
    assert out.shape == (N, output_dim), out.shape
    assert jnp.allclose(out, ref, atol=1e-5, rtol=1e-5), "mismatch vs reference"

    print("KERNEL_OK")
</pallas_src>

<mosaic_0001>
module attributes {stable_mosaic.version = 11 : i64} {
  func.func @nir_kernel(%arg0: i32, %arg1: memref<256x16xf32, #tpu.memory_space<vmem>>, %arg2: memref<32x16xf32, #tpu.memory_space<vmem>>, %arg3: memref<32x1xf32, #tpu.memory_space<vmem>>, %arg4: memref<32x32xf32, #tpu.memory_space<vmem>>, %arg5: memref<32x1xf32, #tpu.memory_space<vmem>>, %arg6: memref<16x32xf32, #tpu.memory_space<vmem>>, %arg7: memref<16x1xf32, #tpu.memory_space<vmem>>, %arg8: memref<3x16xf32, #tpu.memory_space<vmem>>, %arg9: memref<3x1xf32, #tpu.memory_space<vmem>>, %arg10: memref<3x256xf32, #tpu.memory_space<vmem>>) attributes {dimension_semantics = [#tpu.dimension_semantics<parallel>], iteration_bounds = array<i64: 1>, scalar_prefetch = 0 : i64, scratch_operands = 0 : i64, tpu.core_type = #tpu.core_type<tc>, window_params = [{transform_indices = @transform_0, window_bounds = array<i64: 256, 16>}, {pipeline_mode = #tpu.pipeline_mode<synchronous>, transform_indices = @transform_1, window_bounds = array<i64: 32, 16>}, {pipeline_mode = #tpu.pipeline_mode<synchronous>, transform_indices = @transform_2, window_bounds = array<i64: 32, 1>}, {pipeline_mode = #tpu.pipeline_mode<synchronous>, transform_indices = @transform_3, window_bounds = array<i64: 32, 32>}, {pipeline_mode = #tpu.pipeline_mode<synchronous>, transform_indices = @transform_4, window_bounds = array<i64: 32, 1>}, {pipeline_mode = #tpu.pipeline_mode<synchronous>, transform_indices = @transform_5, window_bounds = array<i64: 16, 32>}, {pipeline_mode = #tpu.pipeline_mode<synchronous>, transform_indices = @transform_6, window_bounds = array<i64: 16, 1>}, {pipeline_mode = #tpu.pipeline_mode<synchronous>, transform_indices = @transform_7, window_bounds = array<i64: 3, 16>}, {pipeline_mode = #tpu.pipeline_mode<synchronous>, transform_indices = @transform_8, window_bounds = array<i64: 3, 1>}, {transform_indices = @transform_9, window_bounds = array<i64: 3, 256>}]} {
    %c0 = arith.constant 0 : index
    %c0_0 = arith.constant 0 : index
    %0 = vector.load %arg1[%c0, %c0_0] : memref<256x16xf32, #tpu.memory_space<vmem>>, vector<256x16xf32>
    %1 = tpu.transpose %0, [1, 0] : vector<256x16xf32> -> vector<16x256xf32>
    %c0_1 = arith.constant 0 : index
    %c0_2 = arith.constant 0 : index
    %2 = vector.load %arg2[%c0_1, %c0_2] : memref<32x16xf32, #tpu.memory_space<vmem>>, vector<32x16xf32>
    %cst = arith.constant dense<0.000000e+00> : vector<32x256xf32>
    %3 = tpu.matmul %2, %1, %cst {dimension_numbers = #tpu.dot_dimension_numbers<[1], [0], [0], [1], [0, 0, 1, 1], [], []>} : vector<32x16xf32>, vector<16x256xf32>, vector<32x256xf32> -> vector<32x256xf32>
    %c0_3 = arith.constant 0 : index
    %c0_4 = arith.constant 0 : index
    %4 = vector.load %arg3[%c0_3, %c0_4] : memref<32x1xf32, #tpu.memory_space<vmem>>, vector<32x1xf32>
    %5 = vector.broadcast %4 : vector<32x1xf32> to vector<32x256xf32>
    %6 = arith.addf %3, %5 : vector<32x256xf32>
    %7 = math.sin %6 : vector<32x256xf32>
    %c0_5 = arith.constant 0 : index
    %c0_6 = arith.constant 0 : index
    %8 = vector.load %arg4[%c0_5, %c0_6] : memref<32x32xf32, #tpu.memory_space<vmem>>, vector<32x32xf32>
    %cst_7 = arith.constant dense<0.000000e+00> : vector<32x256xf32>
    %9 = tpu.matmul %8, %7, %cst_7 {dimension_numbers = #tpu.dot_dimension_numbers<[1], [0], [0], [1], [0, 0, 1, 1], [], []>} : vector<32x32xf32>, vector<32x256xf32>, vector<32x256xf32> -> vector<32x256xf32>
    %c0_8 = arith.constant 0 : index
    %c0_9 = arith.constant 0 : index
    %10 = vector.load %arg5[%c0_8, %c0_9] : memref<32x1xf32, #tpu.memory_space<vmem>>, vector<32x1xf32>
    %11 = vector.broadcast %10 : vector<32x1xf32> to vector<32x256xf32>
    %12 = arith.addf %9, %11 : vector<32x256xf32>
    %13 = math.sin %12 : vector<32x256xf32>
    %c0_10 = arith.constant 0 : index
    %c0_11 = arith.constant 0 : index
    %14 = vector.load %arg6[%c0_10, %c0_11] : memref<16x32xf32, #tpu.memory_space<vmem>>, vector<16x32xf32>
    %cst_12 = arith.constant dense<0.000000e+00> : vector<16x256xf32>
    %15 = tpu.matmul %14, %13, %cst_12 {dimension_numbers = #tpu.dot_dimension_numbers<[1], [0], [0], [1], [0, 0, 1, 1], [], []>} : vector<16x32xf32>, vector<32x256xf32>, vector<16x256xf32> -> vector<16x256xf32>
    %c0_13 = arith.constant 0 : index
    %c0_14 = arith.constant 0 : index
    %16 = vector.load %arg7[%c0_13, %c0_14] : memref<16x1xf32, #tpu.memory_space<vmem>>, vector<16x1xf32>
    %17 = vector.broadcast %16 : vector<16x1xf32> to vector<16x256xf32>
    %18 = arith.addf %15, %17 : vector<16x256xf32>
    %19 = math.sin %18 : vector<16x256xf32>
    %c0_15 = arith.constant 0 : index
    %c0_16 = arith.constant 0 : index
    %20 = vector.load %arg8[%c0_15, %c0_16] : memref<3x16xf32, #tpu.memory_space<vmem>>, vector<3x16xf32>
    %cst_17 = arith.constant dense<0.000000e+00> : vector<3x256xf32>
    %21 = tpu.matmul %20, %19, %cst_17 {dimension_numbers = #tpu.dot_dimension_numbers<[1], [0], [0], [1], [0, 0, 1, 1], [], []>} : vector<3x16xf32>, vector<16x256xf32>, vector<3x256xf32> -> vector<3x256xf32>
    %c0_18 = arith.constant 0 : index
    %c0_19 = arith.constant 0 : index
    %22 = vector.load %arg9[%c0_18, %c0_19] : memref<3x1xf32, #tpu.memory_space<vmem>>, vector<3x1xf32>
    %23 = vector.broadcast %22 : vector<3x1xf32> to vector<3x256xf32>
    %24 = arith.addf %21, %23 : vector<3x256xf32>
    %c0_20 = arith.constant 0 : index
    %c0_21 = arith.constant 0 : index
    %25 = vector.load %arg10[%c0_20, %c0_21] : memref<3x256xf32, #tpu.memory_space<vmem>>, vector<3x256xf32>
    tpu.vector_store %arg10[%c0_20, %c0_21], %24 {strides = array<i32>} : memref<3x256xf32, #tpu.memory_space<vmem>>, vector<3x256xf32>,
    return
  }
  func.func @transform_0(%arg0: i32) -> (i32, i32) {
    %c0_i32 = arith.constant 0 : i32
    %c0_i32_0 = arith.constant 0 : i32
    return %arg0, %c0_i32 : i32, i32
  }
  func.func @transform_1(%arg0: i32) -> (i32, i32) {
    %c0_i32 = arith.constant 0 : i32
    %c0_i32_0 = arith.constant 0 : i32
    %c0_i32_1 = arith.constant 0 : i32
    return %c0_i32, %c0_i32_0 : i32, i32
  }
  func.func @transform_2(%arg0: i32) -> (i32, i32) {
    %c0_i32 = arith.constant 0 : i32
    %c0_i32_0 = arith.constant 0 : i32
    %c0_i32_1 = arith.constant 0 : i32
    return %c0_i32, %c0_i32_0 : i32, i32
  }
  func.func @transform_3(%arg0: i32) -> (i32, i32) {
    %c0_i32 = arith.constant 0 : i32
    %c0_i32_0 = arith.constant 0 : i32
    %c0_i32_1 = arith.constant 0 : i32
    return %c0_i32, %c0_i32_0 : i32, i32
  }
  func.func @transform_4(%arg0: i32) -> (i32, i32) {
    %c0_i32 = arith.constant 0 : i32
    %c0_i32_0 = arith.constant 0 : i32
    %c0_i32_1 = arith.constant 0 : i32
    return %c0_i32, %c0_i32_0 : i32, i32
  }
  func.func @transform_5(%arg0: i32) -> (i32, i32) {
    %c0_i32 = arith.constant 0 : i32
    %c0_i32_0 = arith.constant 0 : i32
    %c0_i32_1 = arith.constant 0 : i32
    return %c0_i32, %c0_i32_0 : i32, i32
  }
  func.func @transform_6(%arg0: i32) -> (i32, i32) {
    %c0_i32 = arith.constant 0 : i32
    %c0_i32_0 = arith.constant 0 : i32
    %c0_i32_1 = arith.constant 0 : i32
    return %c0_i32, %c0_i32_0 : i32, i32
  }
  func.func @transform_7(%arg0: i32) -> (i32, i32) {
    %c0_i32 = arith.constant 0 : i32
    %c0_i32_0 = arith.constant 0 : i32
    %c0_i32_1 = arith.constant 0 : i32
    return %c0_i32, %c0_i32_0 : i32, i32
  }
  func.func @transform_8(%arg0: i32) -> (i32, i32) {
    %c0_i32 = arith.constant 0 : i32
    %c0_i32_0 = arith.constant 0 : i32
    %c0_i32_1 = arith.constant 0 : i32
    return %c0_i32, %c0_i32_0 : i32, i32
  }
  func.func @transform_9(%arg0: i32) -> (i32, i32) {
    %c0_i32 = arith.constant 0 : i32
    %c0_i32_0 = arith.constant 0 : i32
    return %c0_i32, %arg0 : i32, i32
  }
}

</mosaic_0001>

<bundles_post_ra>
// kernel: tpu_custom_call.1
= control target key start
LH: loop header
LB: loop body
LE: loop exit
PB: predicated region body
PF: predicated region fallthrough
CT: control target
= control target key end

     0   :  { %vm93_vm0 = vcmask 130048   ;;  %s6716_s0 = inlined_call_operand.vmem [shape: f32[256,16], index: 0, kind: input, shape index: {}]   ;;  %s6717_s1 = inlined_call_operand.vmem [shape: f32[32,16], index: 1, kind: input, shape index: {}]   ;;  %s6718_s2 = inlined_call_operand.vmem [shape: f32[32,1], index: 2, kind: input, shape index: {}]   ;;  %s6719_s3 = inlined_call_operand.vmem [shape: f32[32,32], index: 3, kind: input, shape index: {}]   ;;  %s6720_s4 = inlined_call_operand.vmem [shape: f32[32,1], index: 4, kind: input, shape index: {}]   ;;  %s6721_s5 = inlined_call_operand.vmem [shape: f32[16,32], index: 5, kind: input, shape index: {}]   ;;  %s6722_s6 = inlined_call_operand.vmem [shape: f32[16,1], index: 6, kind: input, shape index: {}]   ;;  %s6723_s7 = inlined_call_operand.vmem [shape: f32[3,16], index: 7, kind: input, shape index: {}]   ;;  %s6724_s8 = inlined_call_operand.vmem [shape: f32[3,1], index: 8, kind: input, shape index: {}]   ;;  %s6725_s9 = inlined_call_operand.hbm [shape: f32[3,256], index: 9, kind: output, shape index: {}]  }
   0x1   :  { %v48_v0 = vld [vmem:[%s6716_s0 + $0x78] sm:$0xff]  ;;  %v47_v2 = vld [vmem:[%s6716_s0 + $0x70] sm:$0xff]  ;;  %v46_v4 = vld [vmem:[%s6716_s0 + $0x68] sm:$0xff] }
   0x2   :  { %v64_v1 = vld [vmem:[%s6716_s0 + $0xf8] sm:$0xff]  ;;  %3598 = vmatpush.xpose.msk.msra.mxu0 %vm93_vm0, %v48_v0  ;;  %v63_v3 = vld [vmem:[%s6716_s0 + $0xf0] sm:$0xff]  ;;  %v62_v5 = vld [vmem:[%s6716_s0 + $0xe8] sm:$0xff] }
   0x3   :  { %3618 = vmatpush.xpose.msk.msra.mxu1 %vm93_vm0, %v64_v1 }
   0x6   :  { %3599 = vmatpush.xpose.msk.msra.mxu0 %vm93_vm0, %v47_v2 }
   0x7   :  { %3619 = vmatpush.xpose.msk.msra.mxu1 %vm93_vm0, %v63_v3 }
   0x8   :  { %14 = vsyncpa [#allocation3], 0  ;;  %v45_v6 = vld [vmem:[%s6716_s0 + $0x60] sm:$0xff]  ;;  %v44_v8 = vld [vmem:[%s6716_s0 + $0x58] sm:$0xff]  ;;  %v6727_v22 = vmov 0  }
   0x9   :  { %v61_v7 = vld [vmem:[%s6716_s0 + $0xe0] sm:$0xff]  ;;  %v60_v9 = vld [vmem:[%s6716_s0 + $0xd8] sm:$0xff]  ;;  %v43_v10 = vld [vmem:[%s6716_s0 + $0x50] sm:$0xff]  ;;  %3721 = vset.pattern.permute.xlu1 %v6727_v22  ;;  %3720 = vset.pattern.permute.xlu0 %v6727_v22 }
   0xa   :  { %3600 = vmatpush.xpose.msk.msra.mxu0 %vm93_vm0, %v46_v4  ;;  %v59_v11 = vld [vmem:[%s6716_s0 + $0xd0] sm:$0xff]  ;;  %v42_v12 = vld [vmem:[%s6716_s0 + $0x48] sm:$0xff]  ;;  %v41_v14 = vld [vmem:[%s6716_s0 + $0x40] sm:$0xff]  ;;  %3722 = vset.pattern.permute.xlu2 %v6727_v22 }
   0xb   :  { %3620 = vmatpush.xpose.msk.msra.mxu1 %vm93_vm0, %v62_v5  ;;  %v58_v13 = vld [vmem:[%s6716_s0 + $0xc8] sm:$0xff]  ;;  %v57_v15 = vld [vmem:[%s6716_s0 + $0xc0] sm:$0xff]  ;;  %v40_v16 = vld [vmem:[%s6716_s0 + $0x38] sm:$0xff] }
   0xc   :  { %v56_v17 = vld [vmem:[%s6716_s0 + $0xb8] sm:$0xff]  ;;  %v70_v18 = vld [vmem:[%s6718_s2 + $0x8] sm:$0xff]  ;;  %v39_v20 = vld [vmem:[%s6716_s0 + $0x30] sm:$0xff] }
   0xd   :  { %v72_v19 = vld [vmem:[%s6718_s2 + $0x18] sm:$0xff]  ;;  %v55_v21 = vld [vmem:[%s6716_s0 + $0xb0] sm:$0xff]  ;;  %80 = vperm.xlu1 %3721, %v70_v18   ;;  %v38_v23 = vld [vmem:[%s6716_s0 + $0x28] sm:$0xff] }
   0xe   :  { %3601 = vmatpush.xpose.msk.msra.mxu0 %vm93_vm0, %v45_v6  ;;  %90 = vperm.xlu0 %3720, %v72_v19   ;;  %v54_v24 = vld [vmem:[%s6716_s0 + $0xa8] sm:$0xff]  ;;  %v69_v25 = vld [vmem:[%s6718_s2] sm:$0xff]  ;;  %v71_v26 = vld [vmem:[%s6718_s2 + $0x10] sm:$0xff] }
   0xf   :  { %3621 = vmatpush.xpose.msk.msra.mxu1 %vm93_vm0, %v61_v7  ;;  %v37_v27 = vld [vmem:[%s6716_s0 + $0x20] sm:$0xff]  ;;  %v36_v29 = vld [vmem:[%s6716_s0 + $0x18] sm:$0xff]  ;;  %v1505_v31 = vld [vmem:[%s6720_s4 + $0x8] sm:$0xff] }
  0x10   :  { %v53_v28 = vld [vmem:[%s6716_s0 + $0xa0] sm:$0xff]  ;;  %v52_v30 = vld [vmem:[%s6716_s0 + $0x98] sm:$0xff]  ;;  %v35_v32 = vld [vmem:[%s6716_s0 + $0x10] sm:$0xff] }
  0x11   :  { %v51_v33 = vld [vmem:[%s6716_s0 + $0x90] sm:$0xff]  ;;  %v34_v34 = vld [vmem:[%s6716_s0 + $0x8] sm:$0xff]  ;;  %v1504_v36 = vld [vmem:[%s6720_s4] sm:$0xff] }
  0x12   :  { %3602 = vmatpush.xpose.msk.msra.mxu0 %vm93_vm0, %v44_v8  ;;  %v50_v35 = vld [vmem:[%s6716_s0 + $0x88] sm:$0xff]  ;;  %v2841_v37 = vld [vmem:[%s6722_s6] sm:$0xff]  ;;  %v67_v43 = vld [vmem:[%s6717_s1 + $0x10] sm:$0xff] }
  0x13   :  { %3622 = vmatpush.xpose.msk.msra.mxu1 %vm93_vm0, %v60_v9  ;;  %v33_v38 = vld [vmem:[%s6716_s0] sm:$0xff]  ;;  %v66_v42 = vld [vmem:[%s6717_s1 + $0x8] sm:$0xff]  ;;  %v68_v44 = vld [vmem:[%s6717_s1 + $0x18] sm:$0xff] }
  0x14   :  { %v49_v39 = vld [vmem:[%s6716_s0 + $0x80] sm:$0xff]  ;;  %s3589_s0 = sshll.u32 %s6725_s9, 4  ;;  %s3590_s0 = int_to_ptr.hbm [resolvable:$true] %s3589_s0 }
  0x15   :  { %75 = vperm.xlu1 %3721, %v69_v25   ;;  %v65_v40 = vld [vmem:[%s6717_s1] sm:$0xff] }
  0x16   :  { %3603 = vmatpush.xpose.msk.msra.mxu0 %vm93_vm0, %v43_v10  ;;  %85 = vperm.xlu0 %3720, %v71_v26   ;;  %v3526_v41 = vld [vmem:[%s6724_s8] sm:$0x7] }
  0x17   :  { %3623 = vmatpush.xpose.msk.msra.mxu1 %vm93_vm0, %v59_v11 }
  0x1a   :  { %3604 = vmatpush.xpose.msk.msra.mxu0 %vm93_vm0, %v42_v12 }
  0x1b   :  { %3624 = vmatpush.xpose.msk.msra.mxu1 %vm93_vm0, %v58_v13 }
  0x1d   :  { %1510 = vperm.xlu1 %3721, %v1504_v36  }
  0x1e   :  { %3605 = vmatpush.xpose.msk.msra.mxu0 %vm93_vm0, %v41_v14  ;;  %1515 = vperm.xlu0 %3720, %v1505_v31  }
  0x1f   :  { %3625 = vmatpush.xpose.msk.msra.mxu1 %vm93_vm0, %v57_v15 }
  0x22   :  { %3606 = vmatpush.xpose.msk.msra.mxu0 %vm93_vm0, %v40_v16 }
  0x23   :  { %3626 = vmatpush.xpose.msk.msra.mxu1 %vm93_vm0, %v56_v17 }
  0x25   :  { %3529 = vperm.xlu1 %3721, %v3526_v41  }
  0x26   :  { %3607 = vmatpush.xpose.msk.msra.mxu0 %vm93_vm0, %v39_v20  ;;  %2845 = vperm.xlu0 %3720, %v2841_v37  }
  0x27   :  { %3627 = vmatpush.xpose.msk.msra.mxu1 %vm93_vm0, %v55_v21 }
  0x2a   :  { %3608 = vmatpush.xpose.msk.msra.mxu0 %vm93_vm0, %v38_v23 }
  0x2b   :  { %3628 = vmatpush.xpose.msk.msra.mxu1 %vm93_vm0, %v54_v24 }
  0x2e   :  { %3609 = vmatpush.xpose.msk.msra.mxu0 %vm93_vm0, %v37_v27 }
  0x2f   :  { %3629 = vmatpush.xpose.msk.msra.mxu1 %vm93_vm0, %v53_v28 }
  0x32   :  { %3610 = vmatpush.xpose.msk.msra.mxu0 %vm93_vm0, %v36_v29 }
  0x33   :  { %3630 = vmatpush.xpose.msk.msra.mxu1 %vm93_vm0, %v52_v30 }
  0x36   :  { %3611 = vmatpush.xpose.msk.msra.mxu0 %vm93_vm0, %v35_v32 }
  0x37   :  { %3631 = vmatpush.xpose.msk.msra.mxu1 %vm93_vm0, %v51_v33 }
  0x3a   :  { %3612 = vmatpush.xpose.msk.msra.mxu0 %vm93_vm0, %v34_v34 }
  0x3b   :  { %3632 = vmatpush.xpose.msk.msra.mxu1 %vm93_vm0, %v50_v35 }
  0x3e   :  { %3613 = vmatpush.xpose.msk.msra.mxu0 %vm93_vm0, %v33_v38 }
  0x3f   :  { %3633 = vmatpush.xpose.msk.msra.mxu1 %vm93_vm0, %v49_v39 }
  0x41   :  { %3614 = vmatmul.msk.f32.vlgmr.msra.gmra.mxu0 %vm93_vm0, %v65_v40 }
  0x42   :  { %3634 = vmatmul.msk.f32.vlgmr.msra.gmra.mxu1 %vm93_vm0, %v65_v40  ;;  %v6735_v40 = vmov 2102212464  }
  0x49   :  { %3615 = vmatmul.msk.f32.gmra.mxu0 %vm93_vm0, %v66_v42 }
  0x4a   :  { %3635 = vmatmul.msk.f32.gmra.mxu1 %vm93_vm0, %v66_v42  ;;  %v6751_v42 = vmov 920167782  }
  0x51   :  { %3616 = vmatmul.msk.f32.gmra.mxu0 %vm93_vm0, %v67_v43 }
  0x52   :  { %3636 = vmatmul.msk.f32.gmra.mxu1 %vm93_vm0, %v67_v43 }
  0x59   :  { %3617 = vmatmul.msk.f32.gmra.mxu0 %vm93_vm0, %v68_v44 }
  0x5a   :  { %3637 = vmatmul.msk.f32.gmra.mxu1 %vm93_vm0, %v68_v44 }
  0x7f   :  { %v81_v45 = vpop.permute.xlu1 %80 }
  0x80   :  { %v91_v53 = vpop.permute.xlu0 %90 }
  0x87   :  { %v76_v46 = vpop.permute.xlu1 %75 }
  0x88   :  { %v86_v5 = vpop.permute.xlu0 %85 }
  0xbe   :  { %v219_v47 = vpop.f32.mrf.mxu0 }
  0xbf   :  { %v248_v48 = vpop.f32.mrf.mxu1  ;;  %v3982_v49 = vadd.f32 %v219_v47, %v76_v46 }
  0xc0   :  { %v3984_v50 = vadd.f32 %v248_v48, %v76_v46 }
  0xc1   :  { %6799 = vst [vmem:[#allocation5_spill] sm:$0xff] %v3982_v49  ;;  %v263_v51 = vand.u32 2139095040, %v3982_v49 }
  0xc2   :  { %6800 = vst [vmem:[#allocation6_spill] sm:$0xff] %v3984_v50  ;;  %v418_v52 = vand.u32 2139095040, %v3984_v50 }
  0xc3   :  { %v264_v56 = vshrl.u32 %v263_v51, 23 }
  0xc4   :  { %v419_v59 = vshrl.u32 %v418_v52, 23  ;;  %v6741_v52 = vmov 1326507024  }
  0xc5   :  { %v3638_v62 = vadd.s32 4294967169, %v264_v56 }
  0xc6   :  { %v222_v54 = vpop.f32.mrf.mxu0  ;;  %v3641_v63 = vadd.s32 4294967169, %v419_v59 }
  0xc7   :  { %v251_v55 = vpop.f32.mrf.mxu1  ;;  %v3988_v57 = vadd.f32 %v222_v54, %v81_v45  ;;  %v270_v4 = vadd.s32 1, %v3638_v62 }
  0xc8   :  { %v3990_v58 = vadd.f32 %v251_v55, %v81_v45  ;;  %v425_v7 = vadd.s32 1, %v3641_v63 }
  0xc9   :  { %v573_v60 = vand.u32 2139095040, %v3988_v57  ;;  %vm271_vm1 = vcmp.gt.s32.totalorder %v270_v4, 0 }
  0xca   :  { %6801 = vst [vmem:[#allocation7_spill] sm:$0xff] %v3990_v58  ;;  %v728_v61 = vand.u32 2139095040, %v3990_v58  ;;  %vm426_vm2 = vcmp.gt.s32.totalorder %v425_v7, 0  ;;  %v272_v15 = vsel %vm271_vm1, %v270_v4, 0 }
  0xcb   :  { %v574_v0 = vshrl.u32 %v573_v60, 23  ;;  %v427_v18 = vsel %vm426_vm2, %v425_v7, 0  ;;  %v4000_v23 = vand.u32 31, %v272_v15  ;;  %v4015_v36 = vshrl.u32 %v272_v15, 5 }
  0xcc   :  { %v729_v1 = vshrl.u32 %v728_v61, 23  ;;  %v4002_v26 = vand.u32 31, %v427_v18  ;;  %v4017_v37 = vshrl.u32 %v427_v18, 5 }
  0xcd   :  { %v3644_v6 = vadd.s32 4294967169, %v574_v0  ;;  %6802 = vst [vmem:[#allocation8_spill] sm:$0xff] %v4000_v23  ;;  %v4013_v34 = vsub.s32 32, %v4000_v23  ;;  %v4026_v41 = vshll.u32 %v6735_v40, %v4000_v23  ;;  %v4030_v43 = vshll.u32 %v6751_v42, %v4000_v23 }
  0xce   :  { %v225_v2 = vpop.f32.mrf.mxu0  ;;  %v3647_v8 = vadd.s32 4294967169, %v729_v1  ;;  %6803 = vst [vmem:[#allocation9_spill] sm:$0xff] %v4002_v26  ;;  %v4020_v38 = vsub.s32 32, %v4002_v26  ;;  %v4034_v44 = vshll.u32 %v6735_v40, %v4002_v26  ;;  %v4050_v54 = vshll.u32 %v6751_v42, %v4002_v26 }
  0xcf   :  { %v254_v3 = vpop.f32.mrf.mxu1  ;;  %v3994_v9 = vadd.f32 %v225_v2, %v86_v5  ;;  %v580_v11 = vadd.s32 1, %v3644_v6  ;;  %6804 = vst [vmem:[#allocation10_spill] sm:$0xff] %v4013_v34  ;;  %v4042_v51 = vshrl.u32 %v6751_v42, %v4013_v34 }
  0xd0   :  { %v3996_v10 = vadd.f32 %v254_v3, %v86_v5  ;;  %v735_v14 = vadd.s32 1, %v3647_v8  ;;  %6805 = vst [vmem:[#allocation11_spill] sm:$0xff] %v4015_v36  ;;  %v4054_v55 = vshrl.u32 %v6751_v42, %v4020_v38 }
  0xd1   :  { %v883_v12 = vand.u32 2139095040, %v3994_v9  ;;  %vm581_vm3 = vcmp.gt.s32.totalorder %v580_v11, 0  ;;  %6806 = vst [vmem:[#allocation12_spill] sm:$0xff] %v4017_v37  ;;  %v6749_v37 = vmov 2131351028  }
  0xd2   :  { %v1038_v13 = vand.u32 2139095040, %v3996_v10  ;;  %v582_v21 = vsel %vm581_vm3, %v580_v11, 0  ;;  %vm736_vm4 = vcmp.gt.s32.totalorder %v735_v14, 0  ;;  %6807 = vst [vmem:[#allocation13_spill] sm:$0xff] %v4020_v38 }
  0xd3   :  { %v884_v16 = vshrl.u32 %v883_v12, 23  ;;  %v4008_v29 = vand.u32 31, %v582_v21  ;;  %v737_v30 = vsel %vm736_vm4, %v735_v14, 0  ;;  %6809 = vst [vmem:[#allocation15_spill] sm:$0xff] %v4026_v41  ;;  %v4056_v56 = vshrl.u32 %v582_v21, 5 }
  0xd4   :  { %v1039_v17 = vshrl.u32 %v1038_v13, 23  ;;  %v4022_v39 = vand.u32 31, %v737_v30  ;;  %6810 = vst [vmem:[#allocation16_spill] sm:$0xff] %v4030_v43  ;;  %v4075_v5 = vshrl.u32 %v737_v30, 5 }
  0xd5   :  { %v3650_v24 = vadd.s32 4294967169, %v884_v16  ;;  %6811 = vst [vmem:[#allocation17_spill] sm:$0xff] %v4034_v44  ;;  %v4037_v45 = vsub.s32 32, %v4008_v29  ;;  %v596_v59 = vshll.u32 %v6735_v40, %v4008_v29  ;;  %v4065_v61 = vshll.u32 %v6751_v42, %v4008_v29 }
  0xd6   :  { %v228_v19 = vpop.f32.mrf.mxu0  ;;  %v3653_v25 = vadd.s32 4294967169, %v1039_v17  ;;  %6808 = vst [vmem:[#allocation14_spill] sm:$0xff] %v4022_v39  ;;  %v4061_v60 = vsub.s32 32, %v4022_v39  ;;  %v4079_v6 = vshll.u32 %v6735_v40, %v4022_v39  ;;  %v4087_v12 = vshll.u32 %v6751_v42, %v4022_v39 }
  0xd7   :  { %v257_v20 = vpop.f32.mrf.mxu1  ;;  %v4004_v27 = vadd.f32 %v228_v19, %v91_v53  ;;  %v890_v31 = vadd.s32 1, %v3650_v24  ;;  %6812 = vst [vmem:[#allocation18_spill] sm:$0xff] %v4042_v51  ;;  %v597_v1 = vshrl.u32 %v6751_v42, %v4037_v45  ;;  %v4071_v2 = vshrl.u32 %v6741_v52, %v4037_v45 }
  0xd8   :  { %v4006_v28 = vadd.f32 %v257_v20, %v91_v53  ;;  %v1045_v35 = vadd.s32 1, %v3653_v25  ;;  %v4046_v53 = vshrl.u32 %v6741_v52, %v4013_v34  ;;  %6814 = vst [vmem:[#allocation20_spill] sm:$0xff] %v4050_v54  ;;  %v4083_v11 = vshrl.u32 %v6751_v42, %v4061_v60 }
  0xd9   :  { %v1193_v32 = vand.u32 2139095040, %v4004_v27  ;;  %vm891_vm5 = vcmp.gt.s32.totalorder %v890_v31, 0  ;;  %v6726_v48 = vand.u32 2147483647, %v4004_v27  ;;  %6815 = vst [vmem:[#allocation21_spill] sm:$0xff] %v4054_v55  ;;  %v4091_v13 = vshrl.u32 %v6741_v52, %v4061_v60 }
  0xda   :  { %v1348_v33 = vand.u32 2139095040, %v4006_v28  ;;  %6813 = vst [vmem:[#allocation19_spill] sm:$0xff] %v4046_v53  ;;  %vm1046_vm6 = vcmp.gt.s32.totalorder %v1045_v35, 0  ;;  %v892_v62 = vsel %vm891_vm5, %v890_v31, 0  ;;  %v4097_v17 = vor.u32 %v597_v1, %v596_v59 }
  0xdb   :  { %v1194_v46 = vshrl.u32 %v1193_v32, 23  ;;  %6816 = vst [vmem:[#allocation22_spill] sm:$0xff] %v4061_v60  ;;  %v1047_v3 = vsel %vm1046_vm6, %v1045_v35, 0  ;;  %v1197_v4 = vand.u32 8388607, %v6726_v48  ;;  %v4093_v14 = vand.u32 31, %v892_v62 }
  0xdc   :  { %v1349_v47 = vshrl.u32 %v1348_v33, 23  ;;  %6817 = vst [vmem:[#allocation23_spill] sm:$0xff] %v4075_v5  ;;  %v4095_v15 = vand.u32 31, %v1047_v3  ;;  %v4101_v21 = vshrl.u32 %v892_v62, 5  ;;  %v4118_v35 = vshrl.u32 %v1047_v3, 5 }
  0xdd   :  { %v3656_v63 = vadd.s32 4294967169, %v1194_v46  ;;  %6818 = vst [vmem:[#allocation24_spill] sm:$0xff] %v4087_v12  ;;  %v1198_v16 = vor.u32 8388608, %v1197_v4  ;;  %v4108_v31 = vsub.s32 32, %v4093_v14  ;;  %v4112_v32 = vshll.u32 %v6735_v40, %v4093_v14 }
  0xde   :  { %v3659_v0 = vadd.s32 4294967169, %v1349_v47  ;;  %6819 = vst [vmem:[#allocation25_spill] sm:$0xff] %v4091_v13  ;;  %v4116_v33 = vshll.u32 %v6751_v42, %v4093_v14  ;;  %v4121_v46 = vsub.s32 32, %v4095_v15  ;;  %v6747_v48 = vmov 2475754826  }
  0xdf   :  { %v1200_v7 = vadd.s32 1, %v3656_v63  ;;  %v4125_v62 = vshll.u32 %v1198_v16, 8 }
  0xe0   :  { %v1355_v8 = vadd.s32 1, %v3659_v0 }
  0xe1   :  { %vm1201_vm7 = vcmp.gt.s32.totalorder %v1200_v7, 0 }
  0xe2   :  { %vm1356_vm8 = vcmp.gt.s32.totalorder %v1355_v8, 0  ;;  %v1202_v19 = vsel %vm1201_vm7, %v1200_v7, 0 }
  0xe3   :  { %v1357_v20 = vsel %vm1356_vm8, %v1355_v8, 0  ;;  %v4103_v24 = vshrl.u32 %v1202_v19, 5  ;;  %v1204_v25 = vand.u32 31, %v1202_v19  ;;  %vm915_vm8 = vcmp.lt.s32.totalorder %v4101_v21, 4 }
  0xe4   :  { %v4105_v30 = vand.u32 31, %v1357_v20  ;;  %v4123_v59 = vshrl.u32 %v1357_v20, 5  ;;  %v6745_v20 = vmov 683565275  }
  0xe5   :  { %v1205_v47 = vsub.s32 32, %v1204_v25  ;;  %v1216_v63 = vshll.u32 %v6735_v40, %v1204_v25  ;;  %v1219_v0 = vshll.u32 %v6751_v42, %v1204_v25  ;;  %vm1225_vm9 = vcmp.lt.s32.totalorder %v4103_v24, 4 }
  0xe6   :  { %v4130_v1 = vsub.s32 32, %v4105_v30  ;;  %v1371_v8 = vshll.u32 %v6735_v40, %v4105_v30  ;;  %v1207_v18 = vshll.u32 %v6745_v20, %v1204_v25  ;;  %v1210_v50 = vshll.u32 %v6747_v48, %v1204_v25 }
  0xe7   :  { %v1217_v3 = vshrl.u32 %v6751_v42, %v1205_v47  ;;  %v1220_v7 = vshrl.u32 %v6741_v52, %v1205_v47  ;;  %v1208_v22 = vshrl.u32 %v6747_v48, %v1205_v47  ;;  %v1211_v54 = vshrl.u32 %v6749_v37, %v1205_v47 }
  0xe8   :  { %v1372_v16 = vshrl.u32 %v6751_v42, %v4130_v1  ;;  %v1375_v19 = vshrl.u32 %v6741_v52, %v4130_v1  ;;  %v1374_v40 = vshll.u32 %v6751_v42, %v4105_v30  ;;  %v1213_v23 = vshll.u32 %v6749_v37, %v1204_v25 }
  0xe9   :  { %v1218_v4 = vor.u32 %v1217_v3, %v1216_v63  ;;  %v1221_v26 = vor.u32 %v1220_v7, %v1219_v0  ;;  %v1209_v34 = vor.u32 %v1208_v22, %v1207_v18  ;;  %v6820_v52 = vmov 2102212464  }
  0xea   :  { %v1214_v49 = vshrl.u32 %v6820_v52, %v1205_v47  ;;  %v6821_v0 = vmov 683565275   ;;  %v1212_v7 = vor.u32 %v1211_v54, %v1210_v50  ;;  %v4155_v48 = vor.u32 %v1372_v16, %v1371_v8 }
  0xeb   :  { %v1231_v20 = vsel %vm1225_vm9, %v1218_v4, 920167782  ;;  %v1235_v63 = vsel %vm1225_vm9, %v1221_v26, 1326507024  ;;  %v1206_v3 = vshrl.u32 %v6821_v0, %v1205_v47  ;;  %v1376_v55 = vor.u32 %v1375_v19, %v1374_v40 }
  0xec   :  { %v1215_v44 = vor.u32 %v1214_v49, %v1213_v23  ;;  %vm1222_vm10 = vcmp.lt.s32.totalorder %v4103_v24, 1  ;;  %vm1223_vm11 = vcmp.lt.s32.totalorder %v4103_v24, 2  ;;  %vm1224_vm12 = vcmp.lt.s32.totalorder %v4103_v24, 3 }
  0xed   :  { %v1226_v22 = vsel %vm1222_vm10, %v1206_v3, %v1209_v34  ;;  %v1230_v18 = vsel %vm1222_vm10, %v1209_v34, %v1212_v7  ;;  %v1236_v42 = vsel %vm1224_vm12, %v1218_v4, %v1235_v63  ;;  %v1239_v23 = vand.u32 65535, %v4125_v62 }
  0xee   :  { %v1227_v25 = vsel %vm1225_vm9, %v1215_v44, 2102212464  ;;  %v1232_v37 = vsel %vm1224_vm12, %v1215_v44, %v1231_v20  ;;  %v1234_v26 = vsel %vm1222_vm10, %v1212_v7, %v1215_v44  ;;  %v1240_v40 = vshrl.u32 %v4125_v62, 16 }
  0xef   :  { %v1228_v47 = vsel %vm1224_vm12, %v1212_v7, %v1227_v25  ;;  %v1233_v50 = vsel %vm1223_vm11, %v1230_v18, %v1232_v37  ;;  %v1237_v49 = vsel %vm1223_vm11, %v1234_v26, %v1236_v42  ;;  %v4170_v16 = vshll.u32 %v6820_v52, %v4095_v15 }
  0xf0   :  { %v1241_v54 = vand.u32 65535, %v1237_v49  ;;  %v1242_v8 = vshrl.u32 %v1237_v49, 16  ;;  %v1263_v34 = vand.u32 65535, %v1233_v50  ;;  %v6822_v44 = vmov 920167782  }
  0xf1   :  { %v4174_v4 = vshll.u32 %v6822_v44, %v4095_v15  ;;  %vm1380_vm13 = vcmp.lt.s32.totalorder %v4123_v59, 4  ;;  %v1264_v37 = vshrl.u32 %v1233_v50, 16  ;;  %v4184_v3 = vsel %vm1223_vm11, %v1226_v22, %v1228_v47 }
  0xf2   :  { %v1386_v42 = vsel %vm1380_vm13, %v4155_v48, 920167782  ;;  %v1390_v19 = vsel %vm1380_vm13, %v1376_v55, 1326507024  ;;  %v1244_v20 = vmul.u32 %v1242_v8, %v1239_v23  ;;  %v1245_v63 = vmul.u32 %v1241_v54, %v1240_v40 }
  0xf3   :  { %v1266_v7 = vmul.u32 %v1264_v37, %v1239_v23  ;;  %v1267_v18 = vmul.u32 %v1263_v34, %v1240_v40  ;;  %v6823_v25 = vand.u32 2147483647, %v4006_v28  ;;  %v1243_v49 = vmul.u32 %v1241_v54, %v1239_v23 }
  0xf4   :  { %v1246_v50 = vmul.u32 %v1242_v8, %v1240_v40  ;;  %v1247_v53 = vshll.u32 %v1244_v20, 16  ;;  %v1265_v43 = vmul.u32 %v1263_v34, %v1239_v23  ;;  %v1248_v36 = vshrl.u32 %v1244_v20, 16 }
  0xf5   :  { %v1352_v26 = vand.u32 8388607, %v6823_v25  ;;  %v1249_v51 = vshll.u32 %v1245_v63, 16  ;;  %v1268_v41 = vmul.u32 %v1264_v37, %v1240_v40  ;;  %v1269_v60 = vshll.u32 %v1266_v7, 16 }
  0xf6   :  { %vm1251_vm14 = vc.u32 %v1243_v49, %v1247_v53  ;;  %v1253_v55 = vadd.s32 %v1247_v53, %v1243_v49  ;;  %v1270_v39 = vshrl.u32 %v1266_v7, 16  ;;  %v1271_v58 = vshll.u32 %v1267_v18, 16 }
  0xf7   :  { %v6824_v24 = vmov 0   ;;  %vm1273_vm15 = vc.u32 %v1265_v43, %v1269_v60  ;;  %v1275_v47 = vadd.s32 %v1269_v60, %v1265_v43  ;;  %v1362_v5 = vshll.u32 %v6821_v0, %v4105_v30 }
  0xf8   :  { %v1252_v22 = vsel %vm1251_vm14, 1, %v6824_v24  ;;  %vm1255_vm1 = vc.u32 %v1253_v55, %v1249_v51  ;;  %v1274_v54 = vsel %vm1273_vm15, 1, %v6824_v24  ;;  %v6825_v23 = vmov 2475754826  }
  0xf9   :  { %v1254_v25 = vadd.s32 %v1252_v22, %v1246_v50  ;;  %v1363_v8 = vshrl.u32 %v6825_v23, %v4130_v1  ;;  %v1256_v40 = vsel %vm1255_vm1, 1, %v6824_v24  ;;  %v1276_v34 = vadd.s32 %v1274_v54, %v1268_v41 }
  0xfa   :  { %vm1277_vm2 = vc.u32 %v1275_v47, %v1271_v58  ;;  %v1353_v53 = vor.u32 8388608, %v1352_v26  ;;  %v1365_v43 = vshll.u32 %v6825_v23, %v4105_v30  ;;  %v6826_v51 = vmov 2131351028  }
  0xfb   :  { %v1258_v37 = vadd.s32 %v1256_v40, %v1254_v25  ;;  %v1278_v20 = vsel %vm1277_vm2, 1, %v6824_v24  ;;  %v4196_v7 = vor.u32 %v1363_v8, %v1362_v5  ;;  %v1366_v49 = vshrl.u32 %v6826_v51, %v4130_v1 }
  0xfc   :  { %v1280_v60 = vadd.s32 %v1278_v20, %v1276_v34  ;;  %v1368_v50 = vshll.u32 %v6826_v51, %v4105_v30  ;;  %v1369_v41 = vshrl.u32 %v6820_v52, %v4130_v1  ;;  %v1250_v55 = vshrl.u32 %v1245_v63, 16 }
  0xfd   :  { %v1259_v26 = vadd.s32 %v1258_v37, %v1248_v36  ;;  %v1272_v22 = vshrl.u32 %v1267_v18, 16  ;;  %v4206_v25 = vadd.s32 %v1275_v47, %v1271_v58  ;;  %v1367_v54 = vor.u32 %v1366_v49, %v1365_v43 }
  0xfe   :  { %v1281_v5 = vadd.s32 %v1280_v60, %v1270_v39  ;;  %v1370_v8 = vor.u32 %v1369_v41, %v1368_v50  ;;  %vm1377_vm3 = vcmp.lt.s32.totalorder %v4123_v59, 1  ;;  %vm1378_vm4 = vcmp.lt.s32.totalorder %v4123_v59, 2 }
  0xff   :  { %v4209_v40 = vadd.s32 %v1259_v26, %v1250_v55  ;;  %vm1379_vm5 = vcmp.lt.s32.totalorder %v4123_v59, 3  ;;  %v4213_v30 = vshll.u32 %v1353_v53, 8  ;;  %v1385_v36 = vsel %vm1377_vm3, %v4196_v7, %v1367_v54 }
 0x100   :  { %v1282_v34 = vadd.s32 %v1281_v5, %v1272_v22  ;;  %v1387_v58 = vsel %vm1379_vm5, %v1370_v8, %v1386_v42  ;;  %v1391_v39 = vsel %vm1379_vm5, %v4155_v48, %v1390_v19  ;;  %v907_v63 = vshrl.u32 %v6822_v44, %v4108_v31 }
 0x101   :  { %v6827_v18 = vmov 1326507024   ;;  %vm1285_vm6 = vc.u32 %v4209_v40, %v4206_v25  ;;  %v1388_v53 = vsel %vm1378_vm4, %v1385_v36, %v1387_v58  ;;  %v1283_v42 = vmul.u32 %v4125_v62, %v4184_v3 }
 0x102   :  { %v4227_v47 = vshrl.u32 %v6827_v18, %v4108_v31  ;;  %v1286_v37 = vadd.s32 1, %v1282_v34  ;;  %v1389_v48 = vsel %vm1377_vm3, %v1367_v54, %v1370_v8  ;;  %v1394_v19 = vand.u32 65535, %v4213_v30 }
 0x103   :  { %v1392_v20 = vsel %vm1378_vm4, %v1389_v48, %v1391_v39  ;;  %v1395_v43 = vshrl.u32 %v4213_v30, 16  ;;  %v1418_v60 = vand.u32 65535, %v1388_v53  ;;  %v1419_v49 = vshrl.u32 %v1388_v53, 16 }
 0x104   :  { %v4243_v50 = vshrl.u32 %v6822_v44, %v4121_v46  ;;  %v1287_v41 = vsel %vm1285_vm6, %v1286_v37, %v1282_v34  ;;  %v1396_v55 = vand.u32 65535, %v1392_v20  ;;  %v1397_v62 = vshrl.u32 %v1392_v20, 16 }
 0x105   :  { %v4247_v3 = vshrl.u32 %v6827_v18, %v4121_v46  ;;  %v1288_v26 = vadd.s32 %v1287_v41, %v1283_v42  ;;  %v1421_v22 = vmul.u32 %v1419_v49, %v1394_v19  ;;  %v1422_v5 = vmul.u32 %v1418_v60, %v1395_v43 }
 0x106   :  { %v4250_v36 = vor.u32 %v907_v63, %v4112_v32  ;;  %v1361_v58 = vshrl.u32 %v6821_v0, %v4130_v1  ;;  %v1399_v39 = vmul.u32 %v1397_v62, %v1394_v19  ;;  %v1400_v53 = vmul.u32 %v1396_v55, %v1395_v43 }
 0x107   :  { %v1289_v48 = vadd.s32 536870912, %v1288_v26  ;;  %v1382_v34 = vsel %vm1380_vm13, %v1370_v8, 2102212464  ;;  %v1420_v37 = vmul.u32 %v1418_v60, %v1394_v19  ;;  %v1424_v20 = vshll.u32 %v1421_v22, 16 }
 0x108   :  { %v1398_v44 = vmul.u32 %v1396_v55, %v1394_v19  ;;  %v1401_v18 = vmul.u32 %v1397_v62, %v1395_v43  ;;  %v1402_v38 = vshll.u32 %v1399_v39, 16  ;;  %v1423_v42 = vmul.u32 %v1419_v49, %v1395_v43 }
 0x109   :  { %v4256_v41 = vshrl.u32 %v1289_v48, 30  ;;  %v1404_v13 = vshll.u32 %v1400_v53, 16  ;;  %v1426_v32 = vshll.u32 %v1422_v5, 16  ;;  %vm1428_vm7 = vc.u32 %v1420_v37, %v1424_v20 }
 0x10a   :  { %vm1406_vm9 = vc.u32 %v1398_v44, %v1402_v38  ;;  %v1408_v1 = vadd.s32 %v1402_v38, %v1398_v44  ;;  %v1429_v63 = vsel %vm1428_vm7, 1, %v6824_v24  ;;  %v1430_v12 = vadd.s32 %v1424_v20, %v1420_v37 }
 0x10b   :  { %v1291_v8 = vshll.u32 %v4256_v41, 30  ;;  %v1381_v19 = vsel %vm1377_vm3, %v1361_v58, %v4196_v7  ;;  %v1407_v43 = vsel %vm1406_vm9, 1, %v6824_v24  ;;  %v1431_v60 = vadd.s32 %v1429_v63, %v1423_v42 }
 0x10c   :  { %v1383_v49 = vsel %vm1379_vm5, %v1367_v54, %v1382_v34  ;;  %v1409_v55 = vadd.s32 %v1407_v43, %v1401_v18  ;;  %vm1410_vm10 = vc.u32 %v1408_v1, %v1404_v13  ;;  %vm1432_vm11 = vc.u32 %v1430_v12, %v1426_v32 }
 0x10d   :  { %v911_v38 = vor.u32 %v4227_v47, %v4116_v33  ;;  %v1292_v44 = vsub.s32 %v1288_v26, %v1291_v8  ;;  %v1411_v62 = vsel %vm1410_vm10, 1, %v6824_v24  ;;  %v1433_v48 = vsel %vm1432_vm11, 1, %v6824_v24 }
 0x10e   :  { %v1403_v37 = vshrl.u32 %v1399_v39, 16  ;;  %v1413_v20 = vadd.s32 %v1411_v62, %v1409_v55  ;;  %v1425_v7 = vshrl.u32 %v1421_v22, 16  ;;  %v1435_v58 = vadd.s32 %v1433_v48, %v1431_v60 }
 0x10f   :  { %vm1192_vm12 = vcmp.lt.s32.totalorder %v4004_v27, 0  ;;  %vm1293_vm13 = vcmp.lt.s32.totalorder %v1292_v44, 0  ;;  %v1294_v42 = vsub.s32 0, %v1292_v44  ;;  %v1384_v13 = vsel %vm1378_vm4, %v1381_v19, %v1383_v49 }
 0x110   :  { %v880_v54 = vand.u32 2147483647, %v3994_v9  ;;  %v1405_v18 = vshrl.u32 %v1400_v53, 16  ;;  %v1414_v33 = vadd.s32 %v1413_v20, %v1403_v37  ;;  %v1427_v47 = vshrl.u32 %v1422_v5, 16 }
 0x111   :  { %v1436_v26 = vadd.s32 %v1435_v58, %v1425_v7  ;;  %v1066_v34 = vor.u32 %v4247_v3, %v4174_v4  ;;  %v1295_v39 = vsel %vm1293_vm13, %v1294_v42, %v1292_v44  ;;  %v4277_v1 = vadd.s32 %v1430_v12, %v1426_v32 }
 0x112   :  { %v897_v22 = vshll.u32 %v6821_v0, %v4093_v14  ;;  %v6828_v63 = vand.u32 2147483647, %v4004_v27  ;;  %v1296_v8 = vclz %v1295_v39  ;;  %v4287_v53 = vadd.s32 %v1414_v33, %v1405_v18 }
 0x113   :  { %v1437_v5 = vadd.s32 %v1436_v26, %v1427_v47  ;;  %v898_v19 = vshrl.u32 %v6825_v23, %v4108_v31  ;;  %v921_v12 = vsel %vm915_vm8, %v4250_v36, 920167782  ;;  %v925_v4 = vsel %vm915_vm8, %v911_v38, 1326507024 }
 0x114   :  { %vm4283_vm14 = vcmp.le.f32.partialorder %v6828_v63, 0.7853982  ;;  %v1314_v3 = vsub.s32 4, %v4256_v41  ;;  %v1438_v32 = vmul.u32 %v4213_v30, %v1384_v13  ;;  %v3657_v43 = vadd.s32 4294967294, %v1296_v8 }
 0x115   :  { %vm1440_vm15 = vc.u32 %v4287_v53, %v4277_v1  ;;  %v1441_v60 = vadd.s32 1, %v1437_v5  ;;  %v887_v49 = vand.u32 8388607, %v880_v54  ;;  %v900_v55 = vshll.u32 %v6825_v23, %v4093_v14 }
 0x116   :  { %v901_v62 = vshrl.u32 %v6826_v51, %v4108_v31  ;;  %v903_v38 = vshll.u32 %v6826_v51, %v4093_v14  ;;  %v904_v30 = vshrl.u32 %v6820_v52, %v4108_v31  ;;  %v1284_v48 = vadd.s32 %v4206_v25, %v4209_v40 }
 0x117   :  { %vm3658_vm1 = vcmp.lt.s32.totalorder %v3657_v43, 0  ;;  %v1442_v37 = vsel %vm1440_vm15, %v1441_v60, %v1437_v5  ;;  %v899_v20 = vor.u32 %v898_v19, %v897_v22  ;;  %v1315_v47 = vsel %vm1192_vm12, %v1314_v3, %v4256_v41 }
 0x118   :  { %v1299_v7 = vsel %vm3658_vm1, 0, %v3657_v43  ;;  %v1443_v58 = vadd.s32 %v1442_v37, %v1438_v32  ;;  %v902_v42 = vor.u32 %v901_v62, %v900_v55  ;;  %v905_v13 = vor.u32 %v904_v30, %v903_v38 }
 0x119   :  { %v1300_v18 = vsub.s32 32, %v1299_v7  ;;  %v1304_v33 = vsub.s32 4294967266, %v1299_v7  ;;  %v888_v14 = vor.u32 8388608, %v887_v49  ;;  %v1301_v26 = vshll.u32 %v1292_v44, %v1299_v7 }
 0x11a   :  { %v1444_v39 = vadd.s32 536870912, %v1443_v58  ;;  %vm912_vm2 = vcmp.lt.s32.totalorder %v4101_v21, 1  ;;  %vm914_vm3 = vcmp.lt.s32.totalorder %v4101_v21, 3  ;;  %v1317_v8 = vsel %vm4283_vm14, 0, %v1315_v47 }
 0x11b   :  { %v1302_v25 = vshrl.u32 %v1284_v48, %v1300_v18  ;;  %v1305_v40 = vadd.s32 127, %v1304_v33  ;;  %v920_v22 = vsel %vm912_vm2, %v899_v20, %v902_v42  ;;  %v922_v63 = vsel %vm914_vm3, %v905_v13, %v921_v12 }
 0x11c   :  { %v4323_v5 = vshrl.u32 %v1444_v39, 30  ;;  %vm913_vm4 = vcmp.lt.s32.totalorder %v4101_v21, 2  ;;  %v924_v41 = vsel %vm912_vm2, %v902_v42, %v905_v13  ;;  %v926_v3 = vsel %vm914_vm3, %v4250_v36, %v925_v4 }
 0x11d   :  { %v1303_v44 = vor.u32 %v1302_v25, %v1301_v26  ;;  %v1306_v19 = vshll.u32 %v1305_v40, 23  ;;  %v4331_v32 = vshll.u32 %v888_v14, 8  ;;  %vm1070_vm5 = vcmp.lt.s32.totalorder %v4118_v35, 4 }
 0x11e   :  { %v1446_v12 = vshll.u32 %v4323_v5, 30  ;;  %v923_v43 = vsel %vm913_vm4, %v920_v22, %v922_v63  ;;  %v927_v60 = vsel %vm913_vm4, %v924_v41, %v926_v3  ;;  %v4341_v49 = vor.u32 %v4243_v50, %v4170_v16 }
 0x11f   :  { %v4345_v55 = vsel %vm1070_vm5, %v1066_v34, 1326507024  ;;  %v1307_v36 = vor.u32 4788187, %v1306_v19  ;;  %v1334_v4 = vadd.s32 3, %v1317_v8  ;;  %v896_v38 = vshrl.u32 %v6821_v0, %v4108_v31 }
 0x120   :  { %v4347_v62 = vsub.s32 %v1443_v58, %v1446_v12  ;;  %v931_v30 = vand.u32 65535, %v927_v60  ;;  %v932_v48 = vshrl.u32 %v927_v60, 16  ;;  %v1310_v7 = vcvt.s32.f32 %v1303_v44 }
 0x121   :  { %v1308_v37 = vand.u32 2147483647, %v1307_v36  ;;  %v929_v18 = vand.u32 65535, %v4331_v32  ;;  %v954_v33 = vshrl.u32 %v923_v43, 16  ;;  %v930_v50 = vshrl.u32 %v4331_v32, 16 }
 0x122   :  { %vm1448_vm6 = vcmp.lt.s32.totalorder %v4347_v62, 0  ;;  %v1449_v16 = vsub.s32 0, %v4347_v62  ;;  %v953_v34 = vand.u32 65535, %v923_v43  ;;  %v4355_v58 = vand.u32 3, %v1334_v4 }
 0x123   :  { %v1311_v47 = vmul.f32 %v1310_v7, %v1308_v37  ;;  %v917_v31 = vsel %vm915_vm8, %v905_v13, 2102212464  ;;  %v934_v14 = vmul.u32 %v932_v48, %v929_v18  ;;  %v1439_v26 = vadd.s32 %v4277_v1, %v4287_v53 }
 0x124   :  { %v1450_v39 = vsel %vm1448_vm6, %v1449_v16, %v4347_v62  ;;  %v933_v25 = vmul.u32 %v931_v30, %v929_v18  ;;  %v4362_v40 = vmul.u32 %v931_v30, %v930_v50  ;;  %v4364_v41 = vmul.u32 %v954_v33, %v929_v18 }
 0x125   :  { %v1312_v22 = vxor.u32 2147483648, %v1311_v47  ;;  %v1451_v63 = vclz %v1450_v39  ;;  %v937_v8 = vshll.u32 %v934_v14, 16  ;;  %vm1347_vm7 = vcmp.lt.s32.totalorder %v4006_v28, 0 }
 0x126   :  { %v1469_v44 = vsub.s32 4, %v4323_v5  ;;  %v916_v13 = vsel %vm912_vm2, %v896_v38, %v899_v20  ;;  %v918_v1 = vsel %vm914_vm3, %v902_v42, %v917_v31  ;;  %v955_v53 = vmul.u32 %v953_v34, %v929_v18 }
 0x127   :  { %v1313_v19 = vsel %vm1192_vm12, %v1312_v22, %v1311_v47  ;;  %v3660_v3 = vadd.s32 4294967294, %v1451_v63  ;;  %v936_v12 = vmul.u32 %v932_v48, %v930_v50  ;;  %vm941_vm8 = vc.u32 %v933_v25, %v937_v8 }
 0x128   :  { %v4377_v43 = vsel %vm4283_vm14, %v4004_v27, %v1313_v19  ;;  %v939_v60 = vshll.u32 %v4362_v40, 16  ;;  %v942_v36 = vsel %vm941_vm8, 1, %v6824_v24  ;;  %v943_v20 = vadd.s32 %v937_v8, %v933_v25 }
 0x129   :  { %v1318_v42 = vmul.f32 %v4377_v43, %v4377_v43  ;;  %vm3661_vm9 = vcmp.lt.s32.totalorder %v3660_v3, 0  ;;  %v944_v4 = vadd.s32 %v942_v36, %v936_v12  ;;  %v959_v38 = vshll.u32 %v4364_v41, 16 }
 0x12a   :  { %v1454_v30 = vsel %vm3661_vm9, 0, %v3660_v3  ;;  %v938_v48 = vshrl.u32 %v934_v14, 16  ;;  %vm945_vm10 = vc.u32 %v943_v20, %v939_v60  ;;  %v957_v37 = vmul.u32 %v953_v34, %v930_v50 }
 0x12b   :  { %v1319_v7 = vmul.f32 -0.001358992, %v1318_v42  ;;  %v1326_v59 = vmul.f32 -0.00019511016, %v1318_v42  ;;  %v1455_v18 = vsub.s32 32, %v1454_v30  ;;  %v958_v16 = vmul.u32 %v954_v33, %v930_v50 }
 0x12c   :  { %v1456_v47 = vshll.u32 %v4347_v62, %v1454_v30  ;;  %v1459_v31 = vsub.s32 4294967266, %v1454_v30  ;;  %v946_v39 = vsel %vm945_vm10, 1, %v6824_v24  ;;  %vm963_vm11 = vc.u32 %v955_v53, %v959_v38 }
 0x12d   :  { %v1320_v25 = vadd.f32 0.041655596, %v1319_v7  ;;  %v1327_v22 = vadd.f32 0.008332121, %v1326_v59  ;;  %v1457_v63 = vshrl.u32 %v1439_v26, %v1455_v18  ;;  %v948_v8 = vadd.s32 %v946_v39, %v944_v4 }
 0x12e   :  { %v1460_v19 = vadd.s32 127, %v1459_v31  ;;  %v961_v12 = vshll.u32 %v957_v37, 16  ;;  %v964_v14 = vsel %vm963_vm11, 1, %v6824_v24  ;;  %v965_v3 = vadd.s32 %v959_v38, %v955_v53 }
 0x12f   :  { %v1321_v34 = vmul.f32 %v1320_v25, %v1318_v42  ;;  %v1328_v60 = vmul.f32 %v1327_v22, %v1318_v42  ;;  %v1458_v36 = vor.u32 %v1457_v63, %v1456_v47  ;;  %v1470_v62 = vsel %vm1347_vm7, %v1469_v44, %v4323_v5 }
 0x130   :  { %v1461_v33 = vshll.u32 %v1460_v19, 23  ;;  %v949_v50 = vadd.s32 %v948_v8, %v938_v48  ;;  %v966_v20 = vadd.s32 %v964_v14, %v958_v16  ;;  %vm967_vm12 = vc.u32 %v965_v3, %v961_v12 }
 0x131   :  { %v1322_v30 = vadd.f32 -0.4999988, %v1321_v34  ;;  %v1329_v7 = vadd.f32 -0.16666654, %v1328_v60  ;;  %v6831_v26 = vand.u32 2147483647, %v4006_v28  ;;  %v919_v53 = vsel %vm913_vm4, %v916_v13, %v918_v1 }
 0x132   :  { %v1462_v38 = vor.u32 4788187, %v1461_v33  ;;  %v940_v5 = vshrl.u32 %v4362_v40, 16  ;;  %v968_v44 = vsel %vm967_vm12, 1, %v6824_v24  ;;  %vm1336_vm14 = vcmp.lt.s32.totalorder %v4355_v58, 2 }
 0x133   :  { %vm4392_vm13 = vcmp.le.f32.partialorder %v6831_v26, 0.7853982  ;;  %v1323_v48 = vmul.f32 %v1322_v30, %v1318_v42  ;;  %v1330_v18 = vmul.f32 %v1329_v7, %v1318_v42  ;;  %v960_v16 = vshrl.u32 %v4364_v41, 16 }
 0x134   :  { %v1472_v59 = vsel %vm4392_vm13, 0, %v1470_v62  ;;  %v970_v47 = vadd.s32 %v968_v44, %v966_v20  ;;  %vm1333_vm15 = vweird.f32 %v4004_v27  ;;  %v1463_v31 = vand.u32 2147483647, %v1462_v38 }
 0x135   :  { %v1465_v21 = vcvt.s32.f32 %v1458_v36  ;;  %v4405_v13 = vadd.s32 %v949_v50, %v940_v5  ;;  %v962_v1 = vshrl.u32 %v957_v37, 16  ;;  %v1324_v39 = vadd.f32 1.0, %v1323_v48 }
 0x136   :  { %v1331_v25 = vadd.f32 1.0, %v1330_v18  ;;  %v971_v22 = vadd.s32 %v970_v47, %v960_v16  ;;  %v1035_v40 = vand.u32 2147483647, %v3996_v10  ;;  %vm605_vm1 = vcmp.lt.s32.totalorder %v4056_v56, 4 }
 0x137   :  { %vm1337_vm2 = vcmp.eq.s32.totalorder %v4355_v58, 0  ;;  %vm1340_vm3 = vcmp.eq.s32.totalorder %v4355_v58, 2  ;;  %v1466_v41 = vmul.f32 %v1465_v21, %v1463_v31  ;;  %v4411_v42 = vadd.s32 %v965_v3, %v961_v12 }
 0x138   :  { %v1332_v63 = vmul.f32 %v1331_v25, %v4377_v43  ;;  %v1341_v8 = vxor.u32 2147483648, %v1324_v39  ;;  %v1489_v19 = vadd.s32 3, %v1472_v59  ;;  %v972_v14 = vadd.s32 %v971_v22, %v962_v1 }
 0x139   :  { %v1467_v37 = vxor.u32 2147483648, %v1466_v41  ;;  %v973_v34 = vmul.u32 %v4331_v32, %v919_v53  ;;  %vm975_vm4 = vc.u32 %v4405_v13, %v4411_v42  ;;  %v1056_v60 = vshrl.u32 %v6826_v51, %v4121_v46 }
 0x13a   :  { %v1338_v36 = vxor.u32 2147483648, %v1332_v63  ;;  %v976_v62 = vadd.s32 1, %v972_v14  ;;  %v1042_v12 = vand.u32 8388607, %v1035_v40  ;;  %v1055_v43 = vshll.u32 %v6825_v23, %v4095_v15 }
 0x13b   :  { %v1342_v3 = vsel %vm1340_vm3, %v1341_v8, %v1332_v63  ;;  %v1468_v33 = vsel %vm1347_vm7, %v1467_v37, %v1466_v41  ;;  %v1058_v32 = vshll.u32 %v6826_v51, %v4095_v15  ;;  %v1059_v50 = vshrl.u32 %v6820_v52, %v4121_v46 }
 0x13c   :  { %v1339_v20 = vsel %vm1337_vm2, %v1324_v39, %v1338_v36  ;;  %v4434_v30 = vsel %vm4392_vm13, %v4006_v28, %v1468_v33  ;;  %v977_v7 = vsel %vm975_vm4, %v976_v62, %v972_v14  ;;  %v4436_v26 = vor.u32 %v1056_v60, %v1055_v43 }
 0x13d   :  { %v1343_v53 = vsel %vm1336_vm14, %v1339_v20, %v1342_v3  ;;  %v1473_v38 = vmul.f32 %v4434_v30, %v4434_v30  ;;  %v978_v59 = vadd.s32 %v977_v7, %v973_v34  ;;  %v1060_v5 = vor.u32 %v1059_v50, %v1058_v32 }
 0x13e   :  { %v1344_v44 = vsel %vm1333_vm15, nan, %v1343_v53  ;;  %v1043_v48 = vor.u32 8388608, %v1042_v12  ;;  %v1053_v4 = vshrl.u32 %v6825_v23, %v4121_v46  ;;  %vm1067_vm6 = vcmp.lt.s32.totalorder %v4118_v35, 1 }
 0x13f   :  { %1553 = vmatpush.msra.mxu2 %v1344_v44  ;;  %v1474_v18 = vmul.f32 -0.001358992, %v1473_v38  ;;  %v1481_v16 = vmul.f32 -0.00019511016, %v1473_v38  ;;  %v979_v47 = vadd.s32 536870912, %v978_v59  ;;  %vm1069_vm7 = vcmp.lt.s32.totalorder %v4118_v35, 3 }
 0x140   :  { %v4451_v58 = vsel %vm605_vm1, %v4097_v17, 920167782  ;;  %v1052_v27 = vshll.u32 %v6821_v0, %v4095_v15  ;;  %v1079_v31 = vsel %vm1067_vm6, %v4436_v26, %v1060_v5  ;;  %v1081_v21 = vsel %vm1069_vm7, %v4341_v49, %v4345_v55 }
 0x141   :  { %v1475_v1 = vadd.f32 0.041655596, %v1474_v18  ;;  %v1482_v39 = vadd.f32 0.008332121, %v1481_v16  ;;  %v4462_v25 = vshrl.u32 %v979_v47, 30  ;;  %vm1068_vm8 = vcmp.lt.s32.totalorder %v4118_v35, 2 }
 0x142   :  { %v1490_v22 = vand.u32 3, %v1489_v19  ;;  %v1054_v41 = vor.u32 %v1053_v4, %v1052_v27  ;;  %v1082_v15 = vsel %vm1068_vm8, %v1079_v31, %v1081_v21  ;;  %v4467_v63 = vshll.u32 %v1043_v48, 8 }
 0x143   :  { %v1076_v8 = vsel %vm1070_vm5, %v4341_v49, 920167782  ;;  %v1476_v14 = vmul.f32 %v1475_v1, %v1473_v38  ;;  %v1483_v37 = vmul.f32 %v1482_v39, %v1473_v38  ;;  %v981_v55 = vshll.u32 %v4462_v25, 30 }
 0x144   :  { %v4474_v34 = vand.u32 65535, %v4467_v63  ;;  %v4477_v60 = vshrl.u32 %v4467_v63, 16  ;;  %v1086_v19 = vand.u32 65535, %v1082_v15  ;;  %v1087_v36 = vshrl.u32 %v1082_v15, 16 }
 0x145   :  { %v6834_v62 = vor.u32 %v4071_v2, %v4065_v61  ;;  %v1477_v49 = vadd.f32 -0.4999988, %v1476_v14  ;;  %v1484_v43 = vadd.f32 -0.16666654, %v1483_v37  ;;  %v4486_v3 = vsub.s32 %v978_v59, %v981_v55  ;;  %v6837_v37 = vld [vmem:[#allocation24_spill] sm:$0xff] }
 0x146   :  { %vm1492_vm9 = vcmp.eq.s32.totalorder %v1490_v22, 0  ;;  %v1075_v33 = vsel %vm1067_vm6, %v1054_v41, %v4436_v26  ;;  %v1077_v32 = vsel %vm1069_vm7, %v1060_v5, %v1076_v8  ;;  %v1089_v50 = vmul.u32 %v1087_v36, %v4474_v34 }
 0x147   :  { %v4484_v12 = vsel %vm605_vm1, %v6834_v62, 1326507024  ;;  %v4495_v61 = vmul.u32 %v1086_v19, %v4477_v60  ;;  %v1478_v2 = vmul.f32 %v1477_v49, %v1473_v38  ;;  %v1485_v20 = vmul.f32 %v1484_v43, %v1473_v38 }
 0x148   :  { %vm1491_vm10 = vcmp.lt.s32.totalorder %v1490_v22, 2  ;;  %vm983_vm11 = vcmp.lt.s32.totalorder %v4486_v3, 0  ;;  %v984_v7 = vsub.s32 0, %v4486_v3  ;;  %vm1488_vm12 = vweird.f32 %v4006_v28 }
 0x149   :  { %v1051_v53 = vshrl.u32 %v6821_v0, %v4121_v46  ;;  %v1072_v59 = vsel %vm1070_vm5, %v1060_v5, 2102212464  ;;  %v1088_v44 = vmul.u32 %v1086_v19, %v4474_v34  ;;  %v1092_v48 = vshll.u32 %v1089_v50, 16 }
 0x14a   :  { %v1479_v4 = vadd.f32 1.0, %v1478_v2  ;;  %v1486_v18 = vadd.f32 1.0, %v1485_v20  ;;  %v985_v38 = vsel %vm983_vm11, %v984_v7, %v4486_v3  ;;  %v1078_v16 = vsel %vm1068_vm8, %v1075_v33, %v1077_v32 }
 0x14b   :  { %v986_v47 = vclz %v985_v38  ;;  %v1091_v27 = vmul.u32 %v1087_v36, %v4477_v60  ;;  %v1094_v31 = vshll.u32 %v4495_v61, 16  ;;  %vm1096_vm13 = vc.u32 %v1088_v44, %v1092_v48 }
 0x14c   :  { %v1487_v46 = vmul.f32 %v1486_v18, %v4434_v30  ;;  %v1496_v21 = vxor.u32 2147483648, %v1479_v4  ;;  %v1097_v5 = vsel %vm1096_vm13, 1, %v6824_v24  ;;  %v1098_v1 = vadd.s32 %v1092_v48, %v1088_v44 }
 0x14d   :  { %vm1495_vm5 = vcmp.eq.s32.totalorder %v1490_v22, 2  ;;  %v974_v39 = vadd.s32 %v4411_v42, %v4405_v13  ;;  %v3651_v15 = vadd.s32 4294967294, %v986_v47  ;;  %v1071_v8 = vsel %vm1067_vm6, %v1051_v53, %v1054_v41 }
 0x14e   :  { %v1493_v14 = vxor.u32 2147483648, %v1487_v46  ;;  %vm4518_vm14 = vcmp.le.f32.partialorder %v880_v54, 0.7853982  ;;  %v1099_v30 = vadd.s32 %v1097_v5, %v1091_v27  ;;  %vm1100_vm15 = vc.u32 %v1098_v1, %v1094_v31 }
 0x14f   :  { %v1108_v55 = vand.u32 65535, %v1078_v16  ;;  %vm3652_vm2 = vcmp.lt.s32.totalorder %v3651_v15, 0  ;;  %v1073_v19 = vsel %vm1069_vm7, %v4436_v26, %v1072_v59  ;;  %v1101_v13 = vsel %vm1100_vm15, 1, %v6824_v24 }
 0x150   :  { %v1109_v42 = vshrl.u32 %v1078_v16, 16  ;;  %v1494_v41 = vsel %vm1492_vm9, %v1479_v4, %v1493_v14  ;;  %v1497_v36 = vsel %vm1495_vm5, %v1496_v21, %v1487_v46  ;;  %v989_v62 = vsel %vm3652_vm2, 0, %v3651_v15 }
 0x151   :  { %v1004_v54 = vsub.s32 4, %v4462_v25  ;;  %v1498_v49 = vsel %vm1491_vm10, %v1494_v41, %v1497_v36  ;;  %v990_v43 = vsub.s32 32, %v989_v62  ;;  %v994_v33 = vsub.s32 4294967266, %v989_v62 }
 0x152   :  { %v1103_v32 = vadd.s32 %v1101_v13, %v1099_v30  ;;  %v1499_v2 = vsel %vm1488_vm12, nan, %v1498_v49  ;;  %vm882_vm3 = vcmp.lt.s32.totalorder %v3994_v9, 0  ;;  %v1111_v26 = vmul.u32 %v1109_v42, %v4474_v34 }
 0x153   :  { %v1112_v20 = vmul.u32 %v1108_v55, %v4477_v60  ;;  %1582 = vmatpush.msra.mxu3 %v1499_v2  ;;  %v991_v7 = vshll.u32 %v4486_v3, %v989_v62  ;;  %v992_v53 = vshrl.u32 %v974_v39, %v990_v43  ;;  %v995_v59 = vadd.s32 127, %v994_v33 }
 0x154   :  { %v1093_v44 = vshrl.u32 %v1089_v50, 16  ;;  %v1005_v22 = vsel %vm882_vm3, %v1004_v54, %v4462_v25  ;;  %v1074_v28 = vsel %vm1068_vm8, %v1071_v8, %v1073_v19  ;;  %v1110_v48 = vmul.u32 %v1108_v55, %v4474_v34 }
 0x155   :  { %v1114_v4 = vshll.u32 %v1111_v26, 16  ;;  %v993_v18 = vor.u32 %v992_v53, %v991_v7  ;;  %v996_v38 = vshll.u32 %v995_v59, 23  ;;  %v570_v47 = vand.u32 2147483647, %v3988_v57 }
 0x156   :  { %v1104_v16 = vadd.s32 %v1103_v32, %v1093_v44  ;;  %v1113_v3 = vmul.u32 %v1109_v42, %v4477_v60  ;;  %v1116_v27 = vshll.u32 %v1112_v20, 16  ;;  %v1007_v25 = vsel %vm4518_vm14, 0, %v1005_v22 }
 0x157   :  { %vm1118_vm4 = vc.u32 %v1110_v48, %v1114_v4  ;;  %v1120_v50 = vadd.s32 %v1114_v4, %v1110_v48  ;;  %v997_v31 = vor.u32 4788187, %v996_v38  ;;  %v1095_v35 = vshrl.u32 %v4495_v61, 16 }
 0x158   :  { %v1119_v46 = vsel %vm1118_vm4, 1, %v6824_v24  ;;  %v1000_v34 = vcvt.s32.f32 %v993_v18  ;;  %v577_v5 = vand.u32 8388607, %v570_v47  ;;  %v587_v39 = vshll.u32 %v6821_v0, %v4008_v29  ;;  %v6838_v18 = vld [vmem:[#allocation25_spill] sm:$0xff] }
 0x159   :  { %v1121_v21 = vadd.s32 %v1119_v46, %v1113_v3  ;;  %vm1122_vm6 = vc.u32 %v1120_v50, %v1116_v27  ;;  %v998_v1 = vand.u32 2147483647, %v997_v31  ;;  %v588_v15 = vshrl.u32 %v6825_v23, %v4037_v45 }
 0x15a   :  { %v1123_v60 = vsel %vm1122_vm6, 1, %v6824_v24  ;;  %v4554_v8 = vadd.s32 %v1104_v16, %v1095_v35  ;;  %v1115_v61 = vshrl.u32 %v1111_v26, 16  ;;  %v1117_v14 = vshrl.u32 %v1112_v20, 16 }
 0x15b   :  { %v1125_v30 = vadd.s32 %v1123_v60, %v1121_v21  ;;  %v1001_v55 = vmul.f32 %v1000_v34, %v998_v1  ;;  %v4556_v19 = vor.u32 %v588_v15, %v587_v39  ;;  %v590_v13 = vshll.u32 %v6825_v23, %v4008_v29  ;;  %v6839_v21 = vld [vmem:[#allocation13_spill] sm:$0xff] }
 0x15c   :  { %v591_v42 = vshrl.u32 %v6826_v51, %v4037_v45  ;;  %v578_v36 = vor.u32 8388608, %v577_v5  ;;  %v593_v62 = vshll.u32 %v6826_v51, %v4008_v29  ;;  %v594_v54 = vshrl.u32 %v6820_v52, %v4037_v45 }
 0x15d   :  { %v1126_v41 = vadd.s32 %v1125_v30, %v1115_v61  ;;  %v1002_v49 = vxor.u32 2147483648, %v1001_v55  ;;  %v1024_v43 = vadd.s32 3, %v1007_v25  ;;  %v4566_v33 = vadd.s32 %v1120_v50, %v1116_v27  ;;  %v6841_v61 = vld [vmem:[#allocation23_spill] sm:$0xff] }
 0x15e   :  { %v4568_v32 = vor.u32 %v591_v42, %v590_v13  ;;  %v595_v26 = vor.u32 %v594_v54, %v593_v62  ;;  %vm602_vm7 = vcmp.lt.s32.totalorder %v4056_v56, 1  ;;  %vm604_vm8 = vcmp.lt.s32.totalorder %v4056_v56, 3 }
 0x15f   :  { %v1127_v2 = vadd.s32 %v1126_v41, %v1117_v14  ;;  %v1003_v20 = vsel %vm882_vm3, %v1002_v49, %v1001_v55  ;;  %vm1130_vm9 = vc.u32 %v4554_v8, %v4566_v33  ;;  %v616_v7 = vsel %vm604_vm8, %v4097_v17, %v4484_v12 }
 0x160   :  { %v610_v29 = vsel %vm602_vm7, %v4556_v19, %v4568_v32  ;;  %v4587_v53 = vsel %vm4518_vm14, %v3994_v9, %v1003_v20  ;;  %v612_v44 = vsel %vm604_vm8, %v595_v26, %v4451_v58  ;;  %v4592_v22 = vshll.u32 %v578_v36, 8 }
 0x161   :  { %v1131_v59 = vadd.s32 1, %v1127_v2  ;;  %v1008_v48 = vmul.f32 %v4587_v53, %v4587_v53  ;;  %v1128_v4 = vmul.u32 %v4467_v63, %v1074_v28  ;;  %vm603_vm10 = vcmp.lt.s32.totalorder %v4056_v56, 2 }
 0x162   :  { %v614_v17 = vsel %vm602_vm7, %v4568_v32, %v595_v26  ;;  %v4603_v12 = vor.u32 %v4083_v11, %v4079_v6  ;;  %v756_v58 = vor.u32 %v6838_v18, %v6837_v37  ;;  %v4611_v28 = vsel %vm603_vm10, %v610_v29, %v612_v44 }
 0x163   :  { %v1132_v38 = vsel %vm1130_vm9, %v1131_v59, %v1127_v2  ;;  %v617_v16 = vsel %vm603_vm10, %v614_v17, %v616_v7  ;;  %v1009_v3 = vmul.f32 -0.001358992, %v1008_v48  ;;  %v1016_v27 = vmul.f32 -0.00019511016, %v1008_v48 }
 0x164   :  { %v1133_v63 = vadd.s32 %v1132_v38, %v1128_v4  ;;  %v619_v50 = vand.u32 65535, %v4592_v22  ;;  %v620_v31 = vshrl.u32 %v4592_v22, 16  ;;  %v621_v6 = vand.u32 65535, %v617_v16 }
 0x165   :  { %v622_v11 = vshrl.u32 %v617_v16, 16  ;;  %v1010_v25 = vadd.f32 0.041655596, %v1009_v3  ;;  %v1017_v35 = vadd.f32 0.008332121, %v1016_v27  ;;  %v4615_v46 = vand.u32 3, %v1024_v43 }
 0x166   :  { %v1134_v34 = vadd.s32 536870912, %v1133_v63  ;;  %v6840_v5 = vmov 1326507024   ;;  %v4621_v39 = vmul.u32 %v621_v6, %v620_v31  ;;  %v644_v15 = vshrl.u32 %v4611_v28, 16 }
 0x167   :  { %v4619_v1 = vshrl.u32 %v6840_v5, %v6839_v21  ;;  %v624_v60 = vmul.u32 %v622_v11, %v619_v50  ;;  %vm760_vm11 = vcmp.lt.s32.totalorder %v6841_v61, 4  ;;  %v1011_v14 = vmul.f32 %v1010_v25, %v1008_v48 }
 0x168   :  { %v1018_v30 = vmul.f32 %v1017_v35, %v1008_v48  ;;  %v4625_v55 = vshrl.u32 %v1134_v34, 30  ;;  %v4630_v13 = vsel %vm760_vm11, %v4603_v12, 920167782  ;;  %v4634_v42 = vsel %vm760_vm11, %v756_v58, 1326507024 }
 0x169   :  { %v623_v41 = vmul.u32 %v621_v6, %v619_v50  ;;  %v627_v36 = vshll.u32 %v624_v60, 16  ;;  %v1012_v62 = vadd.f32 -0.4999988, %v1011_v14  ;;  %vm1030_vm12 = vcmp.eq.s32.totalorder %v4615_v46, 2 }
 0x16a   :  { %v1019_v54 = vadd.f32 -0.16666654, %v1018_v30  ;;  %v1136_v49 = vshll.u32 %v4625_v55, 30  ;;  %v643_v43 = vand.u32 65535, %v4611_v28  ;;  %vm1027_vm13 = vcmp.eq.s32.totalorder %v4615_v46, 0 }
 0x16b   :  { %v629_v2 = vshll.u32 %v4621_v39, 16  ;;  %vm631_vm5 = vc.u32 %v623_v41, %v627_v36  ;;  %v633_v20 = vadd.s32 %v627_v36, %v623_v41  ;;  %v4641_v29 = vmul.u32 %v644_v15, %v619_v50 }
 0x16c   :  { %v1013_v7 = vmul.f32 %v1012_v62, %v1008_v48  ;;  %v1020_v59 = vmul.f32 %v1019_v54, %v1008_v48  ;;  %vm1026_vm14 = vcmp.lt.s32.totalorder %v4615_v46, 2  ;;  %v4644_v44 = vsub.s32 %v1133_v63, %v1136_v49 }
 0x16d   :  { %v586_v4 = vshrl.u32 %v6821_v0, %v4037_v45  ;;  %vm1023_vm15 = vweird.f32 %v3994_v9  ;;  %v607_v17 = vsel %vm605_vm1, %v595_v26, 2102212464  ;;  %v626_v37 = vmul.u32 %v622_v11, %v620_v31 }
 0x16e   :  { %v632_v18 = vsel %vm631_vm5, 1, %v6824_v24  ;;  %vm635_vm2 = vc.u32 %v633_v20, %v629_v2  ;;  %v1014_v58 = vadd.f32 1.0, %v1013_v7  ;;  %v1021_v38 = vadd.f32 1.0, %v1020_v59 }
 0x16f   :  { %vm1138_vm3 = vcmp.lt.s32.totalorder %v4644_v44, 0  ;;  %v1139_v48 = vsub.s32 0, %v4644_v44  ;;  %v634_v16 = vadd.s32 %v632_v18, %v626_v37  ;;  %v636_v3 = vsel %vm635_vm2, 1, %v6824_v24 }
 0x170   :  { %v647_v27 = vmul.u32 %v643_v43, %v620_v31  ;;  %v649_v45 = vshll.u32 %v4641_v29, 16  ;;  %v1022_v63 = vmul.f32 %v1021_v38, %v4587_v53  ;;  %v1031_v28 = vxor.u32 2147483648, %v1014_v58 }
 0x171   :  { %v1140_v26 = vsel %vm1138_vm3, %v1139_v48, %v4644_v44  ;;  %v645_v6 = vmul.u32 %v643_v43, %v619_v50  ;;  %vm1037_vm1 = vcmp.lt.s32.totalorder %v3996_v10, 0  ;;  %v606_v25 = vsel %vm602_vm7, %v586_v4, %v4556_v19 }
 0x172   :  { %v1141_v11 = vclz %v1140_v26  ;;  %v608_v35 = vsel %vm604_vm8, %v4568_v32, %v607_v17  ;;  %v638_v34 = vadd.s32 %v636_v3, %v634_v16  ;;  %v1028_v14 = vxor.u32 2147483648, %v1022_v63  ;;  %v6846_v26 = vld [vmem:[#allocation22_spill] sm:$0xff] }
 0x173   :  { %v628_v30 = vshrl.u32 %v624_v60, 16  ;;  %v630_v53 = vshrl.u32 %v4621_v39, 16  ;;  %vm653_vm4 = vc.u32 %v645_v6, %v649_v45  ;;  %v1032_v50 = vsel %vm1030_vm12, %v1031_v28, %v1022_v63  ;;  %v6842_v39 = vld [vmem:[#allocation7_spill] sm:$0xff]  ;;  %v6845_v28 = vld [vmem:[#allocation14_spill] sm:$0xff] }
 0x174   :  { %v3654_v41 = vadd.s32 4294967294, %v1141_v11  ;;  %v648_v36 = vmul.u32 %v644_v15, %v620_v31  ;;  %v651_v62 = vshll.u32 %v647_v27, 16  ;;  %v1029_v54 = vsel %vm1027_vm13, %v1014_v58, %v1028_v14 }
 0x175   :  { %v639_v19 = vadd.s32 %v638_v34, %v628_v30  ;;  %v654_v49 = vsel %vm653_vm4, 1, %v6824_v24  ;;  %v655_v43 = vadd.s32 %v649_v45, %v645_v6  ;;  %v1033_v32 = vsel %vm1026_vm14, %v1029_v54, %v1032_v50 }
 0x176   :  { %vm3655_vm6 = vcmp.lt.s32.totalorder %v3654_v41, 0  ;;  %v656_v60 = vadd.s32 %v654_v49, %v648_v36  ;;  %v725_v2 = vand.u32 2147483647, %v6842_v39  ;;  %v1034_v20 = vsel %vm1023_vm15, nan, %v1033_v32  ;;  %v6848_v32 = vld [vmem:[#allocation18_spill] sm:$0xff] }
 0x177   :  { %v1144_v7 = vsel %vm3655_vm6, 0, %v3654_v41  ;;  %v1159_v31 = vsub.s32 4, %v4625_v55  ;;  %vm657_vm7 = vc.u32 %v655_v43, %v651_v62  ;;  %1554 = vmatpush.msra.mxu2 %v1034_v20  ;;  %vm4679_vm8 = vcmp.le.f32.partialorder %v1035_v40, 0.7853982 }
 0x178   :  { %v1129_v46 = vadd.s32 %v4566_v33, %v4554_v8  ;;  %v1145_v59 = vsub.s32 32, %v1144_v7  ;;  %v1149_v4 = vsub.s32 4294967266, %v1144_v7  ;;  %v658_v17 = vsel %vm657_vm7, 1, %v6824_v24 }
 0x179   :  { %v609_v9 = vsel %vm603_vm10, %v606_v25, %v608_v35  ;;  %v4688_v37 = vadd.s32 %v639_v19, %v630_v53  ;;  %v650_v18 = vshrl.u32 %v4641_v29, 16  ;;  %v660_v58 = vadd.s32 %v658_v17, %v656_v60 }
 0x17a   :  { %v1146_v40 = vshll.u32 %v4644_v44, %v1144_v7  ;;  %v1147_v38 = vshrl.u32 %v1129_v46, %v1145_v59  ;;  %v1150_v48 = vadd.s32 127, %v1149_v4  ;;  %v732_v16 = vand.u32 8388607, %v725_v2 }
 0x17b   :  { %v1160_v8 = vsel %vm1037_vm1, %v1159_v31, %v4625_v55  ;;  %v652_v33 = vshrl.u32 %v647_v27, 16  ;;  %v4697_v3 = vadd.s32 %v655_v43, %v651_v62  ;;  %v661_v56 = vadd.s32 %v660_v58, %v650_v18 }
 0x17c   :  { %v1148_v45 = vor.u32 %v1147_v38, %v1146_v40  ;;  %v1151_v63 = vshll.u32 %v1150_v48, 23  ;;  %v742_v29 = vshll.u32 %v6821_v0, %v6845_v28  ;;  %v743_v44 = vshrl.u32 %v6825_v23, %v6846_v26  ;;  %v6849_v38 = vld [vmem:[#allocation11_spill] sm:$0xff] }
 0x17d   :  { %v662_v6 = vadd.s32 %v661_v56, %v652_v33  ;;  %v733_v11 = vor.u32 8388608, %v732_v16  ;;  %v745_v25 = vshll.u32 %v6825_v23, %v6845_v28  ;;  %v746_v55 = vshrl.u32 %v6826_v51, %v6846_v26 }
 0x17e   :  { %v1152_v27 = vor.u32 4788187, %v1151_v63  ;;  %vm665_vm9 = vc.u32 %v4688_v37, %v4697_v3  ;;  %v748_v35 = vshll.u32 %v6826_v51, %v6845_v28  ;;  %v749_v34 = vshrl.u32 %v6820_v52, %v6846_v26  ;;  %v6850_v28 = vld [vmem:[#allocation16_spill] sm:$0xff] }
 0x17f   :  { %v663_v14 = vmul.u32 %v4592_v22, %v609_v9  ;;  %v666_v30 = vadd.s32 1, %v662_v6  ;;  %v744_v53 = vor.u32 %v743_v44, %v742_v29  ;;  %v747_v50 = vor.u32 %v746_v55, %v745_v25  ;;  %v6847_v22 = vld [vmem:[#allocation15_spill] sm:$0xff] }
 0x180   :  { %v1153_v41 = vand.u32 2147483647, %v1152_v27  ;;  %v1155_v36 = vcvt.s32.f32 %v1148_v45  ;;  %v750_v62 = vor.u32 %v749_v34, %v748_v35  ;;  %vm759_vm10 = vcmp.lt.s32.totalorder %v6841_v61, 3  ;;  %v6851_v29 = vld [vmem:[#allocation19_spill] sm:$0xff] }
 0x181   :  { %v1162_v54 = vsel %vm4679_vm8, 0, %v1160_v8  ;;  %v667_v19 = vsel %vm665_vm9, %v666_v30, %v662_v6  ;;  %v771_v49 = vsel %vm759_vm10, %v4603_v12, %v4634_v42  ;;  %v4721_v43 = vshll.u32 %v733_v11, 8 }
 0x182   :  { %v4725_v60 = vor.u32 %v6848_v32, %v6847_v22  ;;  %v1156_v20 = vmul.f32 %v1155_v36, %v1153_v41  ;;  %v668_v7 = vadd.s32 %v667_v19, %v663_v14  ;;  %vm757_vm12 = vcmp.lt.s32.totalorder %v6841_v61, 1 }
 0x183   :  { %vm758_vm13 = vcmp.lt.s32.totalorder %v6841_v61, 2  ;;  %v765_v31 = vsel %vm757_vm12, %v744_v53, %v747_v50  ;;  %v767_v46 = vsel %vm759_vm10, %v750_v62, %v4630_v13  ;;  %v769_v12 = vsel %vm757_vm12, %v747_v50, %v750_v62 }
 0x184   :  { %v1157_v42 = vxor.u32 2147483648, %v1156_v20  ;;  %v1179_v59 = vadd.s32 3, %v1162_v54  ;;  %v669_v4 = vadd.s32 536870912, %v668_v7  ;;  %v772_v17 = vsel %vm758_vm13, %v769_v12, %v771_v49  ;;  %v6852_v12 = vld [vmem:[#allocation17_spill] sm:$0xff] }
 0x185   :  { %v4739_v9 = vand.u32 65535, %v4721_v43  ;;  %v4742_v18 = vshrl.u32 %v4721_v43, 16  ;;  %v776_v58 = vand.u32 65535, %v772_v17  ;;  %v777_v40 = vshrl.u32 %v772_v17, 16 }
 0x186   :  { %vm295_vm5 = vcmp.lt.s32.totalorder %v6849_v38, 4  ;;  %v1158_v13 = vsel %vm1037_vm1, %v1157_v42, %v1156_v20  ;;  %v4747_v48 = vshrl.u32 %v669_v4, 30  ;;  %v741_v16 = vshrl.u32 %v6821_v0, %v6846_v26  ;;  %v6853_v42 = vld [vmem:[#allocation21_spill] sm:$0xff] }
 0x187   :  { %v768_v8 = vsel %vm758_vm13, %v765_v31, %v767_v46  ;;  %v4756_v33 = vsel %vm4679_vm8, %v3996_v10, %v1158_v13  ;;  %v762_v56 = vsel %vm760_vm11, %v750_v62, 2102212464  ;;  %v779_v45 = vmul.u32 %v777_v40, %v4739_v9 }
 0x188   :  { %v4762_v63 = vmul.u32 %v776_v58, %v4742_v18  ;;  %v291_v44 = vor.u32 %v6851_v29, %v6850_v28  ;;  %v1163_v26 = vmul.f32 %v4756_v33, %v4756_v33  ;;  %v4768_v6 = vand.u32 3, %v1179_v59 }
 0x189   :  { %v671_v15 = vshll.u32 %v4747_v48, 30  ;;  %v761_v11 = vsel %vm757_vm12, %v741_v16, %v744_v53  ;;  %v778_v25 = vmul.u32 %v776_v58, %v4739_v9  ;;  %v782_v55 = vshll.u32 %v779_v45, 16 }
 0x18a   :  { %v799_v27 = vshrl.u32 %v768_v8, 16  ;;  %v1164_v35 = vmul.f32 -0.001358992, %v1163_v26  ;;  %v1171_v34 = vmul.f32 -0.00019511016, %v1163_v26  ;;  %v763_v30 = vsel %vm759_vm10, %v747_v50, %v762_v56 }
 0x18b   :  { %v4774_v14 = vsub.s32 %v668_v7, %v671_v15  ;;  %v781_v41 = vmul.u32 %v777_v40, %v4742_v18  ;;  %v784_v36 = vshll.u32 %v4762_v63, 16  ;;  %vm786_vm11 = vc.u32 %v778_v25, %v782_v55 }
 0x18c   :  { %v788_v62 = vadd.s32 %v782_v55, %v778_v25  ;;  %v1165_v54 = vadd.f32 0.041655596, %v1164_v35  ;;  %v1172_v19 = vadd.f32 0.008332121, %v1171_v34  ;;  %v787_v49 = vsel %vm786_vm11, 1, %v6824_v24 }
 0x18d   :  { %vm673_vm14 = vcmp.lt.s32.totalorder %v4774_v14, 0  ;;  %v674_v53 = vsub.s32 0, %v4774_v14  ;;  %v798_v22 = vand.u32 65535, %v768_v8  ;;  %v4784_v32 = vmul.u32 %v799_v27, %v4739_v9 }
 0x18e   :  { %vm790_vm15 = vc.u32 %v788_v62, %v784_v36  ;;  %v1166_v50 = vmul.f32 %v1165_v54, %v1163_v26  ;;  %v1173_v20 = vmul.f32 %v1172_v19, %v1163_v26  ;;  %v789_v31 = vadd.s32 %v787_v49, %v781_v41 }
 0x18f   :  { %v675_v7 = vsel %vm673_vm14, %v674_v53, %v4774_v14  ;;  %v4789_v46 = vsel %vm295_vm5, %v291_v44, 1326507024  ;;  %v4793_v59 = vor.u32 %v6853_v42, %v6852_v12  ;;  %v791_v17 = vsel %vm790_vm15, 1, %v6824_v24 }
 0x190   :  { %v676_v4 = vclz %v675_v7  ;;  %v1167_v58 = vadd.f32 -0.4999988, %v1166_v50  ;;  %v1174_v40 = vadd.f32 -0.16666654, %v1173_v20  ;;  %vm572_vm2 = vcmp.lt.s32.totalorder %v3988_v57, 0  ;;  %v6856_v7 = vld [vmem:[#allocation5_spill] sm:$0xff] }
 0x191   :  { %v793_v13 = vadd.s32 %v791_v17, %v789_v31  ;;  %vm1182_vm3 = vcmp.eq.s32.totalorder %v4768_v6, 0  ;;  %vm1185_vm1 = vcmp.eq.s32.totalorder %v4768_v6, 2  ;;  %v664_v16 = vadd.s32 %v4697_v3, %v4688_v37 }
 0x192   :  { %v3645_v8 = vadd.s32 4294967294, %v676_v4  ;;  %v4803_v56 = vsel %vm758_vm13, %v761_v11, %v763_v30  ;;  %v802_v28 = vmul.u32 %v798_v22, %v4742_v18  ;;  %v1168_v29 = vmul.f32 %v1167_v58, %v1163_v26 }
 0x193   :  { %v1175_v44 = vmul.f32 %v1174_v40, %v1163_v26  ;;  %vm1181_vm4 = vcmp.lt.s32.totalorder %v4768_v6, 2  ;;  %v783_v15 = vshrl.u32 %v779_v45, 16  ;;  %v804_v25 = vshll.u32 %v4784_v32, 16 }
 0x194   :  { %vm1178_vm6 = vweird.f32 %v3996_v10  ;;  %vm3646_vm7 = vcmp.lt.s32.totalorder %v3645_v8, 0  ;;  %v694_v55 = vsub.s32 4, %v4747_v48  ;;  %v800_v37 = vmul.u32 %v798_v22, %v4739_v9 }
 0x195   :  { %v803_v61 = vmul.u32 %v799_v27, %v4742_v18  ;;  %v1169_v3 = vadd.f32 1.0, %v1168_v29  ;;  %v1176_v11 = vadd.f32 1.0, %v1175_v44  ;;  %v679_v35 = vsel %vm3646_vm7, 0, %v3645_v8  ;;  %v6857_v44 = vld [vmem:[#allocation8_spill] sm:$0xff] }
 0x196   :  { %v794_v34 = vadd.s32 %v793_v13, %v783_v15  ;;  %v680_v30 = vsub.s32 32, %v679_v35  ;;  %v684_v26 = vsub.s32 4294967266, %v679_v35  ;;  %v806_v41 = vshll.u32 %v802_v28, 16  ;;  %v6858_v15 = vld [vmem:[#allocation10_spill] sm:$0xff] }
 0x197   :  { %vm808_vm8 = vc.u32 %v800_v37, %v804_v25  ;;  %v1177_v45 = vmul.f32 %v1176_v11, %v4756_v33  ;;  %v1186_v36 = vxor.u32 2147483648, %v1169_v3  ;;  %v810_v54 = vadd.s32 %v804_v25, %v800_v37 }
 0x198   :  { %v809_v62 = vsel %vm808_vm8, 1, %v6824_v24  ;;  %vm4816_vm9 = vcmp.le.f32.partialorder %v570_v47, 0.7853982  ;;  %v681_v18 = vshll.u32 %v4774_v14, %v679_v35  ;;  %v682_v27 = vshrl.u32 %v664_v16, %v680_v30 }
 0x199   :  { %v685_v19 = vadd.s32 127, %v684_v26  ;;  %v811_v53 = vadd.s32 %v809_v62, %v803_v61  ;;  %v1183_v49 = vxor.u32 2147483648, %v1177_v45  ;;  %v695_v33 = vsel %vm572_vm2, %v694_v55, %v4747_v48 }
 0x19a   :  { %v785_v22 = vshrl.u32 %v4762_v63, 16  ;;  %vm812_vm10 = vc.u32 %v810_v54, %v806_v41  ;;  %v683_v50 = vor.u32 %v682_v27, %v681_v18  ;;  %v260_v31 = vand.u32 2147483647, %v6856_v7 }
 0x19b   :  { %v686_v20 = vshll.u32 %v685_v19, 23  ;;  %v813_v47 = vsel %vm812_vm10, 1, %v6824_v24  ;;  %v1184_v14 = vsel %vm1182_vm3, %v1169_v3, %v1183_v49  ;;  %v1187_v12 = vsel %vm1185_vm1, %v1186_v36, %v1177_v45 }
 0x19c   :  { %v805_v42 = vshrl.u32 %v4784_v32, 16  ;;  %v815_v4 = vadd.s32 %v813_v47, %v811_v53  ;;  %v1188_v48 = vsel %vm1181_vm4, %v1184_v14, %v1187_v12  ;;  %v4834_v17 = vadd.s32 %v794_v34, %v785_v22 }
 0x19d   :  { %v687_v63 = vor.u32 4788187, %v686_v20  ;;  %v807_v58 = vshrl.u32 %v802_v28, 16  ;;  %v1189_v40 = vsel %vm1178_vm6, nan, %v1188_v48  ;;  %v4838_v13 = vadd.s32 %v810_v54, %v806_v41  ;;  %v6859_v48 = vld [vmem:[#allocation20_spill] sm:$0xff] }
 0x19e   :  { %v816_v16 = vadd.s32 %v815_v4, %v805_v42  ;;  %v267_v8 = vand.u32 8388607, %v260_v31  ;;  %1583 = vmatpush.msra.mxu3 %v1189_v40  ;;  %v690_v32 = vcvt.s32.f32 %v683_v50  ;;  %v277_v6 = vshll.u32 %v6821_v0, %v6857_v44 }
 0x19f   :  { %v688_v29 = vand.u32 2147483647, %v687_v63  ;;  %v278_v25 = vshrl.u32 %v6825_v23, %v6858_v15  ;;  %v280_v10 = vshll.u32 %v6825_v23, %v6857_v44  ;;  %v281_v37 = vshrl.u32 %v6826_v51, %v6858_v15 }
 0x1a0   :  { %v817_v55 = vadd.s32 %v816_v16, %v807_v58  ;;  %v268_v28 = vor.u32 8388608, %v267_v8  ;;  %vm820_vm12 = vc.u32 %v4834_v17, %v4838_v13  ;;  %v283_v3 = vshll.u32 %v6826_v51, %v6857_v44  ;;  %v6860_v58 = vld [vmem:[#allocation12_spill] sm:$0xff] }
 0x1a1   :  { %v691_v61 = vmul.f32 %v690_v32, %v688_v29  ;;  %v284_v11 = vshrl.u32 %v6820_v52, %v6858_v15  ;;  %v697_v35 = vsel %vm4816_vm9, 0, %v695_v33  ;;  %v4858_v30 = vor.u32 %v278_v25, %v277_v6 }
 0x1a2   :  { %v821_v34 = vadd.s32 1, %v817_v55  ;;  %v4860_v26 = vor.u32 %v281_v37, %v280_v10  ;;  %v818_v45 = vmul.u32 %v4721_v43, %v4803_v56  ;;  %vm294_vm13 = vcmp.lt.s32.totalorder %v6849_v38, 3 }
 0x1a3   :  { %v692_v41 = vxor.u32 2147483648, %v691_v61  ;;  %v4864_v36 = vor.u32 %v284_v11, %v283_v3  ;;  %v301_v62 = vsel %vm295_vm5, %v4725_v60, 920167782  ;;  %v306_v18 = vsel %vm294_vm13, %v4725_v60, %v4789_v46 }
 0x1a4   :  { %v822_v54 = vsel %vm820_vm12, %v821_v34, %v817_v55  ;;  %v4874_v27 = vshll.u32 %v268_v28, 8  ;;  %v714_v43 = vadd.s32 3, %v697_v35  ;;  %vm292_vm11 = vcmp.lt.s32.totalorder %v6849_v38, 1 }
 0x1a5   :  { %v693_v19 = vsel %vm572_vm2, %v692_v41, %v691_v61  ;;  %v823_v56 = vadd.s32 %v822_v54, %v818_v45  ;;  %vm293_vm14 = vcmp.lt.s32.totalorder %v6849_v38, 2  ;;  %v300_v60 = vsel %vm292_vm11, %v4858_v30, %v4860_v26 }
 0x1a6   :  { %v696_v53 = vsel %vm4816_vm9, %v3988_v57, %v693_v19  ;;  %v304_v46 = vsel %vm292_vm11, %v4860_v26, %v4864_v36  ;;  %v302_v22 = vsel %vm294_vm13, %v4864_v36, %v301_v62  ;;  %v309_v50 = vand.u32 65535, %v4874_v27 }
 0x1a7   :  { %v698_v49 = vmul.f32 %v696_v53, %v696_v53  ;;  %v824_v33 = vadd.s32 536870912, %v823_v56  ;;  %v307_v9 = vsel %vm293_vm14, %v304_v46, %v306_v18  ;;  %v4898_v20 = vshrl.u32 %v4874_v27, 16 }
 0x1a8   :  { %v311_v47 = vand.u32 65535, %v307_v9  ;;  %v312_v14 = vshrl.u32 %v307_v9, 16  ;;  %v446_v63 = vor.u32 %v4619_v1, %v6859_v48  ;;  %vm450_vm15 = vcmp.lt.s32.totalorder %v6860_v58, 4 }
 0x1a9   :  { %v699_v12 = vmul.f32 -0.001358992, %v698_v49  ;;  %v706_v42 = vmul.f32 -0.00019511016, %v698_v49  ;;  %v4900_v4 = vshrl.u32 %v824_v33, 30  ;;  %v303_v44 = vsel %vm293_vm14, %v300_v60, %v302_v22 }
 0x1aa   :  { %v314_v40 = vmul.u32 %v312_v14, %v309_v50  ;;  %v4906_v16 = vmul.u32 %v311_v47, %v4898_v20  ;;  %v4914_v6 = vsel %vm450_vm15, %v4793_v59, 920167782  ;;  %v715_v25 = vand.u32 3, %v714_v43 }
 0x1ab   :  { %v700_v8 = vadd.f32 0.041655596, %v699_v12  ;;  %v707_v29 = vadd.f32 0.008332121, %v706_v42  ;;  %v826_v32 = vshll.u32 %v4900_v4, 30  ;;  %v313_v55 = vmul.u32 %v311_v47, %v309_v50 }
 0x1ac   :  { %v317_v28 = vshll.u32 %v314_v40, 16  ;;  %v316_v3 = vmul.u32 %v312_v14, %v4898_v20  ;;  %v319_v11 = vshll.u32 %v4906_v16, 16  ;;  %v334_v34 = vshrl.u32 %v303_v44, 16 }
 0x1ad   :  { %v701_v10 = vmul.f32 %v700_v8, %v698_v49  ;;  %v708_v37 = vmul.f32 %v707_v29, %v698_v49  ;;  %v4916_v61 = vsub.s32 %v823_v56, %v826_v32  ;;  %v276_v54 = vshrl.u32 %v6821_v0, %v6858_v15 }
 0x1ae   :  { %vm321_vm2 = vc.u32 %v313_v55, %v317_v28  ;;  %v323_v35 = vadd.s32 %v317_v28, %v313_v55  ;;  %v333_v19 = vand.u32 65535, %v303_v44  ;;  %vm716_vm4 = vcmp.lt.s32.totalorder %v715_v25, 2 }
 0x1af   :  { %v702_v41 = vadd.f32 -0.4999988, %v701_v10  ;;  %v709_v45 = vadd.f32 -0.16666654, %v708_v37  ;;  %vm828_vm3 = vcmp.lt.s32.totalorder %v4916_v61, 0  ;;  %v829_v62 = vsub.s32 0, %v4916_v61 }
 0x1b0   :  { %v322_v18 = vsel %vm321_vm2, 1, %v6824_v24  ;;  %vm325_vm1 = vc.u32 %v323_v35, %v319_v11  ;;  %vm713_vm6 = vweird.f32 %v3988_v57  ;;  %vm717_vm7 = vcmp.eq.s32.totalorder %v715_v25, 0 }
 0x1b1   :  { %v703_v43 = vmul.f32 %v702_v41, %v698_v49  ;;  %v710_v56 = vmul.f32 %v709_v45, %v698_v49  ;;  %v830_v60 = vsel %vm828_vm3, %v829_v62, %v4916_v61  ;;  %v324_v46 = vadd.s32 %v322_v18, %v316_v3 }
 0x1b2   :  { %v831_v33 = vclz %v830_v60  ;;  %v326_v22 = vsel %vm325_vm1, 1, %v6824_v24  ;;  %v336_v9 = vmul.u32 %v334_v34, %v309_v50  ;;  %v297_v15 = vsel %vm295_vm5, %v4864_v36, 2102212464 }
 0x1b3   :  { %v704_v47 = vadd.f32 1.0, %v703_v43  ;;  %v711_v14 = vadd.f32 1.0, %v710_v56  ;;  %v328_v12 = vadd.s32 %v326_v22, %v324_v46  ;;  %vm720_vm8 = vcmp.eq.s32.totalorder %v715_v25, 2 }
 0x1b4   :  { %v819_v49 = vadd.s32 %v4838_v13, %v4834_v17  ;;  %v3648_v42 = vadd.s32 4294967294, %v831_v33  ;;  %v337_v8 = vmul.u32 %v333_v19, %v4898_v20  ;;  %v296_v44 = vsel %vm292_vm11, %v276_v54, %v4858_v30 }
 0x1b5   :  { %v712_v29 = vmul.f32 %v711_v14, %v696_v53  ;;  %v721_v32 = vxor.u32 2147483648, %v704_v47  ;;  %v318_v55 = vshrl.u32 %v314_v40, 16  ;;  %v298_v36 = vsel %vm294_vm13, %v4860_v26, %v297_v15  ;;  %v6862_v15 = vld [vmem:[#allocation9_spill] sm:$0xff] }
 0x1b6   :  { %vm3649_vm9 = vcmp.lt.s32.totalorder %v3648_v42, 0  ;;  %v335_v28 = vmul.u32 %v333_v19, %v309_v50  ;;  %v339_v10 = vshll.u32 %v336_v9, 16  ;;  %v338_v13 = vmul.u32 %v334_v34, %v4898_v20 }
 0x1b7   :  { %v718_v37 = vxor.u32 2147483648, %v712_v29  ;;  %v834_v3 = vsel %vm3649_vm9, 0, %v3648_v42  ;;  %v329_v17 = vadd.s32 %v328_v12, %v318_v55  ;;  %v722_v53 = vsel %vm720_vm8, %v721_v32, %v712_v29 }
 0x1b8   :  { %v835_v11 = vsub.s32 32, %v834_v3  ;;  %v839_v35 = vsub.s32 4294967266, %v834_v3  ;;  %v341_v41 = vshll.u32 %v337_v8, 16  ;;  %v836_v40 = vshll.u32 %v4916_v61, %v834_v3 }
 0x1b9   :  { %v719_v30 = vsel %vm717_vm7, %v704_v47, %v718_v37  ;;  %vm343_vm5 = vc.u32 %v335_v28, %v339_v10  ;;  %v345_v45 = vadd.s32 %v339_v10, %v335_v28  ;;  %v460_v20 = vsel %vm450_vm15, %v446_v63, 1326507024  ;;  %v6861_v63 = vld [vmem:[#allocation6_spill] sm:$0xff] }
 0x1ba   :  { %v723_v26 = vsel %vm716_vm4, %v719_v30, %v722_v53  ;;  %v837_v50 = vshrl.u32 %v819_v49, %v835_v11  ;;  %v840_v62 = vadd.s32 127, %v839_v35  ;;  %v344_v54 = vsel %vm343_vm5, 1, %v6824_v24 }
 0x1bb   :  { %v724_v34 = vsel %vm713_vm6, nan, %v723_v26  ;;  %v346_v18 = vadd.s32 %v344_v54, %v338_v13  ;;  %vm347_vm10 = vc.u32 %v345_v45, %v341_v41  ;;  %vm727_vm12 = vcmp.lt.s32.totalorder %v6842_v39, 0 }
 0x1bc   :  { %1555 = vmatpush.msra.mxu2 %v724_v34  ;;  %v838_v25 = vor.u32 %v837_v50, %v836_v40  ;;  %v841_v61 = vshll.u32 %v840_v62, 23  ;;  %v320_v19 = vshrl.u32 %v4906_v16, 16  ;;  %v348_v43 = vsel %vm347_vm10, 1, %v6824_v24 }
 0x1bd   :  { %v299_v1 = vsel %vm293_vm14, %v296_v44, %v298_v36  ;;  %v340_v48 = vshrl.u32 %v336_v9, 16  ;;  %v350_v56 = vadd.s32 %v348_v43, %v346_v18  ;;  %v415_v60 = vand.u32 2147483647, %v6861_v63 }
 0x1be   :  { %v842_v57 = vor.u32 4788187, %v841_v61  ;;  %v4959_v46 = vadd.s32 %v329_v17, %v320_v19  ;;  %v342_v33 = vshrl.u32 %v337_v8, 16  ;;  %v4961_v22 = vadd.s32 %v345_v45, %v341_v41 }
 0x1bf   :  { %v845_v47 = vcvt.s32.f32 %v838_v25  ;;  %v351_v14 = vadd.s32 %v350_v56, %v340_v48  ;;  %v422_v16 = vand.u32 8388607, %v415_v60  ;;  %v432_v12 = vshll.u32 %v6821_v0, %v6862_v15 }
 0x1c0   :  { %v843_v38 = vand.u32 2147483647, %v842_v57  ;;  %v433_v9 = vshrl.u32 %v6825_v23, %v6839_v21  ;;  %v435_v49 = vshll.u32 %v6825_v23, %v6862_v15  ;;  %v436_v42 = vshrl.u32 %v6826_v51, %v6839_v21 }
 0x1c1   :  { %v849_v8 = vsub.s32 4, %v4900_v4  ;;  %v352_v29 = vadd.s32 %v351_v14, %v342_v33  ;;  %v438_v32 = vshll.u32 %v6826_v51, %v6862_v15  ;;  %v439_v44 = vshrl.u32 %v6820_v52, %v6839_v21 }
 0x1c2   :  { %v846_v55 = vmul.f32 %v845_v47, %v843_v38  ;;  %vm355_vm13 = vc.u32 %v4959_v46, %v4961_v22  ;;  %v4980_v36 = vor.u32 %v433_v9, %v432_v12  ;;  %v4982_v28 = vor.u32 %v436_v42, %v435_v49 }
 0x1c3   :  { %v356_v10 = vadd.s32 1, %v352_v29  ;;  %v423_v37 = vor.u32 8388608, %v422_v16  ;;  %v4984_v3 = vor.u32 %v439_v44, %v438_v32  ;;  %vm449_vm11 = vcmp.lt.s32.totalorder %v6860_v58, 3 }
 0x1c4   :  { %v847_v17 = vxor.u32 2147483648, %v846_v55  ;;  %v353_v13 = vmul.u32 %v4874_v27, %v299_v1  ;;  %vm447_vm14 = vcmp.lt.s32.totalorder %v6860_v58, 1  ;;  %v461_v53 = vsel %vm449_vm11, %v4793_v59, %v460_v20 }
 0x1c5   :  { %vm4994_vm2 = vcmp.le.f32.partialorder %v725_v2, 0.7853982  ;;  %v850_v35 = vsel %vm727_vm12, %v849_v8, %v4900_v4  ;;  %v357_v41 = vsel %vm355_vm13, %v356_v10, %v352_v29  ;;  %v459_v27 = vsel %vm447_vm14, %v4982_v28, %v4984_v3 }
 0x1c6   :  { %v848_v30 = vsel %vm727_vm12, %v847_v17, %v846_v55  ;;  %v358_v59 = vadd.s32 %v357_v41, %v353_v13  ;;  %vm448_vm3 = vcmp.lt.s32.totalorder %v6860_v58, 2  ;;  %v455_v2 = vsel %vm447_vm14, %v4980_v36, %v4982_v28 }
 0x1c7   :  { %v851_v4 = vsel %vm4994_vm2, %v6842_v39, %v848_v30  ;;  %v457_v40 = vsel %vm449_vm11, %v4984_v3, %v4914_v6  ;;  %v462_v45 = vsel %vm448_vm3, %v459_v27, %v461_v53  ;;  %v5021_v26 = vshll.u32 %v423_v37, 8 }
 0x1c8   :  { %v853_v50 = vmul.f32 %v851_v4, %v851_v4  ;;  %v359_v62 = vadd.s32 536870912, %v358_v59  ;;  %v466_v54 = vand.u32 65535, %v462_v45  ;;  %v467_v20 = vshrl.u32 %v462_v45, 16 }
 0x1c9   :  { %v852_v34 = vsel %vm4994_vm2, 0, %v850_v35  ;;  %v464_v18 = vand.u32 65535, %v5021_v26  ;;  %v465_v25 = vshrl.u32 %v5021_v26, 16  ;;  %v458_v6 = vsel %vm448_vm3, %v455_v2, %v457_v40 }
 0x1ca   :  { %v854_v61 = vmul.f32 -0.001358992, %v853_v50  ;;  %v861_v19 = vmul.f32 -0.00019511016, %v853_v50  ;;  %v5027_v43 = vshrl.u32 %v359_v62, 30  ;;  %v869_v47 = vadd.s32 3, %v852_v34 }
 0x1cb   :  { %v469_v1 = vmul.u32 %v467_v20, %v464_v18  ;;  %v5031_v48 = vmul.u32 %v466_v54, %v465_v25  ;;  %v468_v14 = vmul.u32 %v466_v54, %v464_v18  ;;  %v489_v15 = vshrl.u32 %v458_v6, 16 }
 0x1cc   :  { %v855_v56 = vadd.f32 0.041655596, %v854_v61  ;;  %v862_v57 = vadd.f32 0.008332121, %v861_v19  ;;  %v361_v33 = vshll.u32 %v5027_v43, 30  ;;  %v488_v49 = vand.u32 65535, %v458_v6 }
 0x1cd   :  { %v472_v16 = vshll.u32 %v469_v1, 16  ;;  %v471_v42 = vmul.u32 %v467_v20, %v465_v25  ;;  %v474_v8 = vshll.u32 %v5031_v48, 16  ;;  %v870_v10 = vand.u32 3, %v869_v47 }
 0x1ce   :  { %v856_v12 = vmul.f32 %v855_v56, %v853_v50  ;;  %v863_v38 = vmul.f32 %v862_v57, %v853_v50  ;;  %v362_v9 = vsub.s32 %v358_v59, %v361_v33  ;;  %v491_v17 = vmul.u32 %v489_v15, %v464_v18 }
 0x1cf   :  { %vm476_vm1 = vc.u32 %v468_v14, %v472_v16  ;;  %v478_v29 = vadd.s32 %v472_v16, %v468_v14  ;;  %vm868_vm7 = vweird.f32 %v6842_v39  ;;  %v492_v40 = vmul.u32 %v488_v49, %v465_v25 }
 0x1d0   :  { %v857_v32 = vadd.f32 -0.4999988, %v856_v12  ;;  %v864_v44 = vadd.f32 -0.16666654, %v863_v38  ;;  %vm363_vm4 = vcmp.lt.s32.totalorder %v362_v9, 0  ;;  %v364_v55 = vsub.s32 0, %v362_v9 }
 0x1d1   :  { %v477_v37 = vsel %vm476_vm1, 1, %v6824_v24  ;;  %vm480_vm6 = vc.u32 %v478_v29, %v474_v8  ;;  %vm871_vm8 = vcmp.lt.s32.totalorder %v870_v10, 2  ;;  %vm872_vm9 = vcmp.eq.s32.totalorder %v870_v10, 0 }
 0x1d2   :  { %v858_v13 = vmul.f32 %v857_v32, %v853_v50  ;;  %v865_v53 = vmul.f32 %v864_v44, %v853_v50  ;;  %v365_v11 = vsel %vm363_vm4, %v364_v55, %v362_v9  ;;  %v479_v35 = vadd.s32 %v477_v37, %v471_v42 }
 0x1d3   :  { %v366_v41 = vclz %v365_v11  ;;  %v481_v27 = vsel %vm480_vm6, 1, %v6824_v24  ;;  %vm875_vm5 = vcmp.eq.s32.totalorder %v870_v10, 2  ;;  %v473_v20 = vshrl.u32 %v469_v1, 16 }
 0x1d4   :  { %v859_v30 = vadd.f32 1.0, %v858_v13  ;;  %v866_v59 = vadd.f32 1.0, %v865_v53  ;;  %v483_v2 = vadd.s32 %v481_v27, %v479_v35  ;;  %v494_v34 = vshll.u32 %v491_v17, 16 }
 0x1d5   :  { %v3639_v45 = vadd.s32 4294967294, %v366_v41  ;;  %v354_v50 = vadd.s32 %v4961_v22, %v4959_v46  ;;  %v490_v61 = vmul.u32 %v488_v49, %v464_v18  ;;  %v493_v19 = vmul.u32 %v489_v15, %v465_v25 }
 0x1d6   :  { %v867_v62 = vmul.f32 %v866_v59, %v851_v4  ;;  %v876_v54 = vxor.u32 2147483648, %v859_v30  ;;  %v484_v57 = vadd.s32 %v483_v2, %v473_v20  ;;  %v496_v33 = vshll.u32 %v492_v40, 16 }
 0x1d7   :  { %vm3640_vm10 = vcmp.lt.s32.totalorder %v3639_v45, 0  ;;  %vm498_vm12 = vc.u32 %v490_v61, %v494_v34  ;;  %v500_v38 = vadd.s32 %v494_v34, %v490_v61  ;;  %v431_v15 = vshrl.u32 %v6821_v0, %v6839_v21 }
 0x1d8   :  { %v873_v6 = vxor.u32 2147483648, %v867_v62  ;;  %v369_v56 = vsel %vm3640_vm10, 0, %v3639_v45  ;;  %v877_v47 = vsel %vm875_vm5, %v876_v54, %v867_v62  ;;  %v499_v1 = vsel %vm498_vm12, 1, %v6824_v24 }
 0x1d9   :  { %v370_v14 = vsub.s32 32, %v369_v56  ;;  %v374_v16 = vsub.s32 4294967266, %v369_v56  ;;  %v371_v4 = vshll.u32 %v362_v9, %v369_v56  ;;  %v501_v18 = vadd.s32 %v499_v1, %v493_v19 }
 0x1da   :  { %v874_v12 = vsel %vm872_vm9, %v859_v30, %v873_v6  ;;  %v452_v49 = vsel %vm450_vm15, %v4984_v3, 2102212464  ;;  %vm502_vm13 = vc.u32 %v500_v38, %v496_v33  ;;  %v475_v29 = vshrl.u32 %v5031_v48, 16 }
 0x1db   :  { %v878_v42 = vsel %vm871_vm8, %v874_v12, %v877_v47  ;;  %v372_v46 = vshrl.u32 %v354_v50, %v370_v14  ;;  %v375_v22 = vadd.s32 127, %v374_v16  ;;  %v503_v32 = vsel %vm502_vm13, 1, %v6824_v24 }
 0x1dc   :  { %v879_v25 = vsel %vm868_vm7, nan, %v878_v42  ;;  %v495_v44 = vshrl.u32 %v491_v17, 16  ;;  %v505_v55 = vadd.s32 %v503_v32, %v501_v18  ;;  %v451_v39 = vsel %vm447_vm14, %v431_v15, %v4980_v36 }
 0x1dd   :  { %1584 = vmatpush.msra.mxu3 %v879_v25  ;;  %v373_v9 = vor.u32 %v372_v46, %v371_v4  ;;  %v376_v8 = vshll.u32 %v375_v22, 23  ;;  %v453_v21 = vsel %vm449_vm11, %v4982_v28, %v452_v49  ;;  %v485_v3 = vadd.s32 %v484_v57, %v475_v29 }
 0x1de   :  { %v497_v37 = vshrl.u32 %v492_v40, 16  ;;  %v506_v13 = vadd.s32 %v505_v55, %v495_v44  ;;  %v504_v35 = vadd.s32 %v500_v38, %v496_v33  ;;  %v454_v48 = vsel %vm448_vm3, %v451_v39, %v453_v21 }
 0x1df   :  { %v377_v10 = vor.u32 4788187, %v376_v8  ;;  %v380_v11 = vcvt.s32.f32 %v373_v9  ;;  %v508_v36 = vmul.u32 %v5021_v26, %v454_v48  ;;  %vm262_vm14 = vcmp.lt.s32.totalorder %v6856_v7, 0  ;;  %v1500_v48 = vld [vmem:[%s6719_s3] sm:$0xff] }
 0x1e0   :  { %v507_v17 = vadd.s32 %v506_v13, %v497_v37  ;;  %vm510_vm15 = vc.u32 %v485_v3, %v504_v35  ;;  %v384_v28 = vsub.s32 4, %v5027_v43  ;;  %vm5065_vm11 = vcmp.le.f32.partialorder %v260_v31, 0.7853982 }
 0x1e1   :  { %v378_v53 = vand.u32 2147483647, %v377_v10  ;;  %v509_v8 = vadd.s32 %v504_v35, %v485_v3  ;;  %vm403_vm6 = vweird.f32 %v6856_v7  ;;  %vm1528_vm8 = vcmask 261120  }
 0x1e2   :  { %v511_v27 = vadd.s32 1, %v507_v17  ;;  %v385_v26 = vsel %vm262_vm14, %v384_v28, %v5027_v43  ;;  %vm417_vm9 = vcmp.lt.s32.totalorder %v6861_v63, 0  ;;  %vm5086_vm5 = vcmp.le.f32.partialorder %v415_v60, 0.7853982 }
 0x1e3   :  { %v381_v41 = vmul.f32 %v380_v11, %v378_v53  ;;  %v387_v61 = vsel %vm5065_vm11, 0, %v385_v26 }
 0x1e4   :  { %v512_v59 = vsel %vm510_vm15, %v511_v27, %v507_v17  ;;  %v404_v47 = vadd.s32 3, %v387_v61  ;;  %vm558_vm15 = vweird.f32 %v6861_v63 }
 0x1e5   :  { %v382_v30 = vxor.u32 2147483648, %v381_v41  ;;  %v513_v40 = vadd.s32 %v512_v59, %v508_v36 }
 0x1e6   :  { %v405_v22 = vand.u32 3, %v404_v47 }
 0x1e7   :  { %v383_v58 = vsel %vm262_vm14, %v382_v30, %v381_v41  ;;  %v514_v54 = vadd.s32 536870912, %v513_v40  ;;  %v1501_v41 = vld [vmem:[%s6719_s3 + $0x8] sm:$0xff] }
 0x1e8   :  { %v386_v45 = vsel %vm5065_vm11, %v6856_v7, %v383_v58  ;;  %vm407_vm1 = vcmp.eq.s32.totalorder %v405_v22, 0  ;;  %vm410_vm4 = vcmp.eq.s32.totalorder %v405_v22, 2  ;;  %vm406_vm7 = vcmp.lt.s32.totalorder %v405_v22, 2  ;;  %v2842_v22 = vld [vmem:[%s6722_s6 + $0x8] sm:$0xff] }
 0x1e9   :  { %v388_v62 = vmul.f32 %v386_v45, %v386_v45  ;;  %v515_v50 = vshrl.u32 %v514_v54, 30 }
 0x1eb   :  { %v389_v20 = vmul.f32 -0.001358992, %v388_v62  ;;  %v396_v34 = vmul.f32 -0.00019511016, %v388_v62  ;;  %v516_v6 = vshll.u32 %v515_v50, 30  ;;  %v539_v28 = vsub.s32 4, %v515_v50 }
 0x1ed   :  { %v390_v31 = vadd.f32 0.041655596, %v389_v20  ;;  %v397_v19 = vadd.f32 0.008332121, %v396_v34  ;;  %v517_v33 = vsub.s32 %v513_v40, %v516_v6 }
 0x1ef   :  { %v391_v56 = vmul.f32 %v390_v31, %v388_v62  ;;  %v398_v57 = vmul.f32 %v397_v19, %v388_v62  ;;  %vm518_vm2 = vcmp.lt.s32.totalorder %v517_v33, 0  ;;  %v519_v12 = vsub.s32 0, %v517_v33 }
 0x1f1   :  { %v392_v14 = vadd.f32 -0.4999988, %v391_v56  ;;  %v399_v16 = vadd.f32 -0.16666654, %v398_v57  ;;  %v520_v43 = vsel %vm518_vm2, %v519_v12, %v517_v33  ;;  %v1507_v12 = vld [vmem:[%s6720_s4 + $0x18] sm:$0xff] }
 0x1f2   :  { %v521_v38 = vclz %v520_v43  ;;  %1525 = vperm.xlu2 %3722, %v1507_v12  }
 0x1f3   :  { %v393_v4 = vmul.f32 %v392_v14, %v388_v62  ;;  %v400_v1 = vmul.f32 %v399_v16, %v388_v62  ;;  %v1502_v62 = vld [vmem:[%s6719_s3 + $0x10] sm:$0xff] }
 0x1f4   :  { %v3642_v18 = vadd.s32 4294967294, %v521_v38 }
 0x1f5   :  { %v394_v42 = vadd.f32 1.0, %v393_v4  ;;  %v401_v46 = vadd.f32 1.0, %v400_v1 }
 0x1f6   :  { %vm3643_vm3 = vcmp.lt.s32.totalorder %v3642_v18, 0 }
 0x1f7   :  { %v402_v25 = vmul.f32 %v401_v46, %v386_v45  ;;  %v411_v15 = vxor.u32 2147483648, %v394_v42  ;;  %v524_v9 = vsel %vm3643_vm3, 0, %v3642_v18  ;;  %v540_v45 = vsel %vm417_vm9, %v539_v28, %v515_v50  ;;  %v1503_v50 = vld [vmem:[%s6719_s3 + $0x18] sm:$0xff]  ;;  %v1506_v46 = vld [vmem:[%s6720_s4 + $0x10] sm:$0xff]  ;;  %v1511_v18 = vpop.permute.xlu1 %1510 }
 0x1f8   :  { %v525_v29 = vsub.s32 32, %v524_v9  ;;  %v529_v32 = vsub.s32 4294967266, %v524_v9  ;;  %v526_v39 = vshll.u32 %v517_v33, %v524_v9  ;;  %v542_v26 = vsel %vm5086_vm5, 0, %v540_v45 }
 0x1f9   :  { %v408_v49 = vxor.u32 2147483648, %v402_v25  ;;  %v412_v55 = vsel %vm410_vm4, %v411_v15, %v402_v25  ;;  %v559_v19 = vadd.s32 3, %v542_v26 }
 0x1fa   :  { %v527_v21 = vshrl.u32 %v509_v8, %v525_v29  ;;  %v530_v37 = vadd.s32 127, %v529_v32  ;;  %1520 = vperm.xlu2 %3722, %v1506_v46  }
 0x1fb   :  { %v409_v44 = vsel %vm407_vm1, %v394_v42, %v408_v49  ;;  %v560_v47 = vand.u32 3, %v559_v19  ;;  %v1516_v49 = vpop.permute.xlu0 %1515 }
 0x1fc   :  { %v413_v10 = vsel %vm406_vm7, %v409_v44, %v412_v55  ;;  %v528_v53 = vor.u32 %v527_v21, %v526_v39  ;;  %v531_v11 = vshll.u32 %v530_v37, 23 }
 0x1fd   :  { %v414_v13 = vsel %vm403_vm6, nan, %v413_v10  ;;  %vm562_vm10 = vcmp.eq.s32.totalorder %v560_v47, 0  ;;  %vm565_vm12 = vcmp.eq.s32.totalorder %v560_v47, 2  ;;  %vm561_vm13 = vcmp.lt.s32.totalorder %v560_v47, 2 }
 0x1fe   :  { %1556 = vmatpush.msra.mxu2 %v414_v13  ;;  %v532_v3 = vor.u32 4788187, %v531_v11  ;;  %v535_v35 = vcvt.s32.f32 %v528_v53 }
 0x1ff   :  { %3662 = vmatmul.msk.f32.vlgmr.msra.gmra.mxu2 %vm1528_vm8, %v1500_v48 }
 0x200   :  { %v533_v7 = vand.u32 2147483647, %v532_v3 }
 0x202   :  { %v536_v17 = vmul.f32 %v535_v35, %v533_v7  ;;  %2850 = vperm.xlu2 %3722, %v2842_v22  }
 0x204   :  { %v537_v27 = vxor.u32 2147483648, %v536_v17 }
 0x206   :  { %v538_v36 = vsel %vm417_vm9, %v537_v27, %v536_v17 }
 0x207   :  { %3663 = vmatmul.msk.f32.gmra.mxu2 %vm1528_vm8, %v1501_v41  ;;  %v541_v59 = vsel %vm5086_vm5, %v6861_v63, %v538_v36 }
 0x208   :  { %v543_v2 = vmul.f32 %v541_v59, %v541_v59 }
 0x20a   :  { %v544_v58 = vmul.f32 -0.001358992, %v543_v2  ;;  %v551_v40 = vmul.f32 -0.00019511016, %v543_v2 }
 0x20c   :  { %v545_v60 = vadd.f32 0.041655596, %v544_v58  ;;  %v552_v54 = vadd.f32 0.008332121, %v551_v40 }
 0x20e   :  { %v546_v20 = vmul.f32 %v545_v60, %v543_v2  ;;  %v553_v34 = vmul.f32 %v552_v54, %v543_v2 }
 0x20f   :  { %3664 = vmatmul.msk.f32.gmra.mxu2 %vm1528_vm8, %v1502_v62 }
 0x210   :  { %v547_v61 = vadd.f32 -0.4999988, %v546_v20  ;;  %v554_v31 = vadd.f32 -0.16666654, %v553_v34 }
 0x212   :  { %v548_v6 = vmul.f32 %v547_v61, %v543_v2  ;;  %v555_v56 = vmul.f32 %v554_v31, %v543_v2  ;;  %v6876_v31 = vmov 920167782  }
 0x214   :  { %v549_v57 = vadd.f32 1.0, %v548_v6  ;;  %v556_v33 = vadd.f32 1.0, %v555_v56 }
 0x216   :  { %v557_v14 = vmul.f32 %v556_v33, %v541_v59  ;;  %v566_v16 = vxor.u32 2147483648, %v549_v57 }
 0x217   :  { %3665 = vmatmul.msk.f32.gmra.mxu2 %vm1528_vm8, %v1503_v50 }
 0x218   :  { %v563_v4 = vxor.u32 2147483648, %v557_v14  ;;  %v567_v43 = vsel %vm565_vm12, %v566_v16, %v557_v14 }
 0x21a   :  { %v564_v1 = vsel %vm562_vm10, %v549_v57, %v563_v4 }
 0x21b   :  { %v568_v38 = vsel %vm561_vm13, %v564_v1, %v567_v43 }
 0x21c   :  { %v569_v42 = vsel %vm558_vm15, nan, %v568_v38 }
 0x21d   :  { %1585 = vmatpush.msra.mxu3 %v569_v42 }
 0x21e   :  { %3666 = vmatmul.msk.f32.vlgmr.msra.gmra.mxu3 %vm1528_vm8, %v1500_v48 }
 0x226   :  { %3667 = vmatmul.msk.f32.gmra.mxu3 %vm1528_vm8, %v1501_v41 }
 0x22e   :  { %3668 = vmatmul.msk.f32.gmra.mxu3 %vm1528_vm8, %v1502_v62 }
 0x236   :  { %3669 = vmatmul.msk.f32.gmra.mxu3 %vm1528_vm8, %v1503_v50 }
 0x24c   :  { %v5121_v9 = vpop.permute.xlu2 %1525 }
 0x254   :  { %v1521_v37 = vpop.permute.xlu2 %1520 }
 0x282   :  { %v1558_v63 = vpop.f32.mrf.mxu2 }
 0x283   :  { %v5118_v25 = vadd.f32 %v1558_v63, %v1511_v18 }
 0x285   :  { %6869 = vst [vmem:[#allocation24_spill] sm:$0xff] %v5118_v25  ;;  %v1602_v15 = vand.u32 2139095040, %v5118_v25 }
 0x287   :  { %v1603_v29 = vshrl.u32 %v1602_v15, 23 }
 0x289   :  { %v3670_v55 = vadd.s32 4294967169, %v1603_v29 }
 0x28a   :  { %v1561_v8 = vpop.f32.mrf.mxu2 }
 0x28b   :  { %v5123_v32 = vadd.f32 %v1561_v8, %v1516_v49  ;;  %v1609_v21 = vadd.s32 1, %v3670_v55 }
 0x28d   :  { %v1912_v44 = vand.u32 2139095040, %v5123_v32  ;;  %vm1610_vm14 = vcmp.gt.s32.totalorder %v1609_v21, 0 }
 0x28e   :  { %v1611_v35 = vsel %vm1610_vm14, %v1609_v21, 0 }
 0x28f   :  { %v1913_v10 = vshrl.u32 %v1912_v44, 23  ;;  %v5134_v36 = vand.u32 31, %v1611_v35  ;;  %v5151_v50 = vshrl.u32 %v1611_v35, 5 }
 0x291   :  { %v3676_v39 = vadd.s32 4294967169, %v1913_v10  ;;  %6871 = vst [vmem:[#allocation13_spill] sm:$0xff] %v5134_v36  ;;  %v5143_v62 = vsub.s32 32, %v5134_v36  ;;  %v1625_v57 = vshll.u32 %v6820_v52, %v5134_v36  ;;  %v1628_v46 = vshll.u32 %v6876_v31, %v5134_v36 }
 0x292   :  { %v1564_v13 = vpop.f32.mrf.mxu2  ;;  %6877 = vst [vmem:[#allocation15_spill] sm:$0xff] %v5151_v50  ;;  %vm1634_vm1 = vcmp.lt.s32.totalorder %v5151_v50, 4 }
 0x293   :  { %v5126_v53 = vadd.f32 %v1564_v13, %v1521_v37  ;;  %v1919_v48 = vadd.s32 1, %v3676_v39  ;;  %6874 = vst [vmem:[#allocation14_spill] sm:$0xff] %v5143_v62  ;;  %v1626_v19 = vshrl.u32 %v6876_v31, %v5143_v62  ;;  %v1629_v14 = vshrl.u32 %v6840_v5, %v5143_v62 }
 0x295   :  { %v2222_v3 = vand.u32 2139095040, %v5126_v53  ;;  %vm1920_vm11 = vcmp.gt.s32.totalorder %v1919_v48, 0  ;;  %v5164_v42 = vor.u32 %v1626_v19, %v1625_v57  ;;  %v1630_v8 = vor.u32 %v1629_v14, %v1628_v46 }
 0x296   :  { %v1921_v27 = vsel %vm1920_vm11, %v1919_v48, 0 }
 0x297   :  { %v2223_v7 = vshrl.u32 %v2222_v3, 23  ;;  %v5138_v40 = vand.u32 31, %v1921_v27  ;;  %6878 = vst [vmem:[#allocation18_spill] sm:$0xff] %v5164_v42  ;;  %v5189_v3 = vsel %vm1634_vm1, %v1630_v8, 1326507024 }
 0x298   :  { %6882 = vst [vmem:[#allocation17_spill] sm:$0xff] %v5189_v3 }
 0x299   :  { %v3682_v59 = vadd.s32 4294967169, %v2223_v7  ;;  %6872 = vst [vmem:[#allocation23_spill] sm:$0xff] %v5138_v40  ;;  %v5146_v20 = vsub.s32 32, %v5138_v40  ;;  %v1935_v22 = vshll.u32 %v6820_v52, %v5138_v40  ;;  %v1938_v15 = vshll.u32 %v6876_v31, %v5138_v40 }
 0x29a   :  { %v1567_v41 = vpop.f32.mrf.mxu2 }
 0x29b   :  { %v5132_v30 = vadd.f32 %v1567_v41, %v5121_v9  ;;  %v2229_v60 = vadd.s32 1, %v3682_v59  ;;  %6875 = vst [vmem:[#allocation22_spill] sm:$0xff] %v5146_v20  ;;  %v1936_v16 = vshrl.u32 %v6876_v31, %v5146_v20  ;;  %v1939_v12 = vshrl.u32 %v6840_v5, %v5146_v20 }
 0x29d   :  { %v2532_v58 = vand.u32 2139095040, %v5132_v30  ;;  %vm2230_vm2 = vcmp.gt.s32.totalorder %v2229_v60, 0  ;;  %v5174_v29 = vor.u32 %v1936_v16, %v1935_v22  ;;  %v1940_v10 = vor.u32 %v1939_v12, %v1938_v15 }
 0x29e   :  { %v2231_v1 = vsel %vm2230_vm2, %v2229_v60, 0 }
 0x29f   :  { %v2533_v54 = vshrl.u32 %v2532_v58, 23  ;;  %6880 = vst [vmem:[#allocation16_spill] sm:$0xff] %v5174_v29  ;;  %v5176_v44 = vand.u32 31, %v2231_v1  ;;  %v5208_v58 = vshrl.u32 %v2231_v1, 5 }
 0x2a1   :  { %v1587_v11 = vpop.f32.mrf.mxu3  ;;  %v3688_v34 = vadd.s32 4294967169, %v2533_v54  ;;  %v5197_v35 = vsub.s32 32, %v5176_v44  ;;  %vm2254_vm10 = vcmp.lt.s32.totalorder %v5208_v58, 4 }
 0x2a2   :  { %v5129_v17 = vadd.f32 %v1587_v11, %v1511_v18  ;;  %v5170_v18 = vshrl.u32 %v1921_v27, 5 }
 0x2a3   :  { %v2539_v56 = vadd.s32 1, %v3688_v34  ;;  %v2246_v19 = vshrl.u32 %v6876_v31, %v5197_v35 }
 0x2a4   :  { %6870 = vst [vmem:[#allocation25_spill] sm:$0xff] %v5129_v17  ;;  %v1757_v2 = vand.u32 2139095040, %v5129_v17  ;;  %vm1944_vm6 = vcmp.lt.s32.totalorder %v5170_v18, 4 }
 0x2a5   :  { %vm2540_vm3 = vcmp.gt.s32.totalorder %v2539_v56, 0  ;;  %6879 = vst [vmem:[#allocation11_spill] sm:$0xff] %v5170_v18  ;;  %v5194_v7 = vsel %vm1944_vm6, %v5174_v29, 920167782  ;;  %v5204_v27 = vsel %vm1944_vm6, %v1940_v10, 1326507024 }
 0x2a6   :  { %v1758_v26 = vshrl.u32 %v1757_v2, 23  ;;  %v2541_v38 = vsel %vm2540_vm3, %v2539_v56, 0  ;;  %6883 = vst [vmem:[#allocation21_spill] sm:$0xff] %v5194_v7 }
 0x2a7   :  { %v2543_v55 = vand.u32 31, %v2541_v38  ;;  %6884 = vst [vmem:[#allocation5_spill] sm:$0xff] %v5204_v27  ;;  %v5224_v14 = vshrl.u32 %v2541_v38, 5 }
 0x2a8   :  { %v3673_v33 = vadd.s32 4294967169, %v1758_v26  ;;  %v2248_v26 = vshll.u32 %v6876_v31, %v5176_v44 }
 0x2a9   :  { %v1590_v28 = vpop.f32.mrf.mxu3  ;;  %v5185_v48 = vsub.s32 32, %v2543_v55  ;;  %v2555_v34 = vshll.u32 %v6820_v52, %v2543_v55  ;;  %v2558_v56 = vshll.u32 %v6876_v31, %v2543_v55  ;;  %v2546_v1 = vshll.u32 %v6821_v0, %v2543_v55 }
 0x2aa   :  { %v5140_v45 = vadd.f32 %v1590_v28, %v1516_v49  ;;  %v1764_v63 = vadd.s32 1, %v3673_v33  ;;  %v2249_v33 = vshrl.u32 %v6840_v5, %v5197_v35  ;;  %v2552_v8 = vshll.u32 %v6826_v51, %v2543_v55 }
 0x2ab   :  { %v2556_v59 = vshrl.u32 %v6876_v31, %v5185_v48  ;;  %v2559_v60 = vshrl.u32 %v6840_v5, %v5185_v48  ;;  %v2550_v15 = vshrl.u32 %v6826_v51, %v5185_v48  ;;  %v2553_v10 = vshrl.u32 %v6820_v52, %v5185_v48 }
 0x2ac   :  { %6873 = vst [vmem:[#allocation7_spill] sm:$0xff] %v5140_v45  ;;  %v2067_v61 = vand.u32 2139095040, %v5140_v45  ;;  %vm1765_vm4 = vcmp.gt.s32.totalorder %v1764_v63, 0  ;;  %vm2564_vm5 = vcmp.lt.s32.totalorder %v5224_v14, 4  ;;  %vm2561_vm12 = vcmp.lt.s32.totalorder %v5224_v14, 1 }
 0x2ad   :  { %v1766_v2 = vsel %vm1765_vm4, %v1764_v63, 0  ;;  %v2557_v16 = vor.u32 %v2556_v59, %v2555_v34  ;;  %v2560_v12 = vor.u32 %v2559_v60, %v2558_v56  ;;  %v2549_v63 = vshll.u32 %v6825_v23, %v2543_v55 }
 0x2ae   :  { %v2068_v4 = vshrl.u32 %v2067_v61, 23  ;;  %v6765_v61 = vand.u32 2147483647, %v5132_v30  ;;  %v2554_v60 = vor.u32 %v2553_v10, %v2552_v8  ;;  %vm2563_vm15 = vcmp.lt.s32.totalorder %v5224_v14, 3 }
 0x2af   :  { %v2570_v59 = vsel %vm2564_vm5, %v2557_v16, 920167782  ;;  %v2574_v55 = vsel %vm2564_vm5, %v2560_v12, 1326507024  ;;  %vm2562_vm14 = vcmp.lt.s32.totalorder %v5224_v14, 2  ;;  %v2239_v14 = vshll.u32 %v6825_v23, %v5176_v44 }
 0x2b0   :  { %v3679_v39 = vadd.s32 4294967169, %v2068_v4  ;;  %v2536_v22 = vand.u32 8388607, %v6765_v61 }
 0x2b1   :  { %v1593_v6 = vpop.f32.mrf.mxu3 }
 0x2b2   :  { %v5155_v47 = vadd.f32 %v1593_v6, %v1521_v37  ;;  %v5182_v37 = vsel %vm1634_vm1, %v5164_v42, 920167782  ;;  %v2074_v28 = vadd.s32 1, %v3679_v39  ;;  %v5239_v39 = vand.u32 31, %v1766_v2 }
 0x2b3   :  { %6881 = vst [vmem:[#allocation19_spill] sm:$0xff] %v5182_v37  ;;  %v2537_v34 = vor.u32 8388608, %v2536_v22 }
 0x2b4   :  { %v2377_v43 = vand.u32 2139095040, %v5155_v47  ;;  %vm2075_vm9 = vcmp.gt.s32.totalorder %v2074_v28, 0  ;;  %6885 = vst [vmem:[#allocation8_spill] sm:$0xff] %v5239_v39  ;;  %v5275_v12 = vsub.s32 32, %v5239_v39 }
 0x2b6   :  { %v2378_v49 = vshrl.u32 %v2377_v43, 23  ;;  %v2547_v43 = vshrl.u32 %v6825_v23, %v5185_v48  ;;  %6889 = vst [vmem:[#allocation6_spill] sm:$0xff] %v5275_v12 }
 0x2b8   :  { %v3685_v21 = vadd.s32 4294967169, %v2378_v49  ;;  %v2548_v49 = vor.u32 %v2547_v43, %v2546_v1 }
 0x2b9   :  { %v1596_v13 = vpop.f32.mrf.mxu3 }
 0x2ba   :  { %v2384_v11 = vadd.s32 1, %v3685_v21  ;;  %v5200_v41 = vadd.f32 %v1596_v13, %v5121_v9  ;;  %v2245_v9 = vshll.u32 %v6820_v52, %v5176_v44  ;;  %v5244_v13 = vor.u32 %v2550_v15, %v2549_v63 }
 0x2bc   :  { %vm2385_vm7 = vcmp.gt.s32.totalorder %v2384_v11, 0  ;;  %v2687_v54 = vand.u32 2139095040, %v5200_v41  ;;  %v5241_v21 = vor.u32 %v2246_v19, %v2245_v9  ;;  %v2573_v56 = vsel %vm2561_vm12, %v5244_v13, %v2554_v60 }
 0x2bd   :  { %v2386_v6 = vsel %vm2385_vm7, %v2384_v11, 0  ;;  %v5247_v11 = vsel %vm2075_vm9, %v2074_v28, 0  ;;  %v2569_v28 = vsel %vm2561_vm12, %v2548_v49, %v5244_v13 }
 0x2be   :  { %v2688_v57 = vshrl.u32 %v2687_v54, 23  ;;  %v5229_v46 = vand.u32 31, %v2386_v6  ;;  %6886 = vst [vmem:[#allocation10_spill] sm:$0xff] %v5247_v11  ;;  %v2250_v54 = vor.u32 %v2249_v33, %v2248_v26  ;;  %v5263_v19 = vand.u32 31, %v5247_v11 }
 0x2bf   :  { %v2571_v26 = vsel %vm2563_vm15, %v2554_v60, %v2570_v59  ;;  %v5272_v33 = vshrl.u32 %v1766_v2, 5 }
 0x2c0   :  { %v3691_v4 = vadd.s32 4294967169, %v2688_v57  ;;  %v5256_v9 = vsub.s32 32, %v5229_v46  ;;  %6887 = vst [vmem:[#allocation20_spill] sm:$0xff] %v5263_v19  ;;  %v2575_v57 = vsel %vm2563_vm15, %v2557_v16, %v2574_v55  ;;  %v2572_v43 = vsel %vm2562_vm14, %v2569_v28, %v2571_v26 }
 0x2c1   :  { %6888 = vst [vmem:[#allocation12_spill] sm:$0xff] %v5272_v33  ;;  %v2576_v22 = vsel %vm2562_vm14, %v2573_v56, %v2575_v57  ;;  %v5287_v16 = vshll.u32 %v2537_v34, 8  ;;  %v5291_v2 = vsel %vm2254_vm10, %v2250_v54, 1326507024  ;;  %v5296_v10 = vsub.s32 32, %v5263_v19 }
 0x2c2   :  { %v2694_v38 = vadd.s32 1, %v3691_v4  ;;  %v5280_v4 = vsel %vm2254_vm10, %v5241_v21, 920167782  ;;  %v2401_v63 = vshrl.u32 %v6876_v31, %v5256_v9  ;;  %v2580_v15 = vand.u32 65535, %v2576_v22 }
 0x2c3   :  { %v2581_v8 = vshrl.u32 %v2576_v22, 16  ;;  %v2579_v59 = vshrl.u32 %v5287_v16, 16  ;;  %v2603_v55 = vshrl.u32 %v2572_v43, 16  ;;  %v5302_v34 = vshll.u32 %v6820_v52, %v5263_v19 }
 0x2c4   :  { %vm2695_vm13 = vcmp.gt.s32.totalorder %v2694_v38, 0  ;;  %v2400_v54 = vshll.u32 %v6820_v52, %v5229_v46  ;;  %v2602_v26 = vand.u32 65535, %v2572_v43  ;;  %v5308_v56 = vshrl.u32 %v2386_v6, 5 }
 0x2c5   :  { %v2696_v1 = vsel %vm2695_vm13, %v2694_v38, 0  ;;  %v2578_v38 = vand.u32 65535, %v5287_v16  ;;  %6890 = vst [vmem:[#allocation9_spill] sm:$0xff] %v5302_v34  ;;  %v2545_v57 = vshrl.u32 %v6821_v0, %v5185_v48  ;;  %v2584_v61 = vmul.u32 %v2580_v15, %v2579_v59 }
 0x2c6   :  { %v5306_v28 = vand.u32 31, %v2696_v1  ;;  %v5312_v17 = vor.u32 %v2401_v63, %v2400_v54  ;;  %v5316_v33 = vshll.u32 %v6876_v31, %v5229_v46  ;;  %v5320_v39 = vshrl.u32 %v6840_v5, %v5256_v9 }
 0x2c7   :  { %v2583_v22 = vmul.u32 %v2581_v8, %v2578_v38  ;;  %v2605_v12 = vmul.u32 %v2603_v55, %v2578_v38  ;;  %v5322_v37 = vshrl.u32 %v2696_v1, 5  ;;  %v2565_v6 = vsel %vm2561_vm12, %v2545_v57, %v2548_v49 }
 0x2c8   :  { %v2582_v43 = vmul.u32 %v2580_v15, %v2578_v38  ;;  %v5327_v42 = vsub.s32 32, %v5306_v28  ;;  %v2604_v63 = vmul.u32 %v2602_v26, %v2578_v38  ;;  %v2606_v54 = vmul.u32 %v2602_v26, %v2579_v59 }
 0x2c9   :  { %v2586_v48 = vshll.u32 %v2583_v22, 16  ;;  %v2608_v3 = vshll.u32 %v2605_v12, 16  ;;  %v2585_v50 = vmul.u32 %v2581_v8, %v2579_v59  ;;  %v2588_v62 = vshll.u32 %v2584_v61, 16 }
 0x2ca   :  { %v2607_v45 = vmul.u32 %v2603_v55, %v2579_v59  ;;  %v2610_v1 = vshll.u32 %v2606_v54, 16  ;;  %v2566_v57 = vsel %vm2564_vm5, %v2554_v60, 2102212464  ;;  %v6783_v8 = vand.u32 2147483647, %v5200_v41 }
 0x2cb   :  { %vm2590_vm11 = vc.u32 %v2582_v43, %v2586_v48  ;;  %v2592_v36 = vadd.s32 %v2586_v48, %v2582_v43  ;;  %vm2612_vm2 = vc.u32 %v2604_v63, %v2608_v3  ;;  %v2614_v15 = vadd.s32 %v2608_v3, %v2604_v63 }
 0x2cc   :  { %v2591_v25 = vsel %vm2590_vm11, 1, %v6824_v24  ;;  %v2613_v49 = vsel %vm2612_vm2, 1, %v6824_v24  ;;  %v2711_v43 = vshrl.u32 %v6876_v31, %v5327_v42  ;;  %v2587_v48 = vshrl.u32 %v2583_v22, 16 }
 0x2cd   :  { %v2593_v7 = vadd.s32 %v2591_v25, %v2585_v50  ;;  %vm2594_vm3 = vc.u32 %v2592_v36, %v2588_v62  ;;  %v2615_v26 = vadd.s32 %v2613_v49, %v2607_v45  ;;  %vm2616_vm4 = vc.u32 %v2614_v15, %v2610_v1 }
 0x2ce   :  { %v2595_v38 = vsel %vm2594_vm3, 1, %v6824_v24  ;;  %v2714_v25 = vshrl.u32 %v6840_v5, %v5327_v42  ;;  %v2589_v36 = vshrl.u32 %v2584_v61, 16  ;;  %v2617_v62 = vsel %vm2616_vm4, 1, %v6824_v24 }
 0x2cf   :  { %v2597_v59 = vadd.s32 %v2595_v38, %v2593_v7  ;;  %v2691_v50 = vand.u32 8388607, %v6783_v8  ;;  %v2609_v60 = vshrl.u32 %v2605_v12, 16  ;;  %v2619_v45 = vadd.s32 %v2617_v62, %v2615_v26 }
 0x2d0   :  { %v6784_v55 = vand.u32 2147483647, %v5126_v53  ;;  %v2710_v63 = vshll.u32 %v6820_v52, %v5306_v28  ;;  %v2713_v7 = vshll.u32 %v6876_v31, %v5306_v28  ;;  %v2567_v61 = vsel %vm2563_vm15, %v5244_v13, %v2566_v57 }
 0x2d1   :  { %v2598_v3 = vadd.s32 %v2597_v59, %v2587_v48  ;;  %v2692_v22 = vor.u32 8388608, %v2691_v50  ;;  %vm2409_vm7 = vcmp.lt.s32.totalorder %v5308_v56, 4  ;;  %v2611_v38 = vshrl.u32 %v2606_v54, 16 }
 0x2d2   :  { %v2620_v48 = vadd.s32 %v2619_v45, %v2609_v60  ;;  %v2405_v12 = vor.u32 %v5320_v39, %v5316_v33  ;;  %v2712_v26 = vor.u32 %v2711_v43, %v2710_v63  ;;  %v2715_v59 = vor.u32 %v2714_v25, %v2713_v7 }
 0x2d3   :  { %v2599_v49 = vadd.s32 %v2598_v3, %v2589_v36  ;;  %v2618_v62 = vadd.s32 %v2614_v15, %v2610_v1  ;;  %v5356_v8 = vsel %vm2409_vm7, %v5312_v17, 920167782  ;;  %v2568_v13 = vsel %vm2562_vm14, %v2565_v6, %v2567_v61 }
 0x2d4   :  { %v2621_v57 = vadd.s32 %v2620_v48, %v2611_v38  ;;  %v2226_v36 = vand.u32 8388607, %v6784_v55  ;;  %vm2719_vm9 = vcmp.lt.s32.totalorder %v5322_v37, 4  ;;  %v5363_v54 = vshll.u32 %v2692_v22, 8 }
 0x2d5   :  { %vm2624_vm5 = vc.u32 %v2599_v49, %v2618_v62  ;;  %v2236_v39 = vshll.u32 %v6821_v0, %v5176_v44  ;;  %v2237_v1 = vshrl.u32 %v6825_v23, %v5197_v35  ;;  %v2240_v6 = vshrl.u32 %v6826_v51, %v5197_v35 }
 0x2d6   :  { %v2625_v33 = vadd.s32 1, %v2621_v57  ;;  %v5375_v15 = vsel %vm2409_vm7, %v2405_v12, 1326507024  ;;  %v2725_v43 = vsel %vm2719_vm9, %v2712_v26, 920167782  ;;  %v2622_v50 = vmul.u32 %v5287_v16, %v2568_v13 }
 0x2d7   :  { %v2729_v25 = vsel %vm2719_vm9, %v2715_v59, 1326507024  ;;  %v5382_v3 = vadd.s32 %v2618_v62, %v2599_v49  ;;  %v2227_v45 = vor.u32 8388608, %v2226_v36  ;;  %v5386_v63 = vshrl.u32 %v6821_v0, %v5197_v35 }
 0x2d8   :  { %v2626_v60 = vsel %vm2624_vm5, %v2625_v33, %v2621_v57  ;;  %v2733_v61 = vand.u32 65535, %v5363_v54  ;;  %v2242_v22 = vshll.u32 %v6826_v51, %v5176_v44  ;;  %v2243_v38 = vshrl.u32 %v6820_v52, %v5197_v35 }
 0x2d9   :  { %v2627_v7 = vadd.s32 %v2626_v60, %v2622_v50  ;;  %v2701_v16 = vshll.u32 %v6821_v0, %v5306_v28  ;;  %v5396_v49 = vshrl.u32 %v5363_v54, 16  ;;  %v5398_v48 = vor.u32 %v2237_v1, %v2236_v39 }
 0x2da   :  { %v5400_v12 = vor.u32 %v2240_v6, %v2239_v14  ;;  %v2702_v62 = vshrl.u32 %v6825_v23, %v5327_v42  ;;  %v2704_v44 = vshll.u32 %v6825_v23, %v5306_v28  ;;  %v2705_v35 = vshrl.u32 %v6826_v51, %v5327_v42 }
 0x2db   :  { %v2628_v59 = vadd.s32 536870912, %v2627_v7  ;;  %v2707_v13 = vshll.u32 %v6826_v51, %v5306_v28  ;;  %v2708_v57 = vshrl.u32 %v6820_v52, %v5327_v42  ;;  %vm2251_vm12 = vcmp.lt.s32.totalorder %v5208_v58, 1 }
 0x2dc   :  { %vm2252_vm13 = vcmp.lt.s32.totalorder %v5208_v58, 2  ;;  %v2703_v39 = vor.u32 %v2702_v62, %v2701_v16  ;;  %v2706_v33 = vor.u32 %v2705_v35, %v2704_v44  ;;  %v5414_v1 = vor.u32 %v2243_v38, %v2242_v22 }
 0x2dd   :  { %v2629_v36 = vshrl.u32 %v2628_v59, 30  ;;  %vm2531_vm15 = vcmp.lt.s32.totalorder %v5132_v30, 0  ;;  %v2709_v14 = vor.u32 %v2708_v57, %v2707_v13  ;;  %vm2716_vm14 = vcmp.lt.s32.totalorder %v5322_v37, 1 }
 0x2de   :  { %vm2253_vm11 = vcmp.lt.s32.totalorder %v5208_v58, 3  ;;  %v2259_v28 = vsel %vm2251_vm12, %v5398_v48, %v5400_v12  ;;  %vm2718_vm2 = vcmp.lt.s32.totalorder %v5322_v37, 3  ;;  %v2724_v50 = vsel %vm2716_vm14, %v2703_v39, %v2706_v33 }
 0x2df   :  { %v2630_v6 = vshll.u32 %v2629_v36, 30  ;;  %v2265_v60 = vsel %vm2253_vm11, %v5241_v21, %v5291_v2  ;;  %vm2717_vm3 = vcmp.lt.s32.totalorder %v5322_v37, 2  ;;  %v2726_v22 = vsel %vm2718_vm2, %v2709_v14, %v2725_v43 }
 0x2e0   :  { %v2728_v38 = vsel %vm2716_vm14, %v2706_v33, %v2709_v14  ;;  %v2730_v16 = vsel %vm2718_vm2, %v2712_v26, %v2729_v25  ;;  %v2727_v62 = vsel %vm2717_vm3, %v2724_v50, %v2726_v22  ;;  %v2261_v21 = vsel %vm2253_vm11, %v5414_v1, %v5280_v4 }
 0x2e1   :  { %v2631_v59 = vsub.s32 %v2627_v7, %v2630_v6  ;;  %v5443_v2 = vshll.u32 %v2227_v45, 8  ;;  %v2653_v44 = vsub.s32 4, %v2629_v36  ;;  %v2700_v43 = vshrl.u32 %v6821_v0, %v5327_v42 }
 0x2e2   :  { %v2731_v35 = vsel %vm2717_vm3, %v2728_v38, %v2730_v16  ;;  %v2263_v26 = vsel %vm2251_vm12, %v5400_v12, %v5414_v1  ;;  %v6891_v25 = vand.u32 2147483647, %v5132_v30  ;;  %v2721_v42 = vsel %vm2719_vm9, %v2709_v14, 2102212464 }
 0x2e3   :  { %vm2632_vm5 = vcmp.lt.s32.totalorder %v2631_v59, 0  ;;  %v2633_v4 = vsub.s32 0, %v2631_v59  ;;  %v2735_v45 = vand.u32 65535, %v2731_v35  ;;  %v2736_v13 = vshrl.u32 %v2731_v35, 16 }
 0x2e4   :  { %vm5455_vm4 = vcmp.le.f32.partialorder %v6891_v25, 0.7853982  ;;  %v2757_v57 = vand.u32 65535, %v2727_v62  ;;  %v2758_v6 = vshrl.u32 %v2727_v62, 16  ;;  %v5463_v50 = vsel %vm2252_vm13, %v2259_v28, %v2261_v21 }
 0x2e5   :  { %v2634_v22 = vsel %vm2632_vm5, %v2633_v4, %v2631_v59  ;;  %v2738_v38 = vmul.u32 %v2736_v13, %v2733_v61  ;;  %v2739_v16 = vmul.u32 %v2735_v45, %v5396_v49  ;;  %v5468_v25 = vsel %vm2252_vm13, %v2263_v26, %v2265_v60 }
 0x2e6   :  { %v2635_v55 = vclz %v2634_v22  ;;  %v2720_v35 = vsel %vm2716_vm14, %v2700_v43, %v2703_v39  ;;  %v2760_v29 = vmul.u32 %v2758_v6, %v2733_v61  ;;  %v5473_v14 = vand.u32 65535, %v5443_v2 }
 0x2e7   :  { %v5477_v28 = vsel %vm2531_vm15, %v2653_v44, %v2629_v36  ;;  %v2722_v62 = vsel %vm2718_vm2, %v2706_v33, %v2721_v42  ;;  %v2737_v21 = vmul.u32 %v2735_v45, %v2733_v61  ;;  %v2741_v4 = vshll.u32 %v2738_v38, 16 }
 0x2e8   :  { %v3689_v27 = vadd.s32 4294967294, %v2635_v55  ;;  %v2759_v60 = vmul.u32 %v2757_v57, %v2733_v61  ;;  %v2761_v26 = vmul.u32 %v2757_v57, %v5396_v49  ;;  %v2763_v22 = vshll.u32 %v2760_v29, 16 }
 0x2e9   :  { %v2740_v39 = vmul.u32 %v2736_v13, %v5396_v49  ;;  %v2743_v43 = vshll.u32 %v2739_v16, 16  ;;  %vm2745_vm9 = vc.u32 %v2737_v21, %v2741_v4  ;;  %v2747_v18 = vadd.s32 %v2741_v4, %v2737_v21 }
 0x2ea   :  { %vm3690_vm14 = vcmp.lt.s32.totalorder %v3689_v27, 0  ;;  %v2746_v34 = vsel %vm2745_vm9, 1, %v6824_v24  ;;  %v2762_v36 = vmul.u32 %v2758_v6, %v5396_v49  ;;  %vm2767_vm5 = vc.u32 %v2759_v60, %v2763_v22 }
 0x2eb   :  { %v2638_v44 = vsel %vm3690_vm14, 0, %v3689_v27  ;;  %v2748_v33 = vadd.s32 %v2746_v34, %v2740_v39  ;;  %vm2749_vm2 = vc.u32 %v2747_v18, %v2743_v43  ;;  %v2768_v55 = vsel %vm2767_vm5, 1, %v6824_v24 }
 0x2ec   :  { %v2639_v61 = vsub.s32 32, %v2638_v44  ;;  %v2643_v45 = vsub.s32 4294967266, %v2638_v44  ;;  %v2765_v42 = vshll.u32 %v2761_v26, 16  ;;  %v2750_v57 = vsel %vm2749_vm2, 1, %v6824_v24 }
 0x2ed   :  { %v2769_v21 = vadd.s32 %v2763_v22, %v2759_v60  ;;  %v2770_v4 = vadd.s32 %v2768_v55, %v2762_v36  ;;  %v2270_v19 = vand.u32 65535, %v5468_v25  ;;  %v2640_v49 = vshll.u32 %v2631_v59, %v2638_v44 }
 0x2ee   :  { %v2641_v27 = vshrl.u32 %v5382_v3, %v2639_v61  ;;  %v2644_v34 = vadd.s32 127, %v2643_v45  ;;  %v2742_v18 = vshrl.u32 %v2738_v38, 16  ;;  %v2744_v6 = vshrl.u32 %v2739_v16, 16 }
 0x2ef   :  { %v2752_v39 = vadd.s32 %v2750_v57, %v2748_v33  ;;  %vm2771_vm9 = vc.u32 %v2769_v21, %v2765_v42  ;;  %v2269_v43 = vshrl.u32 %v5443_v2, 16  ;;  %v2271_v40 = vshrl.u32 %v5468_v25, 16 }
 0x2f0   :  { %v2642_v11 = vor.u32 %v2641_v27, %v2640_v49  ;;  %v2645_v20 = vshll.u32 %v2644_v34, 23  ;;  %v2772_v13 = vsel %vm2771_vm9, 1, %v6824_v24  ;;  %v2764_v22 = vshrl.u32 %v2760_v29, 16 }
 0x2f1   :  { %v2753_v60 = vadd.s32 %v2752_v39, %v2742_v18  ;;  %v2774_v36 = vadd.s32 %v2772_v13, %v2770_v4  ;;  %v5495_v55 = vmul.u32 %v2270_v19, %v2269_v43  ;;  %v2723_v3 = vsel %vm2717_vm3, %v2720_v35, %v2722_v62 }
 0x2f2   :  { %v2646_v59 = vor.u32 4788187, %v2645_v20  ;;  %v2766_v38 = vshrl.u32 %v2761_v26, 16  ;;  %v2273_v16 = vmul.u32 %v2271_v40, %v5473_v14  ;;  %v5502_v33 = vadd.s32 %v2769_v21, %v2765_v42 }
 0x2f3   :  { %v5500_v44 = vadd.s32 %v2753_v60, %v2744_v6  ;;  %v2775_v61 = vadd.s32 %v2774_v36, %v2764_v22  ;;  %v2272_v45 = vmul.u32 %v2270_v19, %v5473_v14  ;;  %v2649_v57 = vcvt.s32.f32 %v2642_v11 }
 0x2f4   :  { %v2647_v25 = vand.u32 2147483647, %v2646_v59  ;;  %v2276_v29 = vshll.u32 %v2273_v16, 16  ;;  %v2292_v13 = vand.u32 65535, %v5463_v50  ;;  %v2275_v20 = vmul.u32 %v2271_v40, %v2269_v43 }
 0x2f5   :  { %v2776_v4 = vadd.s32 %v2775_v61, %v2766_v38  ;;  %v2278_v37 = vshll.u32 %v5495_v55, 16  ;;  %v2293_v35 = vshrl.u32 %v5463_v50, 16  ;;  %vm2779_vm3 = vc.u32 %v5500_v44, %v5502_v33 }
 0x2f6   :  { %v2650_v62 = vmul.f32 %v2649_v57, %v2647_v25  ;;  %vm2280_vm14 = vc.u32 %v2272_v45, %v2276_v29  ;;  %v2282_v26 = vadd.s32 %v2276_v29, %v2272_v45  ;;  %v2296_v21 = vmul.u32 %v2292_v13, %v2269_v43 }
 0x2f7   :  { %v2780_v42 = vadd.s32 1, %v2776_v4  ;;  %v2281_v19 = vsel %vm2280_vm14, 1, %v6824_v24  ;;  %v2295_v11 = vmul.u32 %v2293_v35, %v5473_v14  ;;  %v2777_v27 = vmul.u32 %v5363_v54, %v2723_v3 }
 0x2f8   :  { %v2651_v49 = vxor.u32 2147483648, %v2650_v62  ;;  %v2283_v40 = vadd.s32 %v2281_v19, %v2275_v20  ;;  %vm2284_vm5 = vc.u32 %v2282_v26, %v2278_v37  ;;  %v2294_v18 = vmul.u32 %v2292_v13, %v5473_v14 }
 0x2f9   :  { %v2781_v34 = vsel %vm2779_vm3, %v2780_v42, %v2776_v4  ;;  %v2285_v50 = vsel %vm2284_vm5, 1, %v6824_v24  ;;  %v2298_v6 = vshll.u32 %v2295_v11, 16  ;;  %v2297_v36 = vmul.u32 %v2293_v35, %v2269_v43 }
 0x2fa   :  { %v2652_v39 = vsel %vm2531_vm15, %v2651_v49, %v2650_v62  ;;  %v2782_v60 = vadd.s32 %v2781_v34, %v2777_v27  ;;  %v2287_v22 = vadd.s32 %v2285_v50, %v2283_v40  ;;  %v2300_v54 = vshll.u32 %v2296_v21, 16 }
 0x2fb   :  { %v5520_v59 = vsel %vm5455_vm4, %v5132_v30, %v2652_v39  ;;  %vm2302_vm2 = vc.u32 %v2294_v18, %v2298_v6  ;;  %v2304_v3 = vadd.s32 %v2298_v6, %v2294_v18  ;;  %v2256_v14 = vsel %vm2254_vm10, %v5414_v1, 2102212464 }
 0x2fc   :  { %v2657_v38 = vmul.f32 %v5520_v59, %v5520_v59  ;;  %v2783_v61 = vadd.s32 536870912, %v2782_v60  ;;  %v2303_v45 = vsel %vm2302_vm2, 1, %v6824_v24  ;;  %v6894_v43 = vsel %vm5455_vm4, 0, %v5477_v28 }
 0x2fd   :  { %v2673_v25 = vadd.s32 3, %v6894_v43  ;;  %v2277_v57 = vshrl.u32 %v2273_v16, 16  ;;  %v2305_v29 = vadd.s32 %v2303_v45, %v2297_v36  ;;  %vm2306_vm15 = vc.u32 %v2304_v3, %v2300_v54 }
 0x2fe   :  { %v5534_v13 = vshrl.u32 %v6876_v31, %v5296_v10  ;;  %v2658_v4 = vmul.f32 -0.001358992, %v2657_v38  ;;  %v2665_v20 = vmul.f32 -0.00019511016, %v2657_v38  ;;  %v2784_v37 = vshrl.u32 %v2783_v61, 30 }
 0x2ff   :  { %v2255_v1 = vsel %vm2251_vm12, %v5386_v63, %v5398_v48  ;;  %v2288_v35 = vadd.s32 %v2287_v22, %v2277_v57  ;;  %v2307_v7 = vsel %vm2306_vm15, 1, %v6824_v24  ;;  %v2374_v28 = vand.u32 2147483647, %v5155_v47 }
 0x300   :  { %v2659_v16 = vadd.f32 0.041655596, %v2658_v4  ;;  %v2666_v62 = vadd.f32 0.008332121, %v2665_v20  ;;  %v2785_v26 = vshll.u32 %v2784_v37, 30  ;;  %v2257_v42 = vsel %vm2253_vm11, %v5400_v12, %v2256_v14 }
 0x301   :  { %v5545_v19 = vand.u32 3, %v2673_v25  ;;  %v2279_v49 = vshrl.u32 %v5495_v55, 16  ;;  %v2299_v27 = vshrl.u32 %v2295_v11, 16  ;;  %v2309_v40 = vadd.s32 %v2307_v7, %v2305_v29 }
 0x302   :  { %v2660_v34 = vmul.f32 %v2659_v16, %v2657_v38  ;;  %v2667_v63 = vmul.f32 %v2666_v62, %v2657_v38  ;;  %vm2686_vm10 = vcmp.lt.s32.totalorder %v5200_v41, 0  ;;  %v5549_v48 = vsub.s32 %v2782_v60, %v2785_v26 }
 0x303   :  { %v2258_v50 = vsel %vm2252_vm13, %v2255_v1, %v2257_v42  ;;  %v5553_v18 = vadd.s32 %v2288_v35, %v2279_v49  ;;  %v2301_v6 = vshrl.u32 %v2296_v21, 16  ;;  %v2310_v39 = vadd.s32 %v2309_v40, %v2299_v27 }
 0x304   :  { %v2661_v12 = vadd.f32 -0.4999988, %v2660_v34  ;;  %v2668_v22 = vadd.f32 -0.16666654, %v2667_v63  ;;  %vm2787_vm12 = vcmp.lt.s32.totalorder %v5549_v48, 0  ;;  %v2788_v55 = vsub.s32 0, %v5549_v48 }
 0x305   :  { %vm2676_vm11 = vcmp.eq.s32.totalorder %v5545_v19, 0  ;;  %vm2679_vm4 = vcmp.eq.s32.totalorder %v5545_v19, 2  ;;  %v2778_v11 = vadd.s32 %v5502_v33, %v5500_v44  ;;  %v5561_v60 = vadd.s32 %v2304_v3, %v2300_v54 }
 0x306   :  { %v2311_v58 = vadd.s32 %v2310_v39, %v2301_v6  ;;  %v5565_v21 = vand.u32 8388607, %v2374_v28  ;;  %v2662_v36 = vmul.f32 %v2661_v12, %v2657_v38  ;;  %v2669_v61 = vmul.f32 %v2668_v22, %v2657_v38 }
 0x307   :  { %vm2675_vm13 = vcmp.lt.s32.totalorder %v5545_v19, 2  ;;  %v2789_v14 = vsel %vm2787_vm12, %v2788_v55, %v5549_v48  ;;  %v2312_v45 = vmul.u32 %v5443_v2, %v2258_v50  ;;  %vm2672_vm9 = vweird.f32 %v5132_v30 }
 0x308   :  { %v6895_v43 = vand.u32 2147483647, %v5200_v41  ;;  %v2790_v33 = vclz %v2789_v14  ;;  %v2808_v54 = vsub.s32 4, %v2784_v37  ;;  %vm2314_vm14 = vc.u32 %v5553_v18, %v5561_v60 }
 0x309   :  { %v2315_v3 = vadd.s32 1, %v2311_v58  ;;  %v2663_v38 = vadd.f32 1.0, %v2662_v36  ;;  %v2670_v25 = vadd.f32 1.0, %v2669_v61  ;;  %v2392_v57 = vshrl.u32 %v6825_v23, %v5256_v9 }
 0x30a   :  { %vm5573_vm3 = vcmp.le.f32.partialorder %v6895_v43, 0.7853982  ;;  %v2395_v2 = vshrl.u32 %v6826_v51, %v5256_v9  ;;  %v3692_v29 = vadd.s32 4294967294, %v2790_v33  ;;  %v2382_v4 = vor.u32 8388608, %v5565_v21 }
 0x30b   :  { %v2391_v20 = vshll.u32 %v6821_v0, %v5229_v46  ;;  %v2394_v1 = vshll.u32 %v6825_v23, %v5229_v46  ;;  %v2671_v35 = vmul.f32 %v2670_v25, %v5520_v59  ;;  %v2680_v7 = vxor.u32 2147483648, %v2663_v38 }
 0x30c   :  { %v2316_v16 = vsel %vm2314_vm14, %v2315_v3, %v2311_v58  ;;  %v2398_v62 = vshrl.u32 %v6820_v52, %v5256_v9  ;;  %vm3693_vm5 = vcmp.lt.s32.totalorder %v3692_v29, 0  ;;  %v2809_v26 = vsel %vm2686_vm10, %v2808_v54, %v2784_v37 }
 0x30d   :  { %v2317_v42 = vadd.s32 %v2316_v16, %v2312_v45  ;;  %v2397_v49 = vshll.u32 %v6826_v51, %v5229_v46  ;;  %v2677_v27 = vxor.u32 2147483648, %v2671_v35  ;;  %v2793_v40 = vsel %vm3693_vm5, 0, %v3692_v29 }
 0x30e   :  { %v2393_v34 = vor.u32 %v2392_v57, %v2391_v20  ;;  %v2396_v63 = vor.u32 %v2395_v2, %v2394_v1  ;;  %v2794_v50 = vsub.s32 32, %v2793_v40  ;;  %v2798_v6 = vsub.s32 4294967266, %v2793_v40 }
 0x30f   :  { %v2318_v59 = vadd.s32 536870912, %v2317_v42  ;;  %v2399_v39 = vor.u32 %v2398_v62, %v2397_v49  ;;  %v2678_v12 = vsel %vm2676_vm11, %v2663_v38, %v2677_v27  ;;  %v2681_v22 = vsel %vm2679_vm4, %v2680_v7, %v2671_v35 }
 0x310   :  { %v2795_v37 = vshll.u32 %v5549_v48, %v2793_v40  ;;  %vm2406_vm2 = vcmp.lt.s32.totalorder %v5308_v56, 1  ;;  %v2682_v46 = vsel %vm2675_vm13, %v2678_v12, %v2681_v22  ;;  %v2796_v55 = vshrl.u32 %v2778_v11, %v2794_v50 }
 0x311   :  { %v2799_v58 = vadd.s32 127, %v2798_v6  ;;  %v5603_v21 = vshrl.u32 %v2318_v59, 30  ;;  %v2683_v36 = vsel %vm2672_vm9, nan, %v2682_v46  ;;  %v2811_v61 = vsel %vm5573_vm3, 0, %v2809_v26 }
 0x312   :  { %vm2408_vm15 = vcmp.lt.s32.totalorder %v5308_v56, 3  ;;  %v2414_v48 = vsel %vm2406_vm2, %v2393_v34, %v2396_v63  ;;  %2871 = vmatpush.msrb.mxu2 %v2683_v36  ;;  %v2797_v14 = vor.u32 %v2796_v55, %v2795_v37  ;;  %v5618_v30 = vshrl.u32 %v6840_v5, %v5296_v10 }
 0x313   :  { %v2800_v45 = vshll.u32 %v2799_v58, 23  ;;  %v2320_v19 = vshll.u32 %v5603_v21, 30  ;;  %v2416_v11 = vsel %vm2408_vm15, %v2399_v39, %v5356_v8  ;;  %v2390_v43 = vshrl.u32 %v6821_v0, %v5256_v9 }
 0x314   :  { %v2418_v33 = vsel %vm2406_vm2, %v2396_v63, %v2399_v39  ;;  %v2420_v54 = vsel %vm2408_vm15, %v5312_v17, %v5375_v15  ;;  %v2828_v38 = vadd.s32 3, %v2811_v61  ;;  %vm2407_vm12 = vcmp.lt.s32.totalorder %v5308_v56, 2 }
 0x315   :  { %v2801_v3 = vor.u32 4788187, %v2800_v45  ;;  %v2321_v25 = vsub.s32 %v2317_v42, %v2320_v19  ;;  %v2411_v8 = vsel %vm2409_vm7, %v2399_v39, 2102212464  ;;  %v5633_v57 = vsel %vm2407_vm12, %v2414_v48, %v2416_v11 }
 0x316   :  { %v2421_v9 = vsel %vm2407_vm12, %v2418_v33, %v2420_v54  ;;  %v5637_v2 = vshll.u32 %v2382_v4, 8  ;;  %v2804_v20 = vcvt.s32.f32 %v2797_v14  ;;  %vm2221_vm11 = vcmp.lt.s32.totalorder %v5126_v53, 0 }
 0x317   :  { %v2802_v29 = vand.u32 2147483647, %v2801_v3  ;;  %vm2322_vm4 = vcmp.lt.s32.totalorder %v2321_v25, 0  ;;  %v2323_v17 = vsub.s32 0, %v2321_v25  ;;  %v2425_v35 = vand.u32 65535, %v2421_v9 }
 0x318   :  { %v2423_v15 = vand.u32 65535, %v5637_v2  ;;  %v2424_v1 = vshrl.u32 %v5637_v2, 16  ;;  %v2426_v7 = vshrl.u32 %v2421_v9, 16  ;;  %v2410_v26 = vsel %vm2406_vm2, %v2390_v43, %v2393_v34 }
 0x319   :  { %v2805_v16 = vmul.f32 %v2804_v20, %v2802_v29  ;;  %v2324_v62 = vsel %vm2322_vm4, %v2323_v17, %v2321_v25  ;;  %v2412_v4 = vsel %vm2408_vm15, %v2396_v63, %v2411_v8  ;;  %v2313_v42 = vadd.s32 %v5561_v60, %v5553_v18 }
 0x31a   :  { %v2325_v49 = vclz %v2324_v62  ;;  %v2428_v27 = vmul.u32 %v2426_v7, %v2423_v15  ;;  %v5648_v40 = vmul.u32 %v2425_v35, %v2424_v1  ;;  %v5650_v6 = vand.u32 3, %v2828_v38 }
 0x31b   :  { %v2806_v50 = vxor.u32 2147483648, %v2805_v16  ;;  %v2343_v59 = vsub.s32 4, %v5603_v21  ;;  %v2448_v39 = vshrl.u32 %v5633_v57, 16  ;;  %v5656_v34 = vsel %vm2407_vm12, %v2410_v26, %v2412_v4 }
 0x31c   :  { %v3683_v12 = vadd.s32 4294967294, %v2325_v49  ;;  %v2427_v63 = vmul.u32 %v2425_v35, %v2423_v15  ;;  %v2431_v22 = vshll.u32 %v2428_v27, 16  ;;  %v2430_v60 = vmul.u32 %v2426_v7, %v2424_v1 }
 0x31d   :  { %v2807_v18 = vsel %vm2686_vm10, %v2806_v50, %v2805_v16  ;;  %v2433_v37 = vshll.u32 %v5648_v40, 16  ;;  %v2447_v46 = vand.u32 65535, %v5633_v57  ;;  %v2450_v48 = vmul.u32 %v2448_v39, %v2423_v15 }
 0x31e   :  { %v5665_v55 = vsel %vm5573_vm3, %v5200_v41, %v2807_v18  ;;  %vm3684_vm7 = vcmp.lt.s32.totalorder %v3683_v12, 0  ;;  %vm2435_vm13 = vc.u32 %v2427_v63, %v2431_v22  ;;  %v2437_v56 = vadd.s32 %v2431_v22, %v2427_v63 }
 0x31f   :  { %v2812_v58 = vmul.f32 %v5665_v55, %v5665_v55  ;;  %v2328_v36 = vsel %vm3684_vm7, 0, %v3683_v12  ;;  %v2436_v61 = vsel %vm2435_vm13, 1, %v6824_v24  ;;  %v6898_v14 = vand.u32 2147483647, %v5126_v53 }
 0x320   :  { %v2329_v19 = vsub.s32 32, %v2328_v36  ;;  %v2333_v44 = vsub.s32 4294967266, %v2328_v36  ;;  %v2344_v11 = vsel %vm2221_vm11, %v2343_v59, %v5603_v21  ;;  %v2438_v43 = vadd.s32 %v2436_v61, %v2430_v60 }
 0x321   :  { %vm5672_vm10 = vcmp.le.f32.partialorder %v6898_v14, 0.7853982  ;;  %v2813_v33 = vmul.f32 -0.001358992, %v2812_v58  ;;  %v2820_v54 = vmul.f32 -0.00019511016, %v2812_v58  ;;  %vm2439_vm9 = vc.u32 %v2437_v56, %v2433_v37 }
 0x322   :  { %v2451_v3 = vmul.u32 %v2447_v46, %v2424_v1  ;;  %v2330_v38 = vshll.u32 %v2321_v25, %v2328_v36  ;;  %v2331_v8 = vshrl.u32 %v2313_v42, %v2329_v19  ;;  %v2334_v57 = vadd.s32 127, %v2333_v44 }
 0x323   :  { %v2440_v9 = vsel %vm2439_vm9, 1, %v6824_v24  ;;  %v2814_v29 = vadd.f32 0.041655596, %v2813_v33  ;;  %v2821_v20 = vadd.f32 0.008332121, %v2820_v54  ;;  %v2453_v35 = vshll.u32 %v2450_v48, 16 }
 0x324   :  { %v2442_v17 = vadd.s32 %v2440_v9, %v2438_v43  ;;  %v2332_v7 = vor.u32 %v2331_v8, %v2330_v38  ;;  %v2335_v16 = vshll.u32 %v2334_v57, 23  ;;  %v2432_v62 = vshrl.u32 %v2428_v27, 16 }
 0x325   :  { %v2449_v26 = vmul.u32 %v2447_v46, %v2423_v15  ;;  %v2815_v4 = vmul.f32 %v2814_v29, %v2812_v58  ;;  %v2822_v21 = vmul.f32 %v2821_v20, %v2812_v58  ;;  %v2452_v49 = vmul.u32 %v2448_v39, %v2424_v1  ;;  %v6901_v20 = vld [vmem:[#allocation23_spill] sm:$0xff] }
 0x326   :  { %v2455_v50 = vshll.u32 %v2451_v3, 16  ;;  %v2336_v59 = vor.u32 4788187, %v2335_v16  ;;  %v2443_v12 = vadd.s32 %v2442_v17, %v2432_v62  ;;  %v2434_v22 = vshrl.u32 %v5648_v40, 16 }
 0x327   :  { %vm2457_vm3 = vc.u32 %v2449_v26, %v2453_v35  ;;  %v2459_v25 = vadd.s32 %v2453_v35, %v2449_v26  ;;  %v2816_v42 = vadd.f32 -0.4999988, %v2815_v4  ;;  %v2823_v63 = vadd.f32 -0.16666654, %v2822_v21  ;;  %v6902_v35 = vld [vmem:[#allocation22_spill] sm:$0xff] }
 0x328   :  { %v2458_v18 = vsel %vm2457_vm3, 1, %v6824_v24  ;;  %vm2831_vm14 = vcmp.eq.s32.totalorder %v5650_v6, 0  ;;  %v2337_v60 = vand.u32 2147483647, %v2336_v59  ;;  %v2339_v37 = vcvt.s32.f32 %v2332_v7 }
 0x329   :  { %v2460_v27 = vadd.s32 %v2458_v18, %v2452_v49  ;;  %vm2461_vm5 = vc.u32 %v2459_v25, %v2455_v50  ;;  %v2817_v15 = vmul.f32 %v2816_v42, %v2812_v58  ;;  %v2824_v46 = vmul.f32 %v2823_v63, %v2812_v58  ;;  %v6903_v18 = vld [vmem:[#allocation10_spill] sm:$0xff] }
 0x32a   :  { %vm2830_vm2 = vcmp.lt.s32.totalorder %v5650_v6, 2  ;;  %v2346_v1 = vsel %vm5672_vm10, 0, %v2344_v11  ;;  %v2462_v39 = vsel %vm2461_vm5, 1, %v6824_v24  ;;  %vm2827_vm15 = vweird.f32 %v5200_v41 }
 0x32b   :  { %v2340_v40 = vmul.f32 %v2339_v37, %v2337_v60  ;;  %v5688_v56 = vadd.s32 %v2443_v12, %v2434_v22  ;;  %v2454_v36 = vshrl.u32 %v2450_v48, 16  ;;  %v2464_v61 = vadd.s32 %v2462_v39, %v2460_v27  ;;  %v6904_v37 = vld [vmem:[#allocation20_spill] sm:$0xff] }
 0x32c   :  { %v2818_v14 = vadd.f32 1.0, %v2817_v15  ;;  %v2825_v19 = vadd.f32 1.0, %v2824_v46  ;;  %vm2834_vm12 = vcmp.eq.s32.totalorder %v5650_v6, 2  ;;  %v1909_v58 = vand.u32 2147483647, %v5123_v32  ;;  %v6905_v46 = vld [vmem:[#allocation9_spill] sm:$0xff] }
 0x32d   :  { %v2341_v44 = vxor.u32 2147483648, %v2340_v40  ;;  %v2456_v43 = vshrl.u32 %v2451_v3, 16  ;;  %v5692_v33 = vadd.s32 %v2459_v25, %v2455_v50  ;;  %v2465_v11 = vadd.s32 %v2464_v61, %v2454_v36 }
 0x32e   :  { %v2826_v54 = vmul.f32 %v2825_v19, %v5665_v55  ;;  %v2835_v38 = vxor.u32 2147483648, %v2818_v14  ;;  %v2363_v8 = vadd.s32 3, %v2346_v1  ;;  %v2467_v57 = vmul.u32 %v5637_v2, %v5656_v34  ;;  %v6906_v19 = vld [vmem:[#allocation11_spill] sm:$0xff] }
 0x32f   :  { %v2342_v48 = vsel %vm2221_vm11, %v2341_v44, %v2340_v40  ;;  %v2466_v9 = vadd.s32 %v2465_v11, %v2456_v43  ;;  %vm2469_vm4 = vc.u32 %v5688_v56, %v5692_v33  ;;  %v1916_v3 = vand.u32 8388607, %v1909_v58 }
 0x330   :  { %v2832_v29 = vxor.u32 2147483648, %v2826_v54  ;;  %v2345_v55 = vsel %vm5672_vm10, %v5126_v53, %v2342_v48  ;;  %v1926_v17 = vshll.u32 %v6821_v0, %v6901_v20  ;;  %v1927_v2 = vshrl.u32 %v6825_v23, %v6902_v35 }
 0x331   :  { %v2836_v34 = vsel %vm2834_vm12, %v2835_v38, %v2826_v54  ;;  %v2347_v7 = vmul.f32 %v2345_v55, %v2345_v55  ;;  %v2470_v16 = vadd.s32 1, %v2466_v9  ;;  %v1929_v62 = vshll.u32 %v6825_v23, %v6901_v20  ;;  %v6907_v38 = vld [vmem:[#allocation5_spill] sm:$0xff] }
 0x332   :  { %v2833_v26 = vsel %vm2831_vm14, %v2818_v14, %v2832_v29  ;;  %v1930_v45 = vshrl.u32 %v6826_v51, %v6902_v35  ;;  %v1932_v4 = vshll.u32 %v6826_v51, %v6901_v20  ;;  %v1933_v21 = vshrl.u32 %v6820_v52, %v6902_v35 }
 0x333   :  { %v2837_v49 = vsel %vm2830_vm2, %v2833_v26, %v2836_v34  ;;  %v2348_v50 = vmul.f32 -0.001358992, %v2347_v7  ;;  %v2355_v59 = vmul.f32 -0.00019511016, %v2347_v7  ;;  %v2471_v12 = vsel %vm2469_vm4, %v2470_v16, %v2466_v9 }
 0x334   :  { %v2838_v25 = vsel %vm2827_vm15, nan, %v2837_v49  ;;  %v2472_v42 = vadd.s32 %v2471_v12, %v2467_v57  ;;  %v5729_v63 = vor.u32 %v1930_v45, %v1929_v62  ;;  %v1934_v22 = vor.u32 %v1933_v21, %v1932_v4  ;;  %v6908_v57 = vld [vmem:[#allocation16_spill] sm:$0xff] }
 0x335   :  { %v5732_v60 = vshrl.u32 %v6903_v18, 5  ;;  %v5736_v6 = vshll.u32 %v6876_v31, %v6904_v37  ;;  %2894 = vmatpush.msrb.mxu3 %v2838_v25  ;;  %v2349_v27 = vadd.f32 0.041655596, %v2348_v50  ;;  %v2356_v15 = vadd.f32 0.008332121, %v2355_v59 }
 0x336   :  { %v5740_v1 = vor.u32 %v5534_v13, %v6905_v46  ;;  %v2473_v41 = vadd.s32 536870912, %v2472_v42  ;;  %v1917_v39 = vor.u32 8388608, %v1916_v3  ;;  %v1928_v40 = vor.u32 %v1927_v2, %v1926_v17  ;;  %v6909_v2 = vld [vmem:[#allocation21_spill] sm:$0xff] }
 0x337   :  { %v2095_v36 = vor.u32 %v5618_v30, %v5736_v6  ;;  %v2350_v61 = vmul.f32 %v2349_v27, %v2347_v7  ;;  %v2357_v14 = vmul.f32 %v2356_v15, %v2347_v7  ;;  %vm1941_vm11 = vcmp.lt.s32.totalorder %v6906_v19, 1 }
 0x338   :  { %v2364_v44 = vand.u32 3, %v2363_v8  ;;  %v5745_v43 = vshrl.u32 %v2473_v41, 30  ;;  %vm1943_vm7 = vcmp.lt.s32.totalorder %v6906_v19, 3  ;;  %v1953_v13 = vsel %vm1941_vm11, %v5729_v63, %v1934_v22 }
 0x339   :  { %v2351_v11 = vadd.f32 -0.4999988, %v2350_v61  ;;  %v2358_v54 = vadd.f32 -0.16666654, %v2357_v14  ;;  %vm1942_vm13 = vcmp.lt.s32.totalorder %v6906_v19, 2  ;;  %v1955_v48 = vsel %vm1943_vm7, %v6908_v57, %v6907_v38 }
 0x33a   :  { %v2475_v9 = vshll.u32 %v5745_v43, 30  ;;  %v1949_v8 = vsel %vm1941_vm11, %v1928_v40, %v5729_v63  ;;  %v1956_v3 = vsel %vm1942_vm13, %v1953_v13, %v1955_v48  ;;  %v5762_v29 = vshll.u32 %v1917_v39, 8 }
 0x33b   :  { %v2352_v20 = vmul.f32 %v2351_v11, %v2347_v7  ;;  %v2359_v17 = vmul.f32 %v2358_v54, %v2347_v7  ;;  %v1951_v34 = vsel %vm1943_vm7, %v1934_v22, %v6909_v2  ;;  %v1961_v16 = vshrl.u32 %v1956_v3, 16 }
 0x33c   :  { %vm2362_vm10 = vweird.f32 %v5126_v53  ;;  %vm2365_vm9 = vcmp.lt.s32.totalorder %v2364_v44, 2  ;;  %v2476_v62 = vsub.s32 %v2472_v42, %v2475_v9  ;;  %v1960_v26 = vand.u32 65535, %v1956_v3 }
 0x33d   :  { %v2353_v45 = vadd.f32 1.0, %v2352_v20  ;;  %v2360_v4 = vadd.f32 1.0, %v2359_v17  ;;  %vm2366_vm3 = vcmp.eq.s32.totalorder %v2364_v44, 0  ;;  %v1958_v21 = vand.u32 65535, %v5762_v29 }
 0x33e   :  { %vm2477_vm14 = vcmp.lt.s32.totalorder %v2476_v62, 0  ;;  %v2478_v49 = vsub.s32 0, %v2476_v62  ;;  %v1952_v7 = vsel %vm1942_vm13, %v1949_v8, %v1951_v34  ;;  %v1959_v50 = vshrl.u32 %v5762_v29, 16 }
 0x33f   :  { %v2361_v59 = vmul.f32 %v2360_v4, %v2345_v55  ;;  %vm2369_vm5 = vcmp.eq.s32.totalorder %v2364_v44, 2  ;;  %v2370_v12 = vxor.u32 2147483648, %v2353_v45  ;;  %v1963_v25 = vmul.u32 %v1961_v16, %v1958_v21 }
 0x340   :  { %v2468_v42 = vadd.s32 %v5692_v33, %v5688_v56  ;;  %v2479_v18 = vsel %vm2477_vm14, %v2478_v49, %v2476_v62  ;;  %v1925_v27 = vshrl.u32 %v6821_v0, %v6902_v35  ;;  %v1964_v15 = vmul.u32 %v1960_v26, %v1959_v50 }
 0x341   :  { %v2367_v46 = vxor.u32 2147483648, %v2361_v59  ;;  %v2480_v41 = vclz %v2479_v18  ;;  %v1966_v39 = vshll.u32 %v1963_v25, 16  ;;  %v1983_v61 = vshrl.u32 %v1952_v7, 16 }
 0x342   :  { %v1945_v14 = vsel %vm1941_vm11, %v1925_v27, %v1928_v40  ;;  %v1946_v55 = vsel %vm1944_vm6, %v1934_v22, 2102212464  ;;  %v1962_v13 = vmul.u32 %v1960_v26, %v1958_v21  ;;  %v1982_v11 = vand.u32 65535, %v1952_v7 }
 0x343   :  { %v2368_v54 = vsel %vm2366_vm3, %v2353_v45, %v2367_v46  ;;  %v2371_v56 = vsel %vm2369_vm5, %v2370_v12, %v2361_v59  ;;  %v3686_v33 = vadd.s32 4294967294, %v2480_v41  ;;  %v1965_v38 = vmul.u32 %v1961_v16, %v1959_v50 }
 0x344   :  { %v2372_v35 = vsel %vm2365_vm9, %v2368_v54, %v2371_v56  ;;  %v1968_v57 = vshll.u32 %v1964_v15, 16  ;;  %vm1970_vm2 = vc.u32 %v1962_v13, %v1966_v39  ;;  %v1972_v48 = vadd.s32 %v1966_v39, %v1962_v13 }
 0x345   :  { %v2373_v9 = vsel %vm2362_vm10, nan, %v2372_v35  ;;  %vm3687_vm15 = vcmp.lt.s32.totalorder %v3686_v33, 0  ;;  %v1971_v40 = vsel %vm1970_vm2, 1, %v6824_v24  ;;  %v1985_v22 = vmul.u32 %v1983_v61, %v1958_v21 }
 0x346   :  { %2872 = vmatpush.msrb.mxu2 %v2373_v9  ;;  %v2483_v8 = vsel %vm3687_vm15, 0, %v3686_v33  ;;  %v1973_v3 = vadd.s32 %v1971_v40, %v1965_v38  ;;  %vm1974_vm6 = vc.u32 %v1972_v48, %v1968_v57  ;;  %v1986_v20 = vmul.u32 %v1982_v11, %v1959_v50 }
 0x347   :  { %v2484_v17 = vsub.s32 32, %v2483_v8  ;;  %v2488_v2 = vsub.s32 4294967266, %v2483_v8  ;;  %v1947_v44 = vsel %vm1943_vm7, %v5729_v63, %v1946_v55  ;;  %v1975_v34 = vsel %vm1974_vm6, 1, %v6824_v24 }
 0x348   :  { %v2498_v53 = vsub.s32 4, %v5745_v43  ;;  %v1977_v16 = vadd.s32 %v1975_v34, %v1973_v3  ;;  %v1984_v26 = vmul.u32 %v1982_v11, %v1958_v21  ;;  %v1988_v45 = vshll.u32 %v1985_v22, 16 }
 0x349   :  { %v2485_v4 = vshll.u32 %v2476_v62, %v2483_v8  ;;  %v2486_v49 = vshrl.u32 %v2468_v42, %v2484_v17  ;;  %v2489_v7 = vadd.s32 127, %v2488_v2  ;;  %v1967_v59 = vshrl.u32 %v1963_v25, 16 }
 0x34a   :  { %vm2099_vm12 = vcmp.lt.s32.totalorder %v5732_v60, 4  ;;  %v1987_v12 = vmul.u32 %v1983_v61, %v1959_v50  ;;  %v1990_v18 = vshll.u32 %v1986_v20, 16  ;;  %vm1992_vm4 = vc.u32 %v1984_v26, %v1988_v45  ;;  %v6912_v61 = vld [vmem:[#allocation7_spill] sm:$0xff] }
 0x34b   :  { %v1994_v27 = vadd.s32 %v1988_v45, %v1984_v26  ;;  %v2487_v46 = vor.u32 %v2486_v49, %v2485_v4  ;;  %v2490_v41 = vshll.u32 %v2489_v7, 23  ;;  %v1978_v63 = vadd.s32 %v1977_v16, %v1967_v59 }
 0x34c   :  { %v1993_v39 = vsel %vm1992_vm4, 1, %v6824_v24  ;;  %vm5795_vm11 = vcmp.le.f32.partialorder %v2374_v28, 0.7853982  ;;  %vm2376_vm7 = vcmp.lt.s32.totalorder %v5155_v47, 0  ;;  %v1969_v50 = vshrl.u32 %v1964_v15, 16 }
 0x34d   :  { %v1995_v62 = vadd.s32 %v1993_v39, %v1987_v12  ;;  %vm1996_vm10 = vc.u32 %v1994_v27, %v1990_v18  ;;  %v2491_v25 = vor.u32 4788187, %v2490_v41  ;;  %v2064_v55 = vand.u32 2147483647, %v6912_v61 }
 0x34e   :  { %v1997_v42 = vsel %vm1996_vm10, 1, %v6824_v24  ;;  %v2499_v13 = vsel %vm2376_vm7, %v2498_v53, %v5745_v43  ;;  %v1948_v28 = vsel %vm1942_vm13, %v1945_v14, %v1947_v44  ;;  %v1989_v11 = vshrl.u32 %v1985_v22, 16 }
 0x34f   :  { %v1999_v54 = vadd.s32 %v1997_v42, %v1995_v62  ;;  %v2492_v56 = vand.u32 2147483647, %v2491_v25  ;;  %v2494_v33 = vcvt.s32.f32 %v2487_v46  ;;  %v5807_v38 = vadd.s32 %v1978_v63, %v1969_v50 }
 0x350   :  { %v2071_v15 = vand.u32 8388607, %v2064_v55  ;;  %v1991_v35 = vshrl.u32 %v1986_v20, 16  ;;  %v5811_v57 = vadd.s32 %v1994_v27, %v1990_v18  ;;  %v2082_v9 = vshrl.u32 %v6825_v23, %v5296_v10 }
 0x351   :  { %v2000_v48 = vadd.s32 %v1999_v54, %v1989_v11  ;;  %v2495_v43 = vmul.f32 %v2494_v33, %v2492_v56  ;;  %v2081_v19 = vshll.u32 %v6821_v0, %v6904_v37  ;;  %v2084_v14 = vshll.u32 %v6825_v23, %v6904_v37 }
 0x352   :  { %v2085_v40 = vshrl.u32 %v6826_v51, %v5296_v10  ;;  %v2072_v8 = vor.u32 8388608, %v2071_v15  ;;  %v2087_v3 = vshll.u32 %v6826_v51, %v6904_v37  ;;  %v2088_v20 = vshrl.u32 %v6820_v52, %v5296_v10 }
 0x353   :  { %v2001_v22 = vadd.s32 %v2000_v48, %v1991_v35  ;;  %v2109_v17 = vsel %vm2099_vm12, %v2095_v36, 1326507024  ;;  %v2496_v2 = vxor.u32 2147483648, %v2495_v43  ;;  %v2501_v44 = vsel %vm5795_vm11, 0, %v2499_v13 }
 0x354   :  { %vm2004_vm13 = vc.u32 %v5807_v38, %v5811_v57  ;;  %v2083_v53 = vor.u32 %v2082_v9, %v2081_v19  ;;  %v2086_v16 = vor.u32 %v2085_v40, %v2084_v14  ;;  %v2089_v37 = vor.u32 %v2088_v20, %v2087_v3 }
 0x355   :  { %v2005_v34 = vadd.s32 1, %v2001_v22  ;;  %v2105_v26 = vsel %vm2099_vm12, %v5740_v1, 920167782  ;;  %v2497_v30 = vsel %vm2376_vm7, %v2496_v2, %v2495_v43  ;;  %v2002_v6 = vmul.u32 %v5762_v29, %v1948_v28 }
 0x356   :  { %vm2098_vm9 = vcmp.lt.s32.totalorder %v5732_v60, 3  ;;  %v5844_v36 = vsel %vm5795_vm11, %v5155_v47, %v2497_v30  ;;  %v5849_v49 = vshll.u32 %v2072_v8, 8  ;;  %v2518_v59 = vadd.s32 3, %v2501_v44 }
 0x357   :  { %v2006_v45 = vsel %vm2004_vm13, %v2005_v34, %v2001_v22  ;;  %v2110_v4 = vsel %vm2098_vm9, %v5740_v1, %v2109_v17  ;;  %v2502_v7 = vmul.f32 %v5844_v36, %v5844_v36  ;;  %vm2096_vm3 = vcmp.lt.s32.totalorder %v5732_v60, 1 }
 0x358   :  { %v2007_v12 = vadd.s32 %v2006_v45, %v2002_v6  ;;  %vm2097_vm14 = vcmp.lt.s32.totalorder %v5732_v60, 2  ;;  %v2104_v29 = vsel %vm2096_vm3, %v2083_v53, %v2086_v16  ;;  %v2106_v18 = vsel %vm2098_vm9, %v2089_v37, %v2105_v26 }
 0x359   :  { %v2108_v1 = vsel %vm2096_vm3, %v2086_v16, %v2089_v37  ;;  %v2503_v27 = vmul.f32 -0.001358992, %v2502_v7  ;;  %v2510_v46 = vmul.f32 -0.00019511016, %v2502_v7  ;;  %v2113_v39 = vand.u32 65535, %v5849_v49 }
 0x35a   :  { %v2008_v41 = vadd.s32 536870912, %v2007_v12  ;;  %v2111_v63 = vsel %vm2097_vm14, %v2108_v1, %v2110_v4  ;;  %v5865_v21 = vshrl.u32 %v5849_v49, 16  ;;  %v2107_v28 = vsel %vm2097_vm14, %v2104_v29, %v2106_v18 }
 0x35b   :  { %v2115_v62 = vand.u32 65535, %v2111_v63  ;;  %v2116_v25 = vshrl.u32 %v2111_v63, 16  ;;  %v2504_v50 = vadd.f32 0.041655596, %v2503_v27  ;;  %v2511_v42 = vadd.f32 0.008332121, %v2510_v46 }
 0x35c   :  { %v2009_v13 = vshrl.u32 %v2008_v41, 30  ;;  %v2080_v11 = vshrl.u32 %v6821_v0, %v5296_v10  ;;  %v2101_v54 = vsel %vm2099_vm12, %v2089_v37, 2102212464  ;;  %v2519_v48 = vand.u32 3, %v2518_v59 }
 0x35d   :  { %v2118_v56 = vmul.u32 %v2116_v25, %v2113_v39  ;;  %v5874_v33 = vmul.u32 %v2115_v62, %v5865_v21  ;;  %v2505_v15 = vmul.f32 %v2504_v50, %v2502_v7  ;;  %v2512_v35 = vmul.f32 %v2511_v42, %v2502_v7 }
 0x35e   :  { %v2010_v9 = vshll.u32 %v2009_v13, 30  ;;  %v2100_v43 = vsel %vm2096_vm3, %v2080_v11, %v2083_v53  ;;  %v2117_v19 = vmul.u32 %v2115_v62, %v2113_v39  ;;  %v2138_v40 = vshrl.u32 %v2107_v28, 16 }
 0x35f   :  { %v2121_v14 = vshll.u32 %v2118_v56, 16  ;;  %v2506_v22 = vadd.f32 -0.4999988, %v2505_v15  ;;  %v2513_v8 = vadd.f32 -0.16666654, %v2512_v35  ;;  %vm1911_vm5 = vcmp.lt.s32.totalorder %v5123_v32, 0 }
 0x360   :  { %v5879_v10 = vsub.s32 %v2007_v12, %v2010_v9  ;;  %v2102_v3 = vsel %vm2098_vm9, %v2086_v16, %v2101_v54  ;;  %v2120_v20 = vmul.u32 %v2116_v25, %v5865_v21  ;;  %v2123_v17 = vshll.u32 %v5874_v33, 16 }
 0x361   :  { %vm2125_vm2 = vc.u32 %v2117_v19, %v2121_v14  ;;  %v2127_v2 = vadd.s32 %v2121_v14, %v2117_v19  ;;  %v2507_v44 = vmul.f32 %v2506_v22, %v2502_v7  ;;  %v2514_v34 = vmul.f32 %v2513_v8, %v2502_v7  ;;  %v6915_v19 = vld [vmem:[#allocation24_spill] sm:$0xff] }
 0x362   :  { %vm2520_vm15 = vcmp.lt.s32.totalorder %v2519_v48, 2  ;;  %vm2012_vm6 = vcmp.lt.s32.totalorder %v5879_v10, 0  ;;  %v2013_v53 = vsub.s32 0, %v5879_v10  ;;  %vm2517_vm12 = vweird.f32 %v5155_v47 }
 0x363   :  { %v2126_v37 = vsel %vm2125_vm2, 1, %v6824_v24  ;;  %vm2129_vm4 = vc.u32 %v2127_v2, %v2123_v17  ;;  %v2137_v26 = vand.u32 65535, %v2107_v28  ;;  %v2140_v16 = vmul.u32 %v2138_v40, %v2113_v39 }
 0x364   :  { %v2508_v30 = vadd.f32 1.0, %v2507_v44  ;;  %v2515_v6 = vadd.f32 1.0, %v2514_v34  ;;  %v2014_v45 = vsel %vm2012_vm6, %v2013_v53, %v5879_v10  ;;  %v2128_v4 = vadd.s32 %v2126_v37, %v2120_v20 }
 0x365   :  { %vm2521_vm11 = vcmp.eq.s32.totalorder %v2519_v48, 0  ;;  %vm5892_vm7 = vcmp.le.f32.partialorder %v1909_v58, 0.7853982  ;;  %v2015_v59 = vclz %v2014_v45  ;;  %v2033_v12 = vsub.s32 4, %v2009_v13  ;;  %v6917_v45 = vld [vmem:[#allocation14_spill] sm:$0xff] }
 0x366   :  { %v2130_v29 = vsel %vm2129_vm4, 1, %v6824_v24  ;;  %v2516_v18 = vmul.f32 %v2515_v6, %v5844_v36  ;;  %vm2524_vm10 = vcmp.eq.s32.totalorder %v2519_v48, 2  ;;  %v2525_v1 = vxor.u32 2147483648, %v2508_v30 }
 0x367   :  { %v2132_v27 = vadd.s32 %v2130_v29, %v2128_v4  ;;  %v2003_v46 = vadd.s32 %v5811_v57, %v5807_v38  ;;  %v3677_v41 = vadd.s32 4294967294, %v2015_v59  ;;  %v5902_v63 = vsel %vm2097_vm14, %v2100_v43, %v2102_v3 }
 0x368   :  { %v2141_v58 = vmul.u32 %v2137_v26, %v5865_v21  ;;  %v2522_v62 = vxor.u32 2147483648, %v2516_v18  ;;  %v2122_v25 = vshrl.u32 %v2118_v56, 16  ;;  %v2139_v50 = vmul.u32 %v2137_v26, %v2113_v39 }
 0x369   :  { %v2143_v42 = vshll.u32 %v2140_v16, 16  ;;  %v2526_v28 = vsel %vm2524_vm10, %v2525_v1, %v2516_v18  ;;  %vm3678_vm13 = vcmp.lt.s32.totalorder %v3677_v41, 0  ;;  %v2034_v36 = vsel %vm1911_vm5, %v2033_v12, %v2009_v13 }
 0x36a   :  { %v2142_v11 = vmul.u32 %v2138_v40, %v5865_v21  ;;  %v2523_v38 = vsel %vm2521_vm11, %v2508_v30, %v2522_v62  ;;  %v2018_v57 = vsel %vm3678_vm13, 0, %v3677_v41  ;;  %v2133_v54 = vadd.s32 %v2132_v27, %v2122_v25  ;;  %v6916_v30 = vld [vmem:[#allocation13_spill] sm:$0xff] }
 0x36b   :  { %vm2147_vm9 = vc.u32 %v2139_v50, %v2143_v42  ;;  %v2527_v60 = vsel %vm2520_vm15, %v2523_v38, %v2526_v28  ;;  %v2019_v15 = vsub.s32 32, %v2018_v57  ;;  %v2023_v35 = vsub.s32 4294967266, %v2018_v57 }
 0x36c   :  { %v2145_v9 = vshll.u32 %v2141_v58, 16  ;;  %v2528_v39 = vsel %vm2517_vm12, nan, %v2527_v60  ;;  %v2148_v56 = vsel %vm2147_vm9, 1, %v6824_v24  ;;  %v2149_v43 = vadd.s32 %v2143_v42, %v2139_v50  ;;  %v6919_v50 = vld [vmem:[#allocation17_spill] sm:$0xff]  ;;  %v6920_v42 = vld [vmem:[#allocation18_spill] sm:$0xff]  ;;  %v6921_v60 = vld [vmem:[#allocation19_spill] sm:$0xff] }
 0x36d   :  { %v1599_v13 = vand.u32 2147483647, %v6915_v19  ;;  %2895 = vmatpush.msrb.mxu3 %v2528_v39  ;;  %v2020_v21 = vshll.u32 %v5879_v10, %v2018_v57  ;;  %v2021_v14 = vshrl.u32 %v2003_v46, %v2019_v15  ;;  %v2024_v40 = vadd.s32 127, %v2023_v35 }
 0x36e   :  { %v2150_v22 = vadd.s32 %v2148_v56, %v2142_v11  ;;  %v2036_v48 = vsel %vm5892_vm7, 0, %v2034_v36  ;;  %v2124_v8 = vshrl.u32 %v5874_v33, 16  ;;  %vm2151_vm3 = vc.u32 %v2149_v43, %v2145_v9 }
 0x36f   :  { %v1606_v47 = vand.u32 8388607, %v1599_v13  ;;  %v2022_v3 = vor.u32 %v2021_v14, %v2020_v21  ;;  %v2025_v20 = vshll.u32 %v2024_v40, 23  ;;  %v2144_v17 = vshrl.u32 %v2140_v16, 16 }
 0x370   :  { %v2152_v2 = vsel %vm2151_vm3, 1, %v6824_v24  ;;  %v2134_v44 = vadd.s32 %v2133_v54, %v2124_v8  ;;  %v2146_v34 = vshrl.u32 %v2141_v58, 16  ;;  %v2153_v10 = vadd.s32 %v2149_v43, %v2145_v9  ;;  %v6918_v58 = vld [vmem:[#allocation15_spill] sm:$0xff] }
 0x371   :  { %v2154_v53 = vadd.s32 %v2152_v2, %v2150_v22  ;;  %v2026_v37 = vor.u32 4788187, %v2025_v20  ;;  %v1607_v26 = vor.u32 8388608, %v1606_v47  ;;  %v1616_v6 = vshll.u32 %v6821_v0, %v6916_v30 }
 0x372   :  { %v1617_v33 = vshrl.u32 %v6825_v23, %v6917_v45  ;;  %v2029_v4 = vcvt.s32.f32 %v2022_v3  ;;  %v1619_v12 = vshll.u32 %v6825_v23, %v6916_v30  ;;  %v1620_v16 = vshrl.u32 %v6826_v51, %v6917_v45  ;;  %v6923_v3 = vld [vmem:[#allocation8_spill] sm:$0xff] }
 0x373   :  { %v2155_v59 = vadd.s32 %v2154_v53, %v2144_v17  ;;  %v2027_v29 = vand.u32 2147483647, %v2026_v37  ;;  %v1622_v1 = vshll.u32 %v6826_v51, %v6916_v30  ;;  %v1623_v27 = vshrl.u32 %v6820_v52, %v6917_v45 }
 0x374   :  { %v5929_v18 = vor.u32 %v1617_v33, %v1616_v6  ;;  %vm2159_vm14 = vc.u32 %v2134_v44, %v2153_v10  ;;  %v5935_v41 = vor.u32 %v1620_v16, %v1619_v12  ;;  %vm1633_vm2 = vcmp.lt.s32.totalorder %v6918_v58, 3 }
 0x375   :  { %v2156_v46 = vadd.s32 %v2155_v59, %v2146_v34  ;;  %v2030_v62 = vmul.f32 %v2029_v4, %v2027_v29  ;;  %v1624_v25 = vor.u32 %v1623_v27, %v1622_v1  ;;  %vm1631_vm15 = vcmp.lt.s32.totalorder %v6918_v58, 1 }
 0x376   :  { %v1645_v28 = vsel %vm1633_vm2, %v6920_v42, %v6919_v50  ;;  %v2157_v36 = vmul.u32 %v5849_v49, %v5902_v63  ;;  %v1639_v38 = vsel %vm1631_vm15, %v5929_v18, %v5935_v41  ;;  %v5949_v57 = vshll.u32 %v1607_v26, 8  ;;  %v6922_v49 = vld [vmem:[#allocation6_spill] sm:$0xff] }
 0x377   :  { %v2160_v11 = vadd.s32 1, %v2156_v46  ;;  %v2031_v54 = vxor.u32 2147483648, %v2030_v62  ;;  %vm1632_vm6 = vcmp.lt.s32.totalorder %v6918_v58, 2  ;;  %v1641_v15 = vsel %vm1633_vm2, %v1624_v25, %v6921_v60 }
 0x378   :  { %v1643_v35 = vsel %vm1631_vm15, %v5935_v41, %v1624_v25  ;;  %v5960_v63 = vshrl.u32 %v6840_v5, %v6922_v49  ;;  %v2053_v9 = vadd.s32 3, %v2036_v48  ;;  %v5969_v14 = vsel %vm1632_vm6, %v1639_v38, %v1641_v15 }
 0x379   :  { %v2161_v39 = vsel %vm2159_vm14, %v2160_v11, %v2156_v46  ;;  %v1646_v56 = vsel %vm1632_vm6, %v1643_v35, %v1645_v28  ;;  %v2032_v43 = vsel %vm1911_vm5, %v2031_v54, %v2030_v62  ;;  %v1648_v40 = vand.u32 65535, %v5949_v57 }
 0x37a   :  { %v2162_v21 = vadd.s32 %v2161_v39, %v2157_v36  ;;  %v5975_v22 = vsel %vm5892_vm7, %v5123_v32, %v2032_v43  ;;  %v5978_v48 = vshrl.u32 %v5949_v57, 16  ;;  %v1650_v8 = vand.u32 65535, %v1646_v56 }
 0x37b   :  { %v1651_v47 = vshrl.u32 %v1646_v56, 16  ;;  %v5982_v20 = vshll.u32 %v6820_v52, %v6923_v3  ;;  %v5986_v17 = vshll.u32 %v6876_v31, %v6923_v3  ;;  %v2037_v2 = vmul.f32 %v5975_v22, %v5975_v22 }
 0x37c   :  { %v2163_v34 = vadd.s32 536870912, %v2162_v21  ;;  %v5992_v7 = vshrl.u32 %v6876_v31, %v6922_v49  ;;  %v5995_v37 = vmul.u32 %v1650_v8, %v5978_v48  ;;  %v1673_v26 = vshrl.u32 %v5969_v14, 16 }
 0x37d   :  { %v1653_v53 = vmul.u32 %v1651_v47, %v1648_v40  ;;  %v1785_v30 = vor.u32 %v5960_v63, %v5986_v17  ;;  %v2038_v6 = vmul.f32 -0.001358992, %v2037_v2  ;;  %v2045_v33 = vmul.f32 -0.00019511016, %v2037_v2 }
 0x37e   :  { %v6000_v4 = vshrl.u32 %v2163_v34, 30  ;;  %v6002_v59 = vand.u32 3, %v2053_v9  ;;  %v1615_v12 = vshrl.u32 %v6821_v0, %v6917_v45  ;;  %v1652_v16 = vmul.u32 %v1650_v8, %v1648_v40 }
 0x37f   :  { %v1656_v29 = vshll.u32 %v1653_v53, 16  ;;  %v2039_v1 = vadd.f32 0.041655596, %v2038_v6  ;;  %v2046_v27 = vadd.f32 0.008332121, %v2045_v33  ;;  %v6006_v46 = vadd.s32 %v2153_v10, %v2134_v44 }
 0x380   :  { %v2165_v62 = vshll.u32 %v6000_v4, 30  ;;  %v1658_v50 = vshll.u32 %v5995_v37, 16  ;;  %v6010_v28 = vmul.u32 %v1673_v26, %v1648_v40  ;;  %v1672_v45 = vand.u32 65535, %v5969_v14 }
 0x381   :  { %vm1660_vm5 = vc.u32 %v1652_v16, %v1656_v29  ;;  %v1662_v42 = vadd.s32 %v1656_v29, %v1652_v16  ;;  %v2040_v36 = vmul.f32 %v2039_v1, %v2037_v2  ;;  %v2047_v11 = vmul.f32 %v2046_v27, %v2037_v2 }
 0x382   :  { %v6012_v38 = vsub.s32 %v2162_v21, %v2165_v62  ;;  %vm2059_vm12 = vcmp.eq.s32.totalorder %v6002_v59, 2  ;;  %v1636_v44 = vsel %vm1634_vm1, %v1624_v25, 2102212464  ;;  %v1655_v10 = vmul.u32 %v1651_v47, %v5978_v48 }
 0x383   :  { %v1661_v54 = vsel %vm1660_vm5, 1, %v6824_v24  ;;  %vm1664_vm4 = vc.u32 %v1662_v42, %v1658_v50  ;;  %v2041_v60 = vadd.f32 -0.4999988, %v2040_v36  ;;  %v2048_v15 = vadd.f32 -0.16666654, %v2047_v11 }
 0x384   :  { %vm2167_vm11 = vcmp.lt.s32.totalorder %v6012_v38, 0  ;;  %v2168_v35 = vsub.s32 0, %v6012_v38  ;;  %vm2056_vm7 = vcmp.eq.s32.totalorder %v6002_v59, 0  ;;  %v1635_v9 = vsel %vm1631_vm15, %v1615_v12, %v5929_v18 }
 0x385   :  { %v1663_v39 = vadd.s32 %v1661_v54, %v1655_v10  ;;  %v1665_v25 = vsel %vm1664_vm4, 1, %v6824_v24  ;;  %v1678_v56 = vshll.u32 %v6010_v28, 16  ;;  %v2042_v43 = vmul.f32 %v2041_v60, %v2037_v2 }
 0x386   :  { %v2049_v21 = vmul.f32 %v2048_v15, %v2037_v2  ;;  %vm2055_vm1 = vcmp.lt.s32.totalorder %v6002_v59, 2  ;;  %v2169_v14 = vsel %vm2167_vm11, %v2168_v35, %v6012_v38  ;;  %v1674_v8 = vmul.u32 %v1672_v45, %v1648_v40  ;;  %v6924_v2 = vld [vmem:[#allocation12_spill] sm:$0xff]  ;;  %v6925_v35 = vld [vmem:[#allocation25_spill] sm:$0xff] }
 0x387   :  { %vm2052_vm10 = vweird.f32 %v5123_v32  ;;  %v2170_v47 = vclz %v2169_v14  ;;  %v1637_v34 = vsel %vm1633_vm2, %v5935_v41, %v1636_v44  ;;  %v1667_v18 = vadd.s32 %v1665_v25, %v1663_v39 }
 0x388   :  { %v1676_v6 = vmul.u32 %v1672_v45, %v5978_v48  ;;  %v2043_v33 = vadd.f32 1.0, %v2042_v43  ;;  %v2050_v12 = vadd.f32 1.0, %v2049_v21  ;;  %v1657_v16 = vshrl.u32 %v1653_v53, 16 }
 0x389   :  { %vm1682_vm13 = vc.u32 %v1674_v8, %v1678_v56  ;;  %vm1789_vm9 = vcmp.lt.s32.totalorder %v6924_v2, 4  ;;  %v3680_v29 = vadd.s32 4294967294, %v2170_v47  ;;  %v2188_v1 = vsub.s32 4, %v6000_v4 }
 0x38a   :  { %v1659_v40 = vshrl.u32 %v5995_v37, 16  ;;  %v1677_v27 = vmul.u32 %v1673_v26, %v5978_v48  ;;  %v2051_v62 = vmul.f32 %v2050_v12, %v5975_v22  ;;  %v2060_v50 = vxor.u32 2147483648, %v2043_v33 }
 0x38b   :  { %v1668_v41 = vadd.s32 %v1667_v18, %v1657_v16  ;;  %v1683_v42 = vsel %vm1682_vm13, 1, %v6824_v24  ;;  %vm3681_vm3 = vcmp.lt.s32.totalorder %v3680_v29, 0  ;;  %v1680_v36 = vshll.u32 %v1676_v6, 16 }
 0x38c   :  { %v1684_v11 = vadd.s32 %v1678_v56, %v1674_v8  ;;  %v1685_v53 = vadd.s32 %v1683_v42, %v1677_v27  ;;  %v2057_v45 = vxor.u32 2147483648, %v2051_v62  ;;  %v2061_v44 = vsel %vm2059_vm12, %v2060_v50, %v2051_v62 }
 0x38d   :  { %v2173_v10 = vsel %vm3681_vm3, 0, %v3680_v29  ;;  %v1679_v54 = vshrl.u32 %v6010_v28, 16  ;;  %v6044_v48 = vadd.s32 %v1668_v41, %v1659_v40  ;;  %v1754_v39 = vand.u32 2147483647, %v6925_v35 }
 0x38e   :  { %v2174_v37 = vsub.s32 32, %v2173_v10  ;;  %v2178_v60 = vsub.s32 4294967266, %v2173_v10  ;;  %vm1686_vm14 = vc.u32 %v1684_v11, %v1680_v36  ;;  %v2058_v22 = vsel %vm2056_vm7, %v2043_v33, %v2057_v45 }
 0x38f   :  { %v2175_v26 = vshll.u32 %v6012_v38, %v2173_v10  ;;  %v1687_v15 = vsel %vm1686_vm14, 1, %v6824_v24  ;;  %v2062_v25 = vsel %vm2055_vm1, %v2058_v22, %v2061_v44  ;;  %v1782_v21 = vor.u32 %v5992_v7, %v5982_v20 }
 0x390   :  { %v2176_v56 = vshrl.u32 %v6006_v46, %v2174_v37  ;;  %v2179_v28 = vadd.s32 127, %v2178_v60  ;;  %v1689_v43 = vadd.s32 %v1687_v15, %v1685_v53  ;;  %v2063_v14 = vsel %vm2052_vm10, nan, %v2062_v25 }
 0x391   :  { %vm2066_vm2 = vcmp.lt.s32.totalorder %v6912_v61, 0  ;;  %v1681_v38 = vshrl.u32 %v1676_v6, 16  ;;  %2873 = vmatpush.msrb.mxu2 %v2063_v14  ;;  %v6059_v18 = vadd.s32 %v1684_v11, %v1680_v36  ;;  %v1799_v46 = vsel %vm1789_vm9, %v1785_v30, 1326507024 }
 0x392   :  { %v2177_v8 = vor.u32 %v2176_v56, %v2175_v26  ;;  %v2180_v47 = vshll.u32 %v2179_v28, 23  ;;  %v1690_v59 = vadd.s32 %v1689_v43, %v1679_v54  ;;  %v2189_v32 = vsel %vm2066_vm2, %v2188_v1, %v6000_v4 }
 0x393   :  { %v1638_v20 = vsel %vm1632_vm6, %v1635_v9, %v1637_v34  ;;  %v1761_v7 = vand.u32 8388607, %v1754_v39  ;;  %vm1694_vm15 = vc.u32 %v6044_v48, %v6059_v18  ;;  %v1772_v63 = vshrl.u32 %v6825_v23, %v6922_v49 }
 0x394   :  { %v2181_v6 = vor.u32 4788187, %v2180_v47  ;;  %v1691_v33 = vadd.s32 %v1690_v59, %v1681_v38  ;;  %v2184_v17 = vcvt.s32.f32 %v2177_v8  ;;  %v1774_v12 = vshll.u32 %v6825_v23, %v6923_v3 }
 0x395   :  { %v1762_v30 = vor.u32 8388608, %v1761_v7  ;;  %v1775_v58 = vshrl.u32 %v6826_v51, %v6922_v49  ;;  %v1777_v34 = vshll.u32 %v6826_v51, %v6923_v3  ;;  %v1778_v16 = vshrl.u32 %v6820_v52, %v6922_v49 }
 0x396   :  { %v2182_v4 = vand.u32 2147483647, %v2181_v6  ;;  %v1695_v9 = vadd.s32 1, %v1691_v33  ;;  %v1692_v29 = vmul.u32 %v5949_v57, %v1638_v20  ;;  %v1771_v1 = vshll.u32 %v6821_v0, %v6923_v3 }
 0x397   :  { %v6088_v40 = vor.u32 %v1775_v58, %v1774_v12  ;;  %vm1788_vm6 = vcmp.lt.s32.totalorder %v6924_v2, 3  ;;  %v6091_v50 = vor.u32 %v1778_v16, %v1777_v34  ;;  %vm6097_vm5 = vcmp.le.f32.partialorder %v2064_v55, 0.7853982 }
 0x398   :  { %v2185_v27 = vmul.f32 %v2184_v17, %v2182_v4  ;;  %v1696_v62 = vsel %vm1694_vm15, %v1695_v9, %v1691_v33  ;;  %v1800_v41 = vsel %vm1788_vm6, %v1782_v21, %v1799_v46  ;;  %vm1786_vm12 = vcmp.lt.s32.totalorder %v6924_v2, 1 }
 0x399   :  { %v1697_v57 = vadd.s32 %v1696_v62, %v1692_v29  ;;  %v6102_v3 = vshll.u32 %v1762_v30, 8  ;;  %v6104_v11 = vor.u32 %v1772_v63, %v1771_v1  ;;  %vm1787_vm4 = vcmp.lt.s32.totalorder %v6924_v2, 2 }
 0x39a   :  { %v2186_v36 = vxor.u32 2147483648, %v2185_v27  ;;  %v1798_v53 = vsel %vm1786_vm12, %v6088_v40, %v6091_v50  ;;  %v2191_v55 = vsel %vm6097_vm5, 0, %v2189_v32  ;;  %v1795_v10 = vsel %vm1789_vm9, %v1782_v21, 920167782 }
 0x39b   :  { %v1698_v45 = vadd.s32 536870912, %v1697_v57  ;;  %v1801_v44 = vsel %vm1787_vm4, %v1798_v53, %v1800_v41  ;;  %v1803_v37 = vand.u32 65535, %v6102_v3  ;;  %v2208_v56 = vadd.s32 3, %v2191_v55 }
 0x39c   :  { %v2187_v54 = vsel %vm2066_vm2, %v2186_v36, %v2185_v27  ;;  %v1805_v26 = vand.u32 65535, %v1801_v44  ;;  %v1806_v15 = vshrl.u32 %v1801_v44, 16  ;;  %v1794_v28 = vsel %vm1786_vm12, %v6104_v11, %v6088_v40 }
 0x39d   :  { %v2190_v60 = vsel %vm6097_vm5, %v6912_v61, %v2187_v54  ;;  %v6123_v22 = vshrl.u32 %v1698_v45, 30  ;;  %v1796_v21 = vsel %vm1788_vm6, %v6091_v50, %v1795_v10  ;;  %v1804_v14 = vshrl.u32 %v6102_v3, 16 }
 0x39e   :  { %v2192_v25 = vmul.f32 %v2190_v60, %v2190_v60  ;;  %v6134_v38 = vmul.u32 %v1806_v15, %v1803_v37  ;;  %v1797_v6 = vsel %vm1787_vm4, %v1794_v28, %v1796_v21  ;;  %v1807_v33 = vmul.u32 %v1805_v26, %v1803_v37 }
 0x39f   :  { %v1700_v43 = vshll.u32 %v6123_v22, 30  ;;  %v6138_v46 = vmul.u32 %v1805_v26, %v1804_v14  ;;  %v2209_v63 = vand.u32 3, %v2208_v56  ;;  %v1828_v16 = vshrl.u32 %v1797_v6, 16 }
 0x3a0   :  { %v2193_v8 = vmul.f32 -0.001358992, %v2192_v25  ;;  %v2200_v47 = vmul.f32 -0.00019511016, %v2192_v25  ;;  %v1811_v32 = vshll.u32 %v6134_v38, 16  ;;  %v1810_v62 = vmul.u32 %v1806_v15, %v1804_v14 }
 0x3a1   :  { %v6136_v59 = vsub.s32 %v1697_v57, %v1700_v43  ;;  %v1813_v9 = vshll.u32 %v6138_v46, 16  ;;  %v1827_v41 = vand.u32 65535, %v1797_v6  ;;  %vm2210_vm10 = vcmp.lt.s32.totalorder %v2209_v63, 2 }
 0x3a2   :  { %v2194_v20 = vadd.f32 0.041655596, %v2193_v8  ;;  %v2201_v7 = vadd.f32 0.008332121, %v2200_v47  ;;  %vm1815_vm7 = vc.u32 %v1807_v33, %v1811_v32  ;;  %v1817_v58 = vadd.s32 %v1811_v32, %v1807_v33 }
 0x3a3   :  { %vm1702_vm11 = vcmp.lt.s32.totalorder %v6136_v59, 0  ;;  %v1703_v17 = vsub.s32 0, %v6136_v59  ;;  %v1816_v34 = vsel %vm1815_vm7, 1, %v6824_v24  ;;  %vm2207_vm13 = vweird.f32 %v6912_v61 }
 0x3a4   :  { %v2195_v30 = vmul.f32 %v2194_v20, %v2192_v25  ;;  %v2202_v12 = vmul.f32 %v2201_v7, %v2192_v25  ;;  %vm1819_vm1 = vc.u32 %v1817_v58, %v1813_v9  ;;  %v1818_v53 = vadd.s32 %v1816_v34, %v1810_v62 }
 0x3a5   :  { %v1704_v4 = vsel %vm1702_vm11, %v1703_v17, %v6136_v59  ;;  %vm2211_vm3 = vcmp.eq.s32.totalorder %v2209_v63, 0  ;;  %vm2214_vm14 = vcmp.eq.s32.totalorder %v2209_v63, 2  ;;  %v1820_v55 = vsel %vm1819_vm1, 1, %v6824_v24 }
 0x3a6   :  { %v2196_v29 = vadd.f32 -0.4999988, %v2195_v30  ;;  %v2203_v1 = vadd.f32 -0.16666654, %v2202_v12  ;;  %v1705_v27 = vclz %v1704_v4  ;;  %v1830_v45 = vmul.u32 %v1828_v16, %v1803_v37 }
 0x3a7   :  { %v1693_v54 = vadd.s32 %v6059_v18, %v6044_v48  ;;  %v1829_v15 = vmul.u32 %v1827_v41, %v1803_v37  ;;  %v1831_v56 = vmul.u32 %v1827_v41, %v1804_v14  ;;  %v1822_v8 = vadd.s32 %v1820_v55, %v1818_v53 }
 0x3a8   :  { %v2197_v42 = vmul.f32 %v2196_v29, %v2192_v25  ;;  %v2204_v57 = vmul.f32 %v2203_v1, %v2192_v25  ;;  %v3671_v36 = vadd.s32 4294967294, %v1705_v27  ;;  %v1833_v25 = vshll.u32 %v1830_v45, 16 }
 0x3a9   :  { %v1791_v32 = vsel %vm1789_vm9, %v6091_v50, 2102212464  ;;  %v1812_v20 = vshrl.u32 %v6134_v38, 16  ;;  %v1832_v7 = vmul.u32 %v1828_v16, %v1804_v14  ;;  %v1835_v33 = vshll.u32 %v1831_v56, 16 }
 0x3aa   :  { %v2198_v44 = vadd.f32 1.0, %v2197_v42  ;;  %v2205_v10 = vadd.f32 1.0, %v2204_v57  ;;  %vm3672_vm2 = vcmp.lt.s32.totalorder %v3671_v36, 0  ;;  %vm1837_vm15 = vc.u32 %v1829_v15, %v1833_v25 }
 0x3ab   :  { %v1708_v26 = vsel %vm3672_vm2, 0, %v3671_v36  ;;  %v1839_v17 = vadd.s32 %v1833_v25, %v1829_v15  ;;  %v1823_v58 = vadd.s32 %v1822_v8, %v1812_v20  ;;  %v1770_v9 = vshrl.u32 %v6821_v0, %v6922_v49 }
 0x3ac   :  { %v2206_v28 = vmul.f32 %v2205_v10, %v2190_v60  ;;  %v2215_v43 = vxor.u32 2147483648, %v2198_v44  ;;  %v1709_v21 = vsub.s32 32, %v1708_v26  ;;  %v1713_v47 = vsub.s32 4294967266, %v1708_v26 }
 0x3ad   :  { %v1710_v48 = vshll.u32 %v6136_v59, %v1708_v26  ;;  %v1838_v60 = vsel %vm1837_vm15, 1, %v6824_v24  ;;  %vm1841_vm9 = vc.u32 %v1839_v17, %v1835_v33  ;;  %v1814_v34 = vshrl.u32 %v6138_v46, 16 }
 0x3ae   :  { %v2212_v6 = vxor.u32 2147483648, %v2206_v28  ;;  %v1711_v18 = vshrl.u32 %v1693_v54, %v1709_v21  ;;  %v1714_v37 = vadd.s32 127, %v1713_v47  ;;  %v2216_v12 = vsel %vm2214_vm14, %v2215_v43, %v2206_v28 }
 0x3af   :  { %v1840_v4 = vadd.s32 %v1838_v60, %v1832_v7  ;;  %v1842_v16 = vsel %vm1841_vm9, 1, %v6824_v24  ;;  %v1834_v1 = vshrl.u32 %v1830_v45, 16  ;;  %v1790_v63 = vsel %vm1786_vm12, %v1770_v9, %v6104_v11 }
 0x3b0   :  { %v2213_v30 = vsel %vm2211_vm3, %v2198_v44, %v2212_v6  ;;  %v1712_v38 = vor.u32 %v1711_v18, %v1710_v48  ;;  %v1715_v14 = vshll.u32 %v1714_v37, 23  ;;  %v1792_v61 = vsel %vm1788_vm6, %v6088_v40, %v1791_v32 }
 0x3b1   :  { %v2217_v50 = vsel %vm2210_vm10, %v2213_v30, %v2216_v12  ;;  %v1844_v27 = vadd.s32 %v1842_v16, %v1840_v4  ;;  %v1824_v62 = vadd.s32 %v1823_v58, %v1814_v34  ;;  %v1836_v49 = vshrl.u32 %v1831_v56, 16 }
 0x3b2   :  { %v2218_v59 = vsel %vm2207_vm13, nan, %v2217_v50  ;;  %v1716_v29 = vor.u32 4788187, %v1715_v14  ;;  %v1719_v42 = vcvt.s32.f32 %v1712_v38  ;;  %v1843_v46 = vadd.s32 %v1839_v17, %v1835_v33 }
 0x3b3   :  { %2896 = vmatpush.msrb.mxu3 %v2218_v59  ;;  %v1845_v57 = vadd.s32 %v1844_v27, %v1834_v1  ;;  %v1793_v53 = vsel %vm1787_vm4, %v1790_v63, %v1792_v61  ;;  %vm1601_vm12 = vcmp.lt.s32.totalorder %v6915_v19, 0  ;;  %vm6179_vm6 = vcmp.le.f32.partialorder %v1599_v13, 0.7853982 }
 0x3b4   :  { %v1717_v41 = vand.u32 2147483647, %v1716_v29  ;;  %vm1849_vm5 = vc.u32 %v1824_v62, %v1843_v46  ;;  %v1847_v11 = vmul.u32 %v6102_v3, %v1793_v53  ;;  %v1723_v54 = vsub.s32 4, %v6123_v22  ;;  %v2839_v53 = vld [vmem:[%s6721_s5] sm:$0xff] }
 0x3b5   :  { %v1846_v55 = vadd.s32 %v1845_v57, %v1836_v49  ;;  %v1848_v9 = vadd.s32 %v1843_v46, %v1824_v62  ;;  %vm1742_vm13 = vweird.f32 %v6915_v19  ;;  %vm1756_vm3 = vcmp.lt.s32.totalorder %v6925_v35, 0 }
 0x3b6   :  { %v1720_v36 = vmul.f32 %v1719_v42, %v1717_v41  ;;  %v1724_v28 = vsel %vm1601_vm12, %v1723_v54, %v6123_v22  ;;  %vm6201_vm14 = vcmp.le.f32.partialorder %v1754_v39, 0.7853982 }
 0x3b7   :  { %v1850_v44 = vadd.s32 1, %v1846_v55  ;;  %v1726_v47 = vsel %vm6179_vm6, 0, %v1724_v28 }
 0x3b8   :  { %v1721_v45 = vxor.u32 2147483648, %v1720_v36  ;;  %v1743_v37 = vadd.s32 3, %v1726_v47 }
 0x3b9   :  { %v1851_v26 = vsel %vm1849_vm5, %v1850_v44, %v1846_v55  ;;  %vm1897_vm5 = vweird.f32 %v6925_v35 }
 0x3ba   :  { %v1722_v10 = vsel %vm1601_vm12, %v1721_v45, %v1720_v36  ;;  %v1852_v15 = vadd.s32 %v1851_v26, %v1847_v11  ;;  %v1744_v58 = vand.u32 3, %v1743_v37 }
 0x3bb   :  { %v1725_v2 = vsel %vm6179_vm6, %v6915_v19, %v1722_v10  ;;  %v2840_v19 = vld [vmem:[%s6721_s5 + $0x8] sm:$0xff] }
 0x3bc   :  { %v1727_v56 = vmul.f32 %v1725_v2, %v1725_v2  ;;  %v1853_v25 = vadd.s32 536870912, %v1852_v15  ;;  %vm1745_vm11 = vcmp.lt.s32.totalorder %v1744_v58, 2  ;;  %vm1746_vm1 = vcmp.eq.s32.totalorder %v1744_v58, 0 }
 0x3bd   :  { %vm1749_vm10 = vcmp.eq.s32.totalorder %v1744_v58, 2 }
 0x3be   :  { %v1728_v3 = vmul.f32 -0.001358992, %v1727_v56  ;;  %v1735_v43 = vmul.f32 -0.00019511016, %v1727_v56  ;;  %v1854_v21 = vshrl.u32 %v1853_v25, 30 }
 0x3c0   :  { %v1729_v13 = vadd.f32 0.041655596, %v1728_v3  ;;  %v1736_v8 = vadd.f32 0.008332121, %v1735_v43  ;;  %v1855_v32 = vshll.u32 %v1854_v21, 30  ;;  %v1878_v10 = vsub.s32 4, %v1854_v21 }
 0x3c2   :  { %v1730_v20 = vmul.f32 %v1729_v13, %v1727_v56  ;;  %v1737_v7 = vmul.f32 %v1736_v8, %v1727_v56  ;;  %v1856_v6 = vsub.s32 %v1852_v15, %v1855_v32 }
 0x3c4   :  { %v1731_v48 = vadd.f32 -0.4999988, %v1730_v20  ;;  %v1738_v18 = vadd.f32 -0.16666654, %v1737_v7  ;;  %vm1857_vm4 = vcmp.lt.s32.totalorder %v1856_v6, 0  ;;  %v1858_v33 = vsub.s32 0, %v1856_v6 }
 0x3c6   :  { %v1732_v60 = vmul.f32 %v1731_v48, %v1727_v56  ;;  %v1739_v17 = vmul.f32 %v1738_v18, %v1727_v56  ;;  %v1859_v22 = vsel %vm1857_vm4, %v1858_v33, %v1856_v6  ;;  %v1879_v56 = vsel %vm1756_vm3, %v1878_v10, %v1854_v21 }
 0x3c7   :  { %v1860_v4 = vclz %v1859_v22  ;;  %v1881_v39 = vsel %vm6201_vm14, 0, %v1879_v56 }
 0x3c8   :  { %v1733_v30 = vadd.f32 1.0, %v1732_v60  ;;  %v1740_v12 = vadd.f32 1.0, %v1739_v17  ;;  %v1898_v47 = vadd.s32 3, %v1881_v39 }
 0x3c9   :  { %v3674_v14 = vadd.s32 4294967294, %v1860_v4 }
 0x3ca   :  { %v1741_v50 = vmul.f32 %v1740_v12, %v1725_v2  ;;  %v1750_v38 = vxor.u32 2147483648, %v1733_v30  ;;  %v1899_v48 = vand.u32 3, %v1898_v47  ;;  %v2846_v12 = vpop.permute.xlu0 %2845 }
 0x3cb   :  { %vm3675_vm7 = vcmp.lt.s32.totalorder %v3674_v14, 0 }
 0x3cc   :  { %v1747_v59 = vxor.u32 2147483648, %v1741_v50  ;;  %v1863_v34 = vsel %vm3675_vm7, 0, %v3674_v14  ;;  %v1751_v29 = vsel %vm1749_vm10, %v1750_v38, %v1741_v50  ;;  %vm1901_vm2 = vcmp.eq.s32.totalorder %v1899_v48, 0 }
 0x3cd   :  { %v1864_v1 = vsub.s32 32, %v1863_v34  ;;  %v1868_v27 = vsub.s32 4294967266, %v1863_v34  ;;  %v1865_v41 = vshll.u32 %v1856_v6, %v1863_v34  ;;  %vm1904_vm15 = vcmp.eq.s32.totalorder %v1899_v48, 2 }
 0x3ce   :  { %v1748_v16 = vsel %vm1746_vm1, %v1733_v30, %v1747_v59  ;;  %vm1900_vm9 = vcmp.lt.s32.totalorder %v1899_v48, 2 }
 0x3cf   :  { %v1752_v63 = vsel %vm1745_vm11, %v1748_v16, %v1751_v29  ;;  %v1866_v42 = vshrl.u32 %v1848_v9, %v1864_v1  ;;  %v1869_v49 = vadd.s32 127, %v1868_v27  ;;  %v6218_v9 = vpop.permute.xlu2 %2850 }
 0x3d0   :  { %v1753_v61 = vsel %vm1742_vm13, nan, %v1752_v63 }
 0x3d1   :  { %2874 = vmatpush.msrb.mxu2 %v1753_v61  ;;  %v1867_v57 = vor.u32 %v1866_v42, %v1865_v41  ;;  %v1870_v36 = vshll.u32 %v1869_v49, 23 }
 0x3d2   :  { %3694 = vmatmul.msk.f32.vlgmr.msrb.gmra.mxu2 %vm1528_vm8, %v2839_v53 }
 0x3d3   :  { %v1871_v62 = vor.u32 4788187, %v1870_v36  ;;  %v1874_v55 = vcvt.s32.f32 %v1867_v57 }
 0x3d5   :  { %v1872_v46 = vand.u32 2147483647, %v1871_v62 }
 0x3d7   :  { %v1875_v45 = vmul.f32 %v1874_v55, %v1872_v46 }
 0x3d9   :  { %v1876_v44 = vxor.u32 2147483648, %v1875_v45 }
 0x3da   :  { %3695 = vmatmul.msk.f32.gmra.mxu2 %vm1528_vm8, %v2840_v19 }
 0x3db   :  { %v1877_v40 = vsel %vm1756_vm3, %v1876_v44, %v1875_v45 }
 0x3dc   :  { %v1880_v54 = vsel %vm6201_vm14, %v6925_v35, %v1877_v40 }
 0x3dd   :  { %v1882_v26 = vmul.f32 %v1880_v54, %v1880_v54 }
 0x3df   :  { %v1883_v2 = vmul.f32 -0.001358992, %v1882_v26  ;;  %v1890_v15 = vmul.f32 -0.00019511016, %v1882_v26 }
 0x3e1   :  { %v1884_v25 = vadd.f32 0.041655596, %v1883_v2  ;;  %v1891_v28 = vadd.f32 0.008332121, %v1890_v15 }
 0x3e3   :  { %v1885_v3 = vmul.f32 %v1884_v25, %v1882_v26  ;;  %v1892_v43 = vmul.f32 %v1891_v28, %v1882_v26 }
 0x3e5   :  { %v1886_v13 = vadd.f32 -0.4999988, %v1885_v3  ;;  %v1893_v8 = vadd.f32 -0.16666654, %v1892_v43 }
 0x3e7   :  { %v1887_v32 = vmul.f32 %v1886_v13, %v1882_v26  ;;  %v1894_v20 = vmul.f32 %v1893_v8, %v1882_v26 }
 0x3e9   :  { %v1888_v7 = vadd.f32 1.0, %v1887_v32  ;;  %v1895_v6 = vadd.f32 1.0, %v1894_v20 }
 0x3eb   :  { %v1896_v18 = vmul.f32 %v1895_v6, %v1880_v54  ;;  %v1905_v37 = vxor.u32 2147483648, %v1888_v7 }
 0x3ed   :  { %v1902_v33 = vxor.u32 2147483648, %v1896_v18  ;;  %v1906_v60 = vsel %vm1904_vm15, %v1905_v37, %v1896_v18 }
 0x3ef   :  { %v1903_v21 = vsel %vm1901_vm2, %v1888_v7, %v1902_v33 }
 0x3f0   :  { %v1907_v17 = vsel %vm1900_vm9, %v1903_v21, %v1906_v60 }
 0x3f1   :  { %v1908_v22 = vsel %vm1897_vm5, nan, %v1907_v17 }
 0x3f2   :  { %2897 = vmatpush.msrb.mxu3 %v1908_v22 }
 0x3f3   :  { %3696 = vmatmul.msk.f32.vlgmr.msrb.gmra.mxu3 %vm1528_vm8, %v2839_v53 }
 0x3fb   :  { %3697 = vmatmul.msk.f32.gmra.mxu3 %vm1528_vm8, %v2840_v19 }
 0x455   :  { %v2876_v30 = vpop.f32.mrf.mxu2 }
 0x456   :  { %v6214_v58 = vadd.f32 %v2876_v30, %v2846_v12 }
 0x458   :  { %v2908_v4 = vand.u32 2139095040, %v6214_v58  ;;  %v6796_v14 = vand.u32 2147483647, %v6214_v58 }
 0x45a   :  { %v2909_v50 = vshrl.u32 %v2908_v4, 23  ;;  %v2912_v16 = vand.u32 8388607, %v6796_v14 }
 0x45c   :  { %v3698_v38 = vadd.s32 4294967169, %v2909_v50  ;;  %v2913_v27 = vor.u32 8388608, %v2912_v16 }
 0x45d   :  { %v2879_v35 = vpop.f32.mrf.mxu2 }
 0x45e   :  { %v2915_v59 = vadd.s32 1, %v3698_v38  ;;  %v6221_v34 = vadd.f32 %v2879_v35, %v6218_v9  ;;  %v6226_v57 = vshll.u32 %v2913_v27, 8 }
 0x460   :  { %vm2916_vm8 = vcmp.gt.s32.totalorder %v2915_v59, 0  ;;  %v3218_v29 = vand.u32 2139095040, %v6221_v34  ;;  %v6797_v55 = vand.u32 2147483647, %v6221_v34  ;;  %v6237_v44 = vand.u32 65535, %v6226_v57 }
 0x461   :  { %v2917_v63 = vsel %vm2916_vm8, %v2915_v59, 0  ;;  %v6240_v11 = vshrl.u32 %v6226_v57, 16 }
 0x462   :  { %v3219_v1 = vshrl.u32 %v3218_v29, 23  ;;  %v2919_v41 = vand.u32 31, %v2917_v63  ;;  %v6234_v19 = vshrl.u32 %v2917_v63, 5  ;;  %v3222_v13 = vand.u32 8388607, %v6797_v55 }
 0x464   :  { %v3704_v61 = vadd.s32 4294967169, %v3219_v1  ;;  %v6231_v46 = vsub.s32 32, %v2919_v41  ;;  %v2922_v10 = vshll.u32 %v6821_v0, %v2919_v41  ;;  %v2925_v54 = vshll.u32 %v6825_v23, %v2919_v41 }
 0x465   :  { %v2928_v15 = vshll.u32 %v6826_v51, %v2919_v41  ;;  %v2931_v56 = vshll.u32 %v6820_v52, %v2919_v41  ;;  %v2934_v25 = vshll.u32 %v6876_v31, %v2919_v41  ;;  %vm2937_vm6 = vcmp.lt.s32.totalorder %v6234_v19, 1 }
 0x466   :  { %v3225_v49 = vadd.s32 1, %v3704_v61  ;;  %v2923_v39 = vshrl.u32 %v6825_v23, %v6231_v46  ;;  %v2932_v3 = vshrl.u32 %v6876_v31, %v6231_v46  ;;  %v2935_v43 = vshrl.u32 %v6840_v5, %v6231_v46 }
 0x467   :  { %v2926_v7 = vshrl.u32 %v6826_v51, %v6231_v46  ;;  %v2929_v17 = vshrl.u32 %v6820_v52, %v6231_v46  ;;  %v3223_v50 = vor.u32 8388608, %v3222_v13  ;;  %vm2940_vm7 = vcmp.lt.s32.totalorder %v6234_v19, 4 }
 0x468   :  { %vm3226_vm12 = vcmp.gt.s32.totalorder %v3225_v49, 0  ;;  %v2933_v22 = vor.u32 %v2932_v3, %v2931_v56  ;;  %v2936_v4 = vor.u32 %v2935_v43, %v2934_v25  ;;  %v6285_v1 = vor.u32 %v2923_v39, %v2922_v10 }
 0x469   :  { %v3227_v62 = vsel %vm3226_vm12, %v3225_v49, 0  ;;  %v6287_v27 = vor.u32 %v2926_v7, %v2925_v54  ;;  %v6291_v61 = vor.u32 %v2929_v17, %v2928_v15  ;;  %vm2939_vm13 = vcmp.lt.s32.totalorder %v6234_v19, 3 }
 0x46a   :  { %v3229_v45 = vand.u32 31, %v3227_v62  ;;  %v6270_v48 = vshrl.u32 %v3227_v62, 5  ;;  %v2950_v62 = vsel %vm2940_vm7, %v2936_v4, 1326507024 }
 0x46b   :  { %v6314_v54 = vsel %vm2937_vm6, %v6285_v1, %v6287_v27  ;;  %v6329_v25 = vsel %vm2937_vm6, %v6287_v27, %v6291_v61  ;;  %v6337_v3 = vsel %vm2939_vm13, %v2933_v22, %v2950_v62 }
 0x46c   :  { %v6245_v2 = vsub.s32 32, %v3229_v45  ;;  %v3241_v32 = vshll.u32 %v6820_v52, %v3229_v45  ;;  %v3232_v33 = vshll.u32 %v6821_v0, %v3229_v45  ;;  %v3235_v21 = vshll.u32 %v6825_v23, %v3229_v45 }
 0x46d   :  { %v3238_v30 = vshll.u32 %v6826_v51, %v3229_v45  ;;  %v3244_v29 = vshll.u32 %v6876_v31, %v3229_v45  ;;  %vm3250_vm4 = vcmp.lt.s32.totalorder %v6270_v48, 4  ;;  %vm3247_vm1 = vcmp.lt.s32.totalorder %v6270_v48, 1 }
 0x46e   :  { %v3233_v8 = vshrl.u32 %v6825_v23, %v6245_v2  ;;  %v3236_v47 = vshrl.u32 %v6826_v51, %v6245_v2  ;;  %v3242_v20 = vshrl.u32 %v6876_v31, %v6245_v2  ;;  %v3239_v18 = vshrl.u32 %v6820_v52, %v6245_v2 }
 0x46f   :  { %vm3249_vm10 = vcmp.lt.s32.totalorder %v6270_v48, 3  ;;  %vm3248_vm3 = vcmp.lt.s32.totalorder %v6270_v48, 2 }
 0x470   :  { %v3243_v60 = vor.u32 %v3242_v20, %v3241_v32  ;;  %v3234_v38 = vor.u32 %v3233_v8, %v3232_v33  ;;  %v6281_v59 = vor.u32 %v3236_v47, %v3235_v21  ;;  %v3240_v16 = vor.u32 %v3239_v18, %v3238_v30 }
 0x471   :  { %v3231_v20 = vshrl.u32 %v6821_v0, %v6245_v2 }
 0x472   :  { %v3256_v63 = vsel %vm3250_vm4, %v3243_v60, 920167782  ;;  %v3255_v49 = vsel %vm3247_vm1, %v3234_v38, %v6281_v59  ;;  %v3259_v15 = vsel %vm3247_vm1, %v6281_v59, %v3240_v16 }
 0x473   :  { %v3257_v10 = vsel %vm3249_vm10, %v3240_v16, %v3256_v63  ;;  %v3251_v17 = vsel %vm3247_vm1, %v3231_v20, %v3234_v38 }
 0x476   :  { %v2899_v42 = vpop.f32.mrf.mxu3 }
 0x477   :  { %v6228_v36 = vadd.f32 %v2899_v42, %v2846_v12  ;;  %v3245_v12 = vshrl.u32 %v6840_v5, %v6245_v2  ;;  %v2946_v42 = vsel %vm2940_vm7, %v2933_v22, 920167782 }
 0x478   :  { %v6323_v56 = vsel %vm2939_vm13, %v6291_v61, %v2946_v42 }
 0x479   :  { %v3063_v53 = vand.u32 2139095040, %v6228_v36  ;;  %v6795_v26 = vand.u32 2147483647, %v6228_v36  ;;  %v3246_v41 = vor.u32 %v3245_v12, %v3244_v29  ;;  %v3252_v12 = vsel %vm3250_vm4, %v3240_v16, 2102212464 }
 0x47b   :  { %v3064_v40 = vshrl.u32 %v3063_v53, 23  ;;  %v3067_v6 = vand.u32 8388607, %v6795_v26  ;;  %v6301_v53 = vshll.u32 %v3223_v50, 8  ;;  %v3260_v39 = vsel %vm3250_vm4, %v3246_v41, 1326507024 }
 0x47c   :  { %v3261_v13 = vsel %vm3249_vm10, %v3243_v60, %v3260_v39 }
 0x47d   :  { %v3701_v28 = vadd.s32 4294967169, %v3064_v40  ;;  %v3068_v35 = vor.u32 8388608, %v3067_v6  ;;  %v3264_v8 = vand.u32 65535, %v6301_v53  ;;  %v3262_v7 = vsel %vm3248_vm3, %v3259_v15, %v3261_v13 }
 0x47e   :  { %v2902_v47 = vpop.f32.mrf.mxu3  ;;  %v3265_v6 = vshrl.u32 %v6301_v53, 16  ;;  %v3267_v33 = vshrl.u32 %v3262_v7, 16 }
 0x47f   :  { %v3070_v37 = vadd.s32 1, %v3701_v28  ;;  %v6305_v40 = vshll.u32 %v3068_v35, 8  ;;  %v3258_v28 = vsel %vm3248_vm3, %v3255_v49, %v3257_v10  ;;  %v6358_v30 = vadd.f32 %v2902_v47, %v6218_v9 }
 0x480   :  { %v3289_v21 = vshrl.u32 %v3258_v28, 16  ;;  %v3288_v22 = vand.u32 65535, %v3258_v28  ;;  %v3269_v4 = vmul.u32 %v3267_v33, %v3264_v8  ;;  %v3271_v62 = vmul.u32 %v3267_v33, %v3265_v6 }
 0x481   :  { %vm3071_vm11 = vcmp.gt.s32.totalorder %v3070_v37, 0  ;;  %v6343_v32 = vand.u32 65535, %v6305_v40  ;;  %v6351_v18 = vshrl.u32 %v6305_v40, 16  ;;  %v6798_v41 = vand.u32 2147483647, %v6358_v30 }
 0x482   :  { %v3072_v45 = vsel %vm3071_vm11, %v3070_v37, 0  ;;  %v3266_v37 = vand.u32 65535, %v3262_v7  ;;  %v3291_v63 = vmul.u32 %v3289_v21, %v3264_v8  ;;  %v3272_v42 = vshll.u32 %v3269_v4, 16 }
 0x483   :  { %v3074_v43 = vand.u32 31, %v3072_v45  ;;  %v6353_v60 = vshrl.u32 %v3072_v45, 5  ;;  %v3373_v49 = vand.u32 2139095040, %v6358_v30  ;;  %v3290_v45 = vmul.u32 %v3288_v22, %v3264_v8 }
 0x484   :  { %v3270_v50 = vmul.u32 %v3266_v37, %v3265_v6  ;;  %v3268_v9 = vmul.u32 %v3266_v37, %v3264_v8  ;;  %v3292_v16 = vmul.u32 %v3288_v22, %v3265_v6  ;;  %v3294_v10 = vshll.u32 %v3291_v63, 16 }
 0x485   :  { %v6360_v2 = vsub.s32 32, %v3074_v43  ;;  %v3077_v35 = vshll.u32 %v6821_v0, %v3074_v43  ;;  %v6366_v29 = vshll.u32 %v6825_v23, %v3074_v43  ;;  %v6370_v38 = vshll.u32 %v6826_v51, %v3074_v43 }
 0x486   :  { %v3274_v15 = vshll.u32 %v3270_v50, 16  ;;  %vm3276_vm14 = vc.u32 %v3268_v9, %v3272_v42  ;;  %v3278_v28 = vadd.s32 %v3272_v42, %v3268_v9  ;;  %v3374_v39 = vshrl.u32 %v3373_v49, 23 }
 0x487   :  { %v6374_v13 = vshll.u32 %v6820_v52, %v3074_v43  ;;  %v3277_v47 = vsel %vm3276_vm14, 1, %v6824_v24  ;;  %v3293_v20 = vmul.u32 %v3289_v21, %v3265_v6  ;;  %v3377_v7 = vand.u32 8388607, %v6798_v41 }
 0x488   :  { %v3279_v37 = vadd.s32 %v3277_v47, %v3271_v62  ;;  %v3707_v26 = vadd.s32 4294967169, %v3374_v39  ;;  %vm3280_vm2 = vc.u32 %v3278_v28, %v3274_v15  ;;  %vm3298_vm15 = vc.u32 %v3290_v45, %v3294_v10 }
 0x489   :  { %v3281_v8 = vsel %vm3280_vm2, 1, %v6824_v24  ;;  %v3296_v33 = vshll.u32 %v3292_v16, 16  ;;  %v3299_v22 = vsel %vm3298_vm15, 1, %v6824_v24  ;;  %v3300_v9 = vadd.s32 %v3294_v10, %v3290_v45 }
 0x48a   :  { %v6382_v42 = vshll.u32 %v6876_v31, %v3074_v43  ;;  %v3380_v49 = vadd.s32 1, %v3707_v26  ;;  %v3283_v14 = vadd.s32 %v3281_v8, %v3279_v37  ;;  %v3301_v55 = vadd.s32 %v3299_v22, %v3293_v20 }
 0x48b   :  { %v3078_v6 = vshrl.u32 %v6825_v23, %v6360_v2  ;;  %v6388_v21 = vshrl.u32 %v6826_v51, %v6360_v2  ;;  %v3273_v62 = vshrl.u32 %v3269_v4, 16  ;;  %vm3302_vm9 = vc.u32 %v3300_v9, %v3296_v33 }
 0x48c   :  { %v3253_v15 = vsel %vm3249_vm10, %v6281_v59, %v3252_v12  ;;  %v3378_v45 = vor.u32 8388608, %v3377_v7  ;;  %vm3381_vm5 = vcmp.gt.s32.totalorder %v3380_v49, 0  ;;  %v3303_v43 = vsel %vm3302_vm9, 1, %v6824_v24 }
 0x48d   :  { %v3084_v26 = vshrl.u32 %v6820_v52, %v6360_v2  ;;  %v3382_v10 = vsel %vm3381_vm5, %v3380_v49, 0  ;;  %v3284_v28 = vadd.s32 %v3283_v14, %v3273_v62  ;;  %v3305_v39 = vadd.s32 %v3303_v43, %v3301_v55 }
 0x48e   :  { %v3087_v47 = vshrl.u32 %v6876_v31, %v6360_v2  ;;  %v6400_v4 = vshrl.u32 %v6840_v5, %v6360_v2  ;;  %v3384_v20 = vand.u32 31, %v3382_v10  ;;  %v3295_v37 = vshrl.u32 %v3291_v63, 16 }
 0x48f   :  { %v6402_v59 = vor.u32 %v3078_v6, %v3077_v35  ;;  %v3254_v12 = vsel %vm3248_vm3, %v3251_v17, %v3253_v15  ;;  %v3275_v7 = vshrl.u32 %v3270_v50, 16  ;;  %v3297_v8 = vshrl.u32 %v3292_v16, 16 }
 0x490   :  { %v3385_v22 = vsub.s32 32, %v3384_v20  ;;  %v6406_v49 = vshll.u32 %v3378_v45, 8  ;;  %v6408_v14 = vadd.s32 %v3300_v9, %v3296_v33  ;;  %v3306_v55 = vadd.s32 %v3305_v39, %v3295_v37 }
 0x491   :  { %v6410_v62 = vshrl.u32 %v3382_v10, 5  ;;  %v3387_v43 = vshll.u32 %v6821_v0, %v3384_v20  ;;  %v3390_v41 = vshll.u32 %v6825_v23, %v3384_v20  ;;  %v6414_v63 = vadd.s32 %v3284_v28, %v3275_v7 }
 0x492   :  { %v3388_v35 = vshrl.u32 %v6825_v23, %v3385_v22  ;;  %v3391_v48 = vshrl.u32 %v6826_v51, %v3385_v22  ;;  %v3393_v17 = vshll.u32 %v6826_v51, %v3384_v20  ;;  %v3394_v50 = vshrl.u32 %v6820_v52, %v3385_v22 }
 0x493   :  { %v3396_v16 = vshll.u32 %v6820_v52, %v3384_v20  ;;  %v3397_v33 = vshrl.u32 %v6876_v31, %v3385_v22  ;;  %v3399_v9 = vshll.u32 %v6876_v31, %v3384_v20  ;;  %v3400_v6 = vshrl.u32 %v6840_v5, %v3385_v22 }
 0x494   :  { %v3389_v15 = vor.u32 %v3388_v35, %v3387_v43  ;;  %v6424_v45 = vor.u32 %v3391_v48, %v3390_v41  ;;  %v3395_v10 = vor.u32 %v3394_v50, %v3393_v17  ;;  %v3307_v28 = vadd.s32 %v3306_v55, %v3297_v8 }
 0x495   :  { %v3308_v23 = vmul.u32 %v6301_v53, %v3254_v12  ;;  %v3398_v39 = vor.u32 %v3397_v33, %v3396_v16  ;;  %v3401_v37 = vor.u32 %v3400_v6, %v3399_v9  ;;  %vm3402_vm8 = vcmp.lt.s32.totalorder %v6410_v62, 1 }
 0x496   :  { %vm3405_vm12 = vcmp.lt.s32.totalorder %v6410_v62, 4  ;;  %v3410_v52 = vsel %vm3402_vm8, %v3389_v15, %v6424_v45  ;;  %v3414_v51 = vsel %vm3402_vm8, %v6424_v45, %v3395_v10  ;;  %vm3310_vm4 = vc.u32 %v6414_v63, %v6408_v14 }
 0x497   :  { %vm3404_vm11 = vcmp.lt.s32.totalorder %v6410_v62, 3  ;;  %v3411_v5 = vsel %vm3405_vm12, %v3398_v39, 920167782  ;;  %v3415_v31 = vsel %vm3405_vm12, %v3401_v37, 1326507024  ;;  %v3311_v53 = vadd.s32 1, %v3307_v28 }
 0x498   :  { %vm3403_vm1 = vcmp.lt.s32.totalorder %v6410_v62, 2  ;;  %v3412_v41 = vsel %vm3404_vm11, %v3395_v10, %v3411_v5  ;;  %v3416_v20 = vsel %vm3404_vm11, %v3398_v39, %v3415_v31  ;;  %v3419_v12 = vand.u32 65535, %v6406_v49 }
 0x499   :  { %v3413_v7 = vsel %vm3403_vm1, %v3410_v52, %v3412_v41  ;;  %v3417_v8 = vsel %vm3403_vm1, %v3414_v51, %v3416_v20  ;;  %v3420_v55 = vshrl.u32 %v6406_v49, 16  ;;  %v3312_v43 = vsel %vm3310_vm4, %v3311_v53, %v3307_v28 }
 0x49a   :  { %v3421_v35 = vand.u32 65535, %v3417_v8  ;;  %v3422_v48 = vshrl.u32 %v3417_v8, 16  ;;  %v3443_v17 = vand.u32 65535, %v3413_v7  ;;  %v3444_v50 = vshrl.u32 %v3413_v7, 16 }
 0x49b   :  { %v6455_v16 = vor.u32 %v6388_v21, %v6366_v29  ;;  %v6458_v33 = vor.u32 %v3084_v26, %v6370_v38  ;;  %v3386_v9 = vshrl.u32 %v6821_v0, %v3385_v22  ;;  %v3313_v6 = vadd.s32 %v3312_v43, %v3308_v23 }
 0x49c   :  { %v6462_v39 = vor.u32 %v3087_v47, %v6374_v13  ;;  %v3091_v28 = vor.u32 %v6400_v4, %v6382_v42  ;;  %v3424_v37 = vmul.u32 %v3422_v48, %v3419_v12  ;;  %v3425_v52 = vmul.u32 %v3421_v35, %v3420_v55 }
 0x49d   :  { %v3406_v51 = vsel %vm3402_vm8, %v3386_v9, %v3389_v15  ;;  %v3446_v5 = vmul.u32 %v3444_v50, %v3419_v12  ;;  %v3447_v29 = vmul.u32 %v3443_v17, %v3420_v55  ;;  %vm2938_vm10 = vcmp.lt.s32.totalorder %v6234_v19, 2 }
 0x49e   :  { %v3407_v38 = vsel %vm3405_vm12, %v3395_v10, 2102212464  ;;  %v3423_v21 = vmul.u32 %v3421_v35, %v3419_v12  ;;  %v3427_v26 = vshll.u32 %v3424_v37, 16  ;;  %v3314_v22 = vadd.s32 536870912, %v3313_v6 }
 0x49f   :  { %v3426_v13 = vmul.u32 %v3422_v48, %v3420_v55  ;;  %v3445_v47 = vmul.u32 %v3443_v17, %v3419_v12  ;;  %v3449_v23 = vshll.u32 %v3446_v5, 16  ;;  %v2952_v31 = vsel %vm2938_vm10, %v6329_v25, %v6337_v3 }
 0x4a0   :  { %v3429_v53 = vshll.u32 %v3425_v52, 16  ;;  %vm3431_vm3 = vc.u32 %v3423_v21, %v3427_v26  ;;  %v3433_v15 = vadd.s32 %v3427_v26, %v3423_v21  ;;  %v6475_v41 = vshrl.u32 %v3314_v22, 30 }
 0x4a1   :  { %v3432_v20 = vsel %vm3431_vm3, 1, %v6824_v24  ;;  %v3451_v7 = vshll.u32 %v3447_v29, 16  ;;  %vm3453_vm14 = vc.u32 %v3445_v47, %v3449_v23  ;;  %v3455_v10 = vadd.s32 %v3449_v23, %v3445_v47 }
 0x4a2   :  { %v3434_v8 = vadd.s32 %v3432_v20, %v3426_v13  ;;  %v3448_v43 = vmul.u32 %v3444_v50, %v3420_v55  ;;  %v3316_v12 = vshll.u32 %v6475_v41, 30  ;;  %vm3435_vm2 = vc.u32 %v3433_v15, %v3429_v53 }
 0x4a3   :  { %v3428_v35 = vshrl.u32 %v3424_v37, 16  ;;  %v3436_v48 = vsel %vm3435_vm2, 1, %v6824_v24  ;;  %v3454_v25 = vsel %vm3453_vm14, 1, %v6824_v24  ;;  %vm3457_vm15 = vc.u32 %v3455_v10, %v3451_v7 }
 0x4a4   :  { %vm3092_vm9 = vcmp.lt.s32.totalorder %v6353_v60, 1  ;;  %vm3095_vm5 = vcmp.lt.s32.totalorder %v6353_v60, 4  ;;  %v6483_v3 = vsub.s32 %v3313_v6, %v3316_v12  ;;  %v3430_v17 = vshrl.u32 %v3425_v52, 16 }
 0x4a5   :  { %v3438_v9 = vadd.s32 %v3436_v48, %v3434_v8  ;;  %v3456_v21 = vadd.s32 %v3454_v25, %v3448_v43  ;;  %v3450_v26 = vshrl.u32 %v3446_v5, 16  ;;  %v3458_v55 = vsel %vm3457_vm15, 1, %v6824_v24 }
 0x4a6   :  { %v2956_v50 = vand.u32 65535, %v2952_v31  ;;  %v2957_v22 = vshrl.u32 %v2952_v31, 16  ;;  %vm3318_vm8 = vcmp.lt.s32.totalorder %v6483_v3, 0  ;;  %v3319_v37 = vsub.s32 0, %v6483_v3 }
 0x4a7   :  { %v3439_v13 = vadd.s32 %v3438_v9, %v3428_v35  ;;  %v3460_v47 = vadd.s32 %v3458_v55, %v3456_v21  ;;  %v3408_v23 = vsel %vm3404_vm11, %v6424_v45, %v3407_v38  ;;  %v2948_v6 = vsel %vm2938_vm10, %v6314_v54, %v6323_v56 }
 0x4a8   :  { %v2959_v52 = vmul.u32 %v2957_v22, %v6237_v44  ;;  %v6497_v5 = vmul.u32 %v2956_v50, %v6240_v11  ;;  %v3320_v31 = vsel %vm3318_vm8, %v3319_v37, %v6483_v3  ;;  %v3452_v15 = vshrl.u32 %v3447_v29, 16 }
 0x4a9   :  { %v6500_v53 = vadd.s32 %v3439_v13, %v3430_v17  ;;  %v3461_v20 = vadd.s32 %v3460_v47, %v3450_v26  ;;  %v3321_v8 = vclz %v3320_v31  ;;  %v6502_v43 = vadd.s32 %v3455_v10, %v3451_v7 }
 0x4aa   :  { %v2958_v45 = vmul.u32 %v2956_v50, %v6237_v44  ;;  %v2962_v38 = vshll.u32 %v2959_v52, 16  ;;  %v3409_v54 = vsel %vm3403_vm1, %v3406_v51, %v3408_v23  ;;  %v2961_v12 = vmul.u32 %v2957_v22, %v6240_v11 }
 0x4ab   :  { %v3462_v56 = vadd.s32 %v3461_v20, %v3452_v15  ;;  %v2978_v35 = vand.u32 65535, %v2948_v6  ;;  %v3705_v48 = vadd.s32 4294967294, %v3321_v8  ;;  %vm3465_vm12 = vc.u32 %v6500_v53, %v6502_v43 }
 0x4ac   :  { %v2964_v29 = vshll.u32 %v6497_v5, 16  ;;  %vm2966_vm4 = vc.u32 %v2958_v45, %v2962_v38  ;;  %v2968_v10 = vadd.s32 %v2962_v38, %v2958_v45  ;;  %v2979_v17 = vshrl.u32 %v2948_v6, 16 }
 0x4ad   :  { %v3466_v25 = vadd.s32 1, %v3462_v56  ;;  %v2967_v7 = vsel %vm2966_vm4, 1, %v6824_v24  ;;  %v6516_v62 = vsel %vm3092_vm9, %v6402_v59, %v6455_v16  ;;  %v3101_v51 = vsel %vm3095_vm5, %v6462_v39, 920167782 }
 0x4ae   :  { %vm3217_vm11 = vcmp.lt.s32.totalorder %v6221_v34, 0  ;;  %v3463_v9 = vmul.u32 %v6406_v49, %v3409_v54  ;;  %vm3706_vm1 = vcmp.lt.s32.totalorder %v3705_v48, 0  ;;  %v2969_v55 = vadd.s32 %v2967_v7, %v2961_v12 }
 0x4af   :  { %v3324_v21 = vsel %vm3706_vm1, 0, %v3705_v48  ;;  %v3467_v26 = vsel %vm3465_vm12, %v3466_v25, %v3462_v56  ;;  %vm2970_vm3 = vc.u32 %v2968_v10, %v2964_v29  ;;  %v3309_v50 = vadd.s32 %v6408_v14, %v6414_v63 }
 0x4b0   :  { %v3325_v22 = vsub.s32 32, %v3324_v21  ;;  %v3329_v37 = vsub.s32 4294967266, %v3324_v21  ;;  %v3468_v13 = vadd.s32 %v3467_v26, %v3463_v9  ;;  %v6529_v47 = vsel %vm3092_vm9, %v6455_v16, %v6458_v33 }
 0x4b1   :  { %v2971_v23 = vsel %vm2970_vm3, 1, %v6824_v24  ;;  %v2981_v49 = vmul.u32 %v2979_v17, %v6237_v44  ;;  %v2982_v6 = vmul.u32 %v2978_v35, %v6240_v11  ;;  %v3326_v31 = vshll.u32 %v6483_v3, %v3324_v21 }
 0x4b2   :  { %v3327_v15 = vshrl.u32 %v3309_v50, %v3325_v22  ;;  %v3330_v20 = vadd.s32 127, %v3329_v37  ;;  %v3469_v14 = vadd.s32 536870912, %v3468_v13  ;;  %vm3094_vm14 = vcmp.lt.s32.totalorder %v6353_v60, 3 }
 0x4b3   :  { %v3339_v63 = vsub.s32 4, %v6475_v41  ;;  %v2973_v8 = vadd.s32 %v2971_v23, %v2969_v55  ;;  %v2980_v45 = vmul.u32 %v2978_v35, %v6237_v44  ;;  %v2984_v38 = vshll.u32 %v2981_v49, 16 }
 0x4b4   :  { %v3328_v54 = vor.u32 %v3327_v15, %v3326_v31  ;;  %v3331_v56 = vshll.u32 %v3330_v20, 23  ;;  %v6538_v12 = vshrl.u32 %v3469_v14, 30  ;;  %v2921_v48 = vshrl.u32 %v6821_v0, %v6231_v46 }
 0x4b5   :  { %v2963_v29 = vshrl.u32 %v2959_v52, 16  ;;  %v2986_v3 = vshll.u32 %v2982_v6, 16  ;;  %vm2988_vm2 = vc.u32 %v2980_v45, %v2984_v38  ;;  %v2990_v25 = vadd.s32 %v2984_v38, %v2980_v45 }
 0x4b6   :  { %v3332_v7 = vor.u32 4788187, %v3331_v56  ;;  %v3471_v10 = vshll.u32 %v6538_v12, 30  ;;  %v2942_v9 = vsel %vm2940_vm7, %v6291_v61, 2102212464  ;;  %v2983_v44 = vmul.u32 %v2979_v17, %v6240_v11 }
 0x4b7   :  { %v3340_v35 = vsel %vm3217_vm11, %v3339_v63, %v6475_v41  ;;  %v2974_v21 = vadd.s32 %v2973_v8, %v2963_v29  ;;  %v2989_v46 = vsel %vm2988_vm2, 1, %v6824_v24  ;;  %vm2992_vm15 = vc.u32 %v2990_v25, %v2986_v3 }
 0x4b8   :  { %v3333_v52 = vand.u32 2147483647, %v3332_v7  ;;  %v3335_v26 = vcvt.s32.f32 %v3328_v54  ;;  %v3472_v55 = vsub.s32 %v3468_v13, %v3471_v10  ;;  %v2991_v50 = vadd.s32 %v2989_v46, %v2983_v44 }
 0x4b9   :  { %v3105_v61 = vsel %vm3095_vm5, %v3091_v28, 1326507024  ;;  %v6932_v11 = vand.u32 2147483647, %v6221_v34  ;;  %v2941_v41 = vsel %vm2937_vm6, %v2921_v48, %v6285_v1  ;;  %v2993_v22 = vsel %vm2992_vm15, 1, %v6824_v24 }
 0x4ba   :  { %v3336_v37 = vmul.f32 %v3335_v26, %v3333_v52  ;;  %vm3473_vm8 = vcmp.lt.s32.totalorder %v3472_v55, 0  ;;  %v3474_v13 = vsub.s32 0, %v3472_v55  ;;  %v2965_v42 = vshrl.u32 %v6497_v5, 16 }
 0x4bb   :  { %vm6558_vm7 = vcmp.le.f32.partialorder %v6932_v11, 0.7853982  ;;  %v2943_v28 = vsel %vm2939_vm13, %v6287_v27, %v2942_v9  ;;  %v2985_v23 = vshrl.u32 %v2981_v49, 16  ;;  %v2995_v31 = vadd.s32 %v2993_v22, %v2991_v50 }
 0x4bc   :  { %v3342_v4 = vsel %vm6558_vm7, 0, %v3340_v35  ;;  %v3102_v1 = vsel %vm3094_vm14, %v6458_v33, %v3101_v51  ;;  %v3337_v15 = vxor.u32 2147483648, %v3336_v37  ;;  %v3475_v20 = vsel %vm3473_vm8, %v3474_v13, %v3472_v55 }
 0x4bd   :  { %v6575_v14 = vadd.s32 %v2974_v21, %v2965_v42  ;;  %v3106_v5 = vsel %vm3094_vm14, %v6462_v39, %v3105_v61  ;;  %v3476_v63 = vclz %v3475_v20  ;;  %v2987_v8 = vshrl.u32 %v2982_v6, 16 }
 0x4be   :  { %v2996_v45 = vadd.s32 %v2995_v31, %v2985_v23  ;;  %v3338_v27 = vsel %vm3217_vm11, %v3337_v15, %v3336_v37  ;;  %v3359_v49 = vadd.s32 3, %v3342_v4  ;;  %v2944_v38 = vsel %vm2938_vm10, %v2941_v41, %v2943_v28 }
 0x4bf   :  { %v6584_v54 = vadd.s32 %v2990_v25, %v2986_v3  ;;  %vm3372_vm6 = vcmp.lt.s32.totalorder %v6358_v30, 0  ;;  %v6590_v51 = vsel %vm6558_vm7, %v6221_v34, %v3338_v27  ;;  %v3708_v39 = vadd.s32 4294967294, %v3476_v63 }
 0x4c0   :  { %v2997_v56 = vadd.s32 %v2996_v45, %v2987_v8  ;;  %vm3093_vm13 = vcmp.lt.s32.totalorder %v6353_v60, 2  ;;  %v3343_v6 = vmul.f32 %v6590_v51, %v6590_v51  ;;  %v3464_v19 = vadd.s32 %v6502_v43, %v6500_v53 }
 0x4c1   :  { %vm3000_vm10 = vc.u32 %v6575_v14, %v6584_v54  ;;  %v3107_v48 = vsel %vm3093_vm13, %v6529_v47, %v3106_v5  ;;  %vm3709_vm12 = vcmp.lt.s32.totalorder %v3708_v39, 0  ;;  %v2998_v29 = vmul.u32 %v6226_v57, %v2944_v38 }
 0x4c2   :  { %v3001_v3 = vadd.s32 1, %v2997_v56  ;;  %v3112_v25 = vshrl.u32 %v3107_v48, 16  ;;  %v3344_v7 = vmul.f32 -0.001358992, %v3343_v6  ;;  %v3351_v10 = vmul.f32 -0.00019511016, %v3343_v6 }
 0x4c3   :  { %v3479_v9 = vsel %vm3709_vm12, 0, %v3708_v39  ;;  %v3111_v44 = vand.u32 65535, %v3107_v48  ;;  %v6603_v35 = vand.u32 3, %v3359_v49  ;;  %v6935_v53 = vand.u32 2147483647, %v6358_v30 }
 0x4c4   :  { %v3480_v21 = vsub.s32 32, %v3479_v9  ;;  %v3484_v46 = vsub.s32 4294967266, %v3479_v9  ;;  %v3002_v47 = vsel %vm3000_vm10, %v3001_v3, %v2997_v56  ;;  %v3345_v52 = vadd.f32 0.041655596, %v3344_v7 }
 0x4c5   :  { %vm6607_vm4 = vcmp.le.f32.partialorder %v6935_v53, 0.7853982  ;;  %v3352_v26 = vadd.f32 0.008332121, %v3351_v10  ;;  %v3494_v57 = vsub.s32 4, %v6538_v12  ;;  %v3003_v50 = vadd.s32 %v3002_v47, %v2998_v29 }
 0x4c6   :  { %v3481_v61 = vshll.u32 %v3472_v55, %v3479_v9  ;;  %v3482_v11 = vshrl.u32 %v3464_v19, %v3480_v21  ;;  %v3485_v17 = vadd.s32 127, %v3484_v46  ;;  %v6613_v41 = vmul.u32 %v3112_v25, %v6343_v32 }
 0x4c7   :  { %v3346_v22 = vmul.f32 %v3345_v52, %v3343_v6  ;;  %v3353_v37 = vmul.f32 %v3352_v26, %v3343_v6  ;;  %v3004_v13 = vadd.s32 536870912, %v3003_v50  ;;  %v6616_v42 = vmul.u32 %v3111_v44, %v6351_v18 }
 0x4c8   :  { %v3483_v4 = vor.u32 %v3482_v11, %v3481_v61  ;;  %v3486_v28 = vshll.u32 %v3485_v17, 23  ;;  %v3113_v23 = vmul.u32 %v3111_v44, %v6343_v32  ;;  %v3117_v31 = vshll.u32 %v6613_v41, 16 }
 0x4c9   :  { %v3347_v15 = vadd.f32 -0.4999988, %v3346_v22  ;;  %v3354_v20 = vadd.f32 -0.16666654, %v3353_v37  ;;  %v3495_v55 = vsel %vm3372_vm6, %v3494_v57, %v6538_v12  ;;  %v6623_v5 = vshrl.u32 %v3004_v13, 30 }
 0x4ca   :  { %v3487_v63 = vor.u32 4788187, %v3486_v28  ;;  %v3103_v8 = vsel %vm3093_vm13, %v6516_v62, %v3102_v1  ;;  %v3116_v45 = vmul.u32 %v3112_v25, %v6351_v18  ;;  %vm3121_vm11 = vc.u32 %v3113_v23, %v3117_v31 }
 0x4cb   :  { %v3348_v27 = vmul.f32 %v3347_v15, %v3343_v6  ;;  %v3355_v49 = vmul.f32 %v3354_v20, %v3343_v6  ;;  %vm3361_vm1 = vcmp.lt.s32.totalorder %v6603_v35, 2  ;;  %v3006_v38 = vshll.u32 %v6623_v5, 30 }
 0x4cc   :  { %v3119_v39 = vshll.u32 %v6616_v42, 16  ;;  %vm3358_vm3 = vweird.f32 %v6221_v34  ;;  %v3488_v12 = vand.u32 2147483647, %v3487_v63  ;;  %v3490_v56 = vcvt.s32.f32 %v3483_v4 }
 0x4cd   :  { %v3122_v19 = vsel %vm3121_vm11, 1, %v6824_v24  ;;  %v3123_v48 = vadd.s32 %v3117_v31, %v3113_v23  ;;  %v3349_v29 = vadd.f32 1.0, %v3348_v27  ;;  %v3356_v62 = vadd.f32 1.0, %v3355_v49 }
 0x4ce   :  { %v3497_v1 = vsel %vm6607_vm4, 0, %v3495_v55  ;;  %v6636_v3 = vsub.s32 %v3003_v50, %v3006_v38  ;;  %v3491_v6 = vmul.f32 %v3490_v56, %v3488_v12  ;;  %v3124_v25 = vadd.s32 %v3122_v19, %v3116_v45 }
 0x4cf   :  { %vm3125_vm2 = vc.u32 %v3123_v48, %v3119_v39  ;;  %v3134_v7 = vshrl.u32 %v3103_v8, 16  ;;  %v3357_v10 = vmul.f32 %v3356_v62, %v6590_v51  ;;  %v3366_v9 = vxor.u32 2147483648, %v3349_v29 }
 0x4d0   :  { %vm3008_vm15 = vcmp.lt.s32.totalorder %v6636_v3, 0  ;;  %v3009_v44 = vsub.s32 0, %v6636_v3  ;;  %vm3362_vm7 = vcmp.eq.s32.totalorder %v6603_v35, 0  ;;  %vm3365_vm8 = vcmp.eq.s32.totalorder %v6603_v35, 2 }
 0x4d1   :  { %v3492_v53 = vxor.u32 2147483648, %v3491_v6  ;;  %v3126_v21 = vsel %vm3125_vm2, 1, %v6824_v24  ;;  %v3363_v46 = vxor.u32 2147483648, %v3357_v10  ;;  %v2999_v47 = vadd.s32 %v6584_v54, %v6575_v14 }
 0x4d2   :  { %v3010_v52 = vsel %vm3008_vm15, %v3009_v44, %v6636_v3  ;;  %v3133_v26 = vand.u32 65535, %v3103_v8  ;;  %v3367_v51 = vsel %vm3365_vm8, %v3366_v9, %v3357_v10  ;;  %v3514_v50 = vadd.s32 3, %v3497_v1 }
 0x4d3   :  { %v3493_v57 = vsel %vm3372_vm6, %v3492_v53, %v3491_v6  ;;  %v3011_v61 = vclz %v3010_v52  ;;  %v3364_v11 = vsel %vm3362_vm7, %v3349_v29, %v3363_v46  ;;  %v3128_v22 = vadd.s32 %v3126_v21, %v3124_v25 }
 0x4d4   :  { %v3496_v17 = vsel %vm6607_vm4, %v6358_v30, %v3493_v57  ;;  %v3136_v37 = vmul.u32 %v3134_v7, %v6343_v32  ;;  %v3368_v14 = vsel %vm3361_vm1, %v3364_v11, %v3367_v51  ;;  %v3076_v4 = vshrl.u32 %v6821_v0, %v6360_v2 }
 0x4d5   :  { %v3498_v54 = vmul.f32 %v3496_v17, %v3496_v17  ;;  %v3699_v13 = vadd.s32 4294967294, %v3011_v61  ;;  %v3369_v28 = vsel %vm3358_vm3, nan, %v3368_v14  ;;  %v3097_v23 = vsel %vm3095_vm5, %v6458_v33, 2102212464 }
 0x4d6   :  { %v3118_v43 = vshrl.u32 %v6613_v41, 16  ;;  %v3137_v31 = vmul.u32 %v3133_v26, %v6351_v18  ;;  %3549 = vmatpush.msra.mxu2 %v3369_v28  ;;  %v3096_v20 = vsel %vm3092_vm9, %v3076_v4, %v6402_v59  ;;  %v3135_v34 = vmul.u32 %v3133_v26, %v6343_v32 }
 0x4d7   :  { %v3499_v15 = vmul.f32 -0.001358992, %v3498_v54  ;;  %v3506_v35 = vmul.f32 -0.00019511016, %v3498_v54  ;;  %vm3700_vm6 = vcmp.lt.s32.totalorder %v3699_v13, 0  ;;  %v3139_v55 = vshll.u32 %v3136_v37, 16 }
 0x4d8   :  { %v3014_v0 = vsel %vm3700_vm6, 0, %v3699_v13  ;;  %v3129_v2 = vadd.s32 %v3128_v22, %v3118_v43  ;;  %v3138_v41 = vmul.u32 %v3134_v7, %v6351_v18  ;;  %v3141_v27 = vshll.u32 %v3137_v31, 16 }
 0x4d9   :  { %v3500_v63 = vadd.f32 0.041655596, %v3499_v15  ;;  %v3507_v8 = vadd.f32 0.008332121, %v3506_v35  ;;  %v3015_v33 = vsub.s32 32, %v3014_v0  ;;  %v3019_v45 = vsub.s32 4294967266, %v3014_v0 }
 0x4da   :  { %vm3143_vm5 = vc.u32 %v3135_v34, %v3139_v55  ;;  %v3145_v49 = vadd.s32 %v3139_v55, %v3135_v34  ;;  %v3016_v59 = vshll.u32 %v6636_v3, %v3014_v0  ;;  %v3120_v62 = vshrl.u32 %v6616_v42, 16 }
 0x4db   :  { %v3501_v38 = vmul.f32 %v3500_v63, %v3498_v54  ;;  %v3508_v39 = vmul.f32 %v3507_v8, %v3498_v54  ;;  %v3017_v12 = vshrl.u32 %v2999_v47, %v3015_v33  ;;  %v3144_v56 = vsel %vm3143_vm5, 1, %v6824_v24 }
 0x4dc   :  { %v3020_v19 = vadd.s32 127, %v3019_v45  ;;  %v3146_v48 = vadd.s32 %v3144_v56, %v3138_v41  ;;  %vm3147_vm9 = vc.u32 %v3145_v49, %v3141_v27  ;;  %v3140_v25 = vshrl.u32 %v3136_v37, 16 }
 0x4dd   :  { %v3502_v32 = vadd.f32 -0.4999988, %v3501_v38  ;;  %v3509_v29 = vadd.f32 -0.16666654, %v3508_v39  ;;  %v3148_v18 = vsel %vm3147_vm9, 1, %v6824_v24  ;;  %v3018_v1 = vor.u32 %v3017_v12, %v3016_v59 }
 0x4de   :  { %v3021_v6 = vshll.u32 %v3020_v19, 23  ;;  %v3150_v7 = vadd.s32 %v3148_v18, %v3146_v48  ;;  %v3098_v44 = vsel %vm3094_vm14, %v6455_v16, %v3097_v23  ;;  %v6676_v3 = vadd.s32 %v3129_v2, %v3120_v62 }
 0x4df   :  { %v3503_v10 = vmul.f32 %v3502_v32, %v3498_v54  ;;  %v3510_v9 = vmul.f32 %v3509_v29, %v3498_v54  ;;  %v3142_v21 = vshrl.u32 %v3137_v31, 16  ;;  %v3515_v42 = vand.u32 3, %v3514_v50 }
 0x4e0   :  { %v3022_v53 = vor.u32 4788187, %v3021_v6  ;;  %v3151_v46 = vadd.s32 %v3150_v7, %v3140_v25  ;;  %v3149_v26 = vadd.s32 %v3145_v49, %v3141_v27  ;;  %v3025_v51 = vcvt.s32.f32 %v3018_v1 }
 0x4e1   :  { %v3504_v47 = vadd.f32 1.0, %v3503_v10  ;;  %v3511_v52 = vadd.f32 1.0, %v3510_v9  ;;  %v3099_v57 = vsel %vm3093_vm13, %v3096_v20, %v3098_v44  ;;  %vm2907_vm14 = vcmp.lt.s32.totalorder %v6214_v58, 0 }
 0x4e2   :  { %v3023_v24 = vand.u32 2147483647, %v3022_v53  ;;  %v3152_v61 = vadd.s32 %v3151_v46, %v3142_v21  ;;  %vm3155_vm10 = vc.u32 %v6676_v3, %v3149_v26  ;;  %v3153_v54 = vmul.u32 %v6305_v40, %v3099_v57 }
 0x4e3   :  { %v3512_v11 = vmul.f32 %v3511_v52, %v3496_v17  ;;  %v3521_v22 = vxor.u32 2147483648, %v3504_v47  ;;  %vm3517_vm12 = vcmp.eq.s32.totalorder %v3515_v42, 0  ;;  %vm3520_vm4 = vcmp.eq.s32.totalorder %v3515_v42, 2 }
 0x4e4   :  { %v3026_v16 = vmul.f32 %v3025_v51, %v3023_v24  ;;  %v3156_v37 = vadd.s32 1, %v3152_v61  ;;  %vm3516_vm11 = vcmp.lt.s32.totalorder %v3515_v42, 2  ;;  %vm3513_vm13 = vweird.f32 %v6358_v30 }
 0x4e5   :  { %v3518_v14 = vxor.u32 2147483648, %v3512_v11  ;;  %v3522_v60 = vsel %vm3520_vm4, %v3521_v22, %v3512_v11  ;;  %v6938_v23 = vand.u32 2147483647, %v6214_v58  ;;  %v3029_v15 = vsub.s32 4, %v6623_v5 }
 0x4e6   :  { %v3027_v50 = vxor.u32 2147483648, %v3026_v16  ;;  %v3157_v13 = vsel %vm3155_vm10, %v3156_v37, %v3152_v61  ;;  %v3154_v10 = vadd.s32 %v3149_v26, %v6676_v3  ;;  %vm3048_vm6 = vweird.f32 %v6214_v58  ;;  %v3525_v3 = vld [vmem:[%s6723_s7] sm:$0x7]  ;;  %s3756_s7 = smov [#allocation2]  }
 0x4e7   :  { %v3519_v4 = vsel %vm3517_vm12, %v3504_v47, %v3518_v14  ;;  %v3158_v28 = vadd.s32 %v3157_v13, %v3153_v54  ;;  %vm6686_vm1 = vcmp.le.f32.partialorder %v6938_v23, 0.7853982  ;;  %v3030_v55 = vsel %vm2907_vm14, %v3029_v15, %v6623_v5  ;;  %s3587_s2 = sshll.u32 %s3756_s7, 4  ;;  %s3588_s2 = int_to_ptr.vmem [resolvable:$true] %s3587_s2 }
 0x4e8   :  { %v3523_v17 = vsel %vm3516_vm11, %v3519_v4, %v3522_v60  ;;  %v3028_v40 = vsel %vm2907_vm14, %v3027_v50, %v3026_v16  ;;  %v3032_v45 = vsel %vm6686_vm1, 0, %v3030_v55  ;;  %vm3062_vm5 = vcmp.lt.s32.totalorder %v6228_v36, 0 }
 0x4e9   :  { %v3524_v31 = vsel %vm3513_vm13, nan, %v3523_v17  ;;  %v3031_v35 = vsel %vm6686_vm1, %v6214_v58, %v3028_v40  ;;  %v3159_v20 = vadd.s32 536870912, %v3158_v28  ;;  %v3049_v56 = vadd.s32 3, %v3032_v45 }
 0x4ea   :  { %3569 = vmatpush.msra.mxu3 %v3524_v31  ;;  %v3033_v30 = vmul.f32 %v3031_v35, %v3031_v35  ;;  %v6941_v58 = vand.u32 2147483647, %v6228_v36  ;;  %vm3203_vm4 = vweird.f32 %v6228_v36  ;;  %vm3578_vm11 = vcmask 1043456  }
 0x4eb   :  { %v3160_v0 = vshrl.u32 %v3159_v20, 30  ;;  %v3050_v18 = vand.u32 3, %v3049_v56 }
 0x4ec   :  { %v3034_v2 = vmul.f32 -0.001358992, %v3033_v30  ;;  %v3041_v34 = vmul.f32 -0.00019511016, %v3033_v30  ;;  %vm3061_vm9 = vcmp.le.f32.partialorder %v6941_v58, 0.7853982 }
 0x4ed   :  { %v3161_v63 = vshll.u32 %v3160_v0, 30  ;;  %vm3052_vm15 = vcmp.eq.s32.totalorder %v3050_v18, 0  ;;  %vm3055_vm7 = vcmp.eq.s32.totalorder %v3050_v18, 2  ;;  %vm3051_vm8 = vcmp.lt.s32.totalorder %v3050_v18, 2 }
 0x4ee   :  { %v3035_v8 = vadd.f32 0.041655596, %v3034_v2  ;;  %v3042_v33 = vadd.f32 0.008332121, %v3041_v34  ;;  %v3184_v14 = vsub.s32 4, %v3160_v0 }
 0x4ef   :  { %v3162_v41 = vsub.s32 %v3158_v28, %v3161_v63 }
 0x4f0   :  { %v3036_v27 = vmul.f32 %v3035_v8, %v3033_v30  ;;  %v3043_v49 = vmul.f32 %v3042_v33, %v3033_v30  ;;  %v3185_v60 = vsel %vm3062_vm5, %v3184_v14, %v3160_v0 }
 0x4f1   :  { %vm3163_vm3 = vcmp.lt.s32.totalorder %v3162_v41, 0  ;;  %v3164_v38 = vsub.s32 0, %v3162_v41  ;;  %v3187_v23 = vsel %vm3061_vm9, 0, %v3185_v60 }
 0x4f2   :  { %v3037_v39 = vadd.f32 -0.4999988, %v3036_v27  ;;  %v3044_v12 = vadd.f32 -0.16666654, %v3043_v49  ;;  %v3530_v49 = vpop.permute.xlu1 %3529 }
 0x4f3   :  { %v3165_v59 = vsel %vm3163_vm3, %v3164_v38, %v3162_v41 }
 0x4f4   :  { %v3038_v19 = vmul.f32 %v3037_v39, %v3033_v30  ;;  %v3045_v48 = vmul.f32 %v3044_v12, %v3033_v30  ;;  %v3166_v32 = vclz %v3165_v59 }
 0x4f6   :  { %v3039_v29 = vadd.f32 1.0, %v3038_v19  ;;  %v3046_v5 = vadd.f32 1.0, %v3045_v48  ;;  %v3702_v62 = vadd.s32 4294967294, %v3166_v32 }
 0x4f8   :  { %v3047_v1 = vmul.f32 %v3046_v5, %v3031_v35  ;;  %v3056_v6 = vxor.u32 2147483648, %v3039_v29  ;;  %vm3703_vm2 = vcmp.lt.s32.totalorder %v3702_v62, 0  ;;  %v3204_v35 = vadd.s32 3, %v3187_v23 }
 0x4f9   :  { %v3169_v25 = vsel %vm3703_vm2, 0, %v3702_v62 }
 0x4fa   :  { %v3053_v7 = vxor.u32 2147483648, %v3047_v1  ;;  %v3170_v9 = vsub.s32 32, %v3169_v25  ;;  %v3174_v44 = vsub.s32 4294967266, %v3169_v25  ;;  %v3057_v21 = vsel %vm3055_vm7, %v3056_v6, %v3047_v1 }
 0x4fb   :  { %v3171_v52 = vshll.u32 %v3162_v41, %v3169_v25  ;;  %v3205_v55 = vand.u32 3, %v3204_v35 }
 0x4fc   :  { %v3054_v53 = vsel %vm3052_vm15, %v3039_v29, %v3053_v7  ;;  %v3172_v46 = vshrl.u32 %v3154_v10, %v3170_v9  ;;  %v3175_v42 = vadd.s32 127, %v3174_v44 }
 0x4fd   :  { %v3058_v47 = vsel %vm3051_vm8, %v3054_v53, %v3057_v21  ;;  %vm3207_vm10 = vcmp.eq.s32.totalorder %v3205_v55, 0  ;;  %vm3210_vm14 = vcmp.eq.s32.totalorder %v3205_v55, 2  ;;  %vm3206_vm12 = vcmp.lt.s32.totalorder %v3205_v55, 2 }
 0x4fe   :  { %v3059_v24 = vsel %vm3048_vm6, nan, %v3058_v47  ;;  %v3173_v51 = vor.u32 %v3172_v46, %v3171_v52  ;;  %v3176_v57 = vshll.u32 %v3175_v42, 23 }
 0x4ff   :  { %3550 = vmatpush.msra.mxu2 %v3059_v24 }
 0x500   :  { %v3177_v26 = vor.u32 4788187, %v3176_v57  ;;  %3710 = vmatmul.msk.f32.vlgmr.msra.gmra.mxu2 %vm93_vm0, %v3525_v3  ;;  %v3180_v11 = vcvt.s32.f32 %v3173_v51 }
 0x502   :  { %v3178_v61 = vand.u32 2147483647, %v3177_v26 }
 0x504   :  { %v3181_v22 = vmul.f32 %v3180_v11, %v3178_v61 }
 0x506   :  { %v3182_v16 = vxor.u32 2147483648, %v3181_v22 }
 0x508   :  { %v3183_v37 = vsel %vm3062_vm5, %v3182_v16, %v3181_v22 }
 0x509   :  { %v3186_v54 = vsel %vm3061_vm9, %v6228_v36, %v3183_v37 }
 0x50a   :  { %v3188_v50 = vmul.f32 %v3186_v54, %v3186_v54 }
 0x50c   :  { %v3189_v13 = vmul.f32 -0.001358992, %v3188_v50  ;;  %v3196_v4 = vmul.f32 -0.00019511016, %v3188_v50 }
 0x50e   :  { %v3190_v28 = vadd.f32 0.041655596, %v3189_v13  ;;  %v3197_v17 = vadd.f32 0.008332121, %v3196_v4 }
 0x510   :  { %v3191_v43 = vmul.f32 %v3190_v28, %v3188_v50  ;;  %v3198_v40 = vmul.f32 %v3197_v17, %v3188_v50 }
 0x512   :  { %v3192_v31 = vadd.f32 -0.4999988, %v3191_v43  ;;  %v3199_v15 = vadd.f32 -0.16666654, %v3198_v40 }
 0x514   :  { %v3193_v20 = vmul.f32 %v3192_v31, %v3188_v50  ;;  %v3200_v30 = vmul.f32 %v3199_v15, %v3188_v50 }
 0x516   :  { %v3194_v2 = vadd.f32 1.0, %v3193_v20  ;;  %v3201_v34 = vadd.f32 1.0, %v3200_v30 }
 0x518   :  { %v3202_v63 = vmul.f32 %v3201_v34, %v3186_v54  ;;  %v3211_v8 = vxor.u32 2147483648, %v3194_v2 }
 0x51a   :  { %v3208_v33 = vxor.u32 2147483648, %v3202_v63  ;;  %v3212_v41 = vsel %vm3210_vm14, %v3211_v8, %v3202_v63 }
 0x51c   :  { %v3209_v0 = vsel %vm3207_vm10, %v3194_v2, %v3208_v33 }
 0x51d   :  { %v3213_v45 = vsel %vm3206_vm12, %v3209_v0, %v3212_v41 }
 0x51e   :  { %v3214_v27 = vsel %vm3203_vm4, nan, %v3213_v45 }
 0x51f   :  { %3570 = vmatpush.msra.mxu3 %v3214_v27 }
 0x520   :  { %3711 = vmatmul.msk.f32.vlgmr.msra.gmra.mxu3 %vm93_vm0, %v3525_v3 }
 0x583   :  { %v3552_v38 = vpop.f32.mrf.mxu2 }
 0x584   :  { %v3553_v56 = vadd.f32 %v3552_v38, %v3530_v49 }
 0x5a3   :  { %v3572_v39 = vpop.f32.mrf.mxu3 }
 0x5a4   :  { %v3573_v12 = vadd.f32 %v3572_v39, %v3530_v49 }
 0x5a6   :  { %v3577_v59 = vrot.slane %v3573_v12, 4 }
 0x5a8   :  { %v3579_v36 = vsel %vm3578_vm11, %v3553_v56, %v3577_v59 }
 0x5a9   :  { %3581 = vst [vmem:[#allocation2] sm:$0x77] %v3579_v36 }
 0x5aa   :  { %3592 = dma.vmem_to_hbm [thread:$0]  %s3588_s2, 128, %s3590_s0, [#allocation3]  }
 0x5ab   :  { %3747 = dma.done.wait [#allocation3], 128  }
 0x5ac   :  { %3748 = vsyncadd [#allocation3], 4294967168 }
 0x5ad   :  { %3597 = vsyncpa [#allocation3], 1 }

</bundles_post_ra>
